<compile_context>
chip_gen: v7x
topology: tpu7x:2x2x1
jax: 0.10.0
libtpu: 0.0.40
codegen_flags: <defaults>
</compile_context>

<pallas_src>
import jax
import jax.numpy as jnp
from jax import lax
from jax.experimental import pallas as pl
from jax.experimental.pallas import tpu as pltpu


# -----------------------------------------------------------------------------
# Pallas kernel: fused bidirectional GRU over time + (fwd+bwd)/2 + l2norm
# -----------------------------------------------------------------------------
def _encoder_text_kernel(emb_ref, len_ref,
                         wih_ref, bgi_ref,
                         whh_f_ref, whh_b_ref,
                         bhn_f_ref, bhn_b_ref,
                         out_ref,
                         gi_ref, acc_ref):
    T, TB, D = emb_ref.shape
    H = whh_f_ref.shape[0]
    H3 = 3 * H

    # ---- phase 1: hoisted input projection (both directions in ONE matmul) --
    # (T*TB, D) x (D, 6H) on the MXU; b_ih (+ b_hr, b_hz) already folded into
    # bgi so no per-step bias adds remain.
    emb2d = emb_ref[...].reshape(T * TB, D)
    gi_ref[...] = (
        jnp.dot(emb2d, wih_ref[...], preferred_element_type=jnp.float32)
        + bgi_ref[...])

    # Small recurrent weights stay resident; hoist the b_hn broadcasts once.
    whh_f = whh_f_ref[...]
    whh_b = whh_b_ref[...]
    bhn_f = jnp.broadcast_to(bhn_f_ref[...], (TB, H))
    bhn_b = jnp.broadcast_to(bhn_b_ref[...], (TB, H))
    len_col = len_ref[...]                       # (TB, 1) int32

    # ---- phase 2: fused forward/backward recurrence -------------------------
    # Both directions add into the time-major VMEM accumulator.
    acc_ref[...] = jnp.zeros(acc_ref.shape, acc_ref.dtype)

    def cell(h, gi, whh, bhn):
        # PyTorch GRU gate math, gate order [r, z, n]; only h @ W_hh is serial.
        gh = jnp.dot(h.astype(whh.dtype), whh,
                     preferred_element_type=jnp.float32)      # (TB, 3H)
        r = jax.nn.sigmoid(gi[:, 0:H] + gh[:, 0:H])
        z = jax.nn.sigmoid(gi[:, H:2 * H] + gh[:, H:2 * H])
        n = jnp.tanh(gi[:, 2 * H:] + r * (gh[:, 2 * H:] + bhn))
        return (1.0 - z) * n + z * h

    def body(i, carry):
        hf, hb = carry

        # forward chain at t = i
        tf = i
        rf = pl.multiple_of(tf * TB, TB)
        gi_fwd = gi_ref[pl.ds(rf, TB), pl.ds(0, H3)]
        hf_new = cell(hf, gi_fwd, whh_f, bhn_f)
        mf = tf < len_col                          # (TB, 1) bool
        hf = jnp.where(mf, hf_new, hf)             # padded steps keep h
        acc_ref[tf] = acc_ref[tf] + jnp.where(mf, hf, 0.0)

        # backward chain at t = T - 1 - i (independent dependency chain)
        tb = T - 1 - i
        rb = pl.multiple_of(tb * TB, TB)
        gi_bwd = gi_ref[pl.ds(rb, TB), pl.ds(H3, H3)]
        hb_new = cell(hb, gi_bwd, whh_b, bhn_b)
        mb = tb < len_col
        hb = jnp.where(mb, hb_new, hb)
        acc_ref[tb] = acc_ref[tb] + jnp.where(mb, hb, 0.0)

        return (hf, hb)

    h0 = jnp.zeros((TB, H), dtype=jnp.float32)
    lax.fori_loop(0, T, body, (h0, h0))

    # ---- phase 3: (fwd + bwd) / 2, l2norm, write batch-major output ---------
    cap = acc_ref[...] * 0.5                                   # (T, TB, H)
    ssum = jnp.sum(cap * cap, axis=-1, keepdims=True)
    # rsqrt runs on the EUP slot; tiny eps keeps all-zero (padded) rows at 0.
    normed = (cap * lax.rsqrt(ssum + 1e-16)).astype(out_ref.dtype)
    # Static (trace-time) scatter of the time-major accumulator into the
    # batch-major output block: removes the post-kernel XLA transpose pass.
    for t in range(T):
        out_ref[:, t, :] = normed[t]


# -----------------------------------------------------------------------------
# Wrapper
# -----------------------------------------------------------------------------
def encoder_text_forward(ids, lengths, params, *,
                         batch_tile=16, compute_dtype=jnp.bfloat16):
    """Pallas-backed EncoderText.forward(x, lengths).

    ids:     (B, T) int32 token ids
    lengths: (B,)   int32, sorted descending (pack_padded_sequence contract)
    returns: (cap_emb (B, T, H) float32, cap_len (B,) int32)
    """
    embed_table = params["embed"]
    B, T = ids.shape
    D = embed_table.shape[1]
    H = params["whh_f"].shape[0]

    # Lane/sublane alignment: H, 3H, D multiples of 128 so gate slices are
    # free vreg views; batch tile multiple of 16 covers both the bf16 (16,128)
    # and f32 (8,128) tiling rules.
    assert D % 128 == 0 and H % 128 == 0, "word_dim / embed_size must be multiples of 128"
    assert batch_tile % 16 == 0, "batch_tile must be a multiple of 16"

    TB = batch_tile
    nb = pl.cdiv(B, TB)
    B_pad = nb * TB
    if B_pad != B:
        ids = jnp.pad(ids, ((0, B_pad - B), (0, 0)))
        lengths_pad = jnp.pad(lengths.astype(jnp.int32), (0, B_pad - B))
    else:
        lengths_pad = lengths.astype(jnp.int32)

    # TODO(synk): embedding gather stays an XLA `take` (vocab-sized table does
    # not fit VMEM); it emits the time-major layout directly, so no (B,T,D)
    # transpose is materialized in HBM.
    emb_tbd = embed_table[ids.T].astype(compute_dtype)        # (T, B_pad, D)
    len_col = lengths_pad.reshape(B_pad, 1)                   # (B_pad, 1)

    # Fold biases once: gi gets b_ih (all gates) + b_hh for the r/z gates;
    # the n-gate hidden bias must stay inside r * (...) and is passed alone.
    def fold_biases(bih, bhh):
        bgi = bih + jnp.concatenate(
            [bhh[:, :2 * H], jnp.zeros((1, H), jnp.float32)], axis=1)
        return bgi.astype(jnp.float32), bhh[:, 2 * H:].astype(jnp.float32)

    bgi_f, bhn_f = fold_biases(params["bih_f"], params["bhh_f"])
    bgi_b, bhn_b = fold_biases(params["bih_b"], params["bhh_b"])

    # Fuse the two direction input projections into one (D, 6H) weight.
    wih = jnp.concatenate([params["wih_f"], params["wih_b"]],
                          axis=1).astype(compute_dtype)       # (D, 6H)
    bgi = jnp.concatenate([bgi_f, bgi_b], axis=1)             # (1, 6H) f32
    whh_f = params["whh_f"].astype(compute_dtype)
    whh_b = params["whh_b"].astype(compute_dtype)

    const2d = lambda b: (0, 0)   # weights / biases stay resident across the grid

    out = pl.pallas_call(
        _encoder_text_kernel,
        out_shape=jax.ShapeDtypeStruct((B_pad, T, H), jnp.float32),
        grid=(nb,),
        in_specs=[
            pl.BlockSpec((T, TB, D), lambda b: (0, b, 0)),    # emb (time-major)
            pl.BlockSpec((TB, 1), lambda b: (b, 0)),          # lengths column
            pl.BlockSpec((D, 6 * H), const2d),                # fused W_ih (f|b)
            pl.BlockSpec((1, 6 * H), const2d),                # fused folded gi bias
            pl.BlockSpec((H, 3 * H), const2d),                # W_hh fwd
            pl.BlockSpec((H, 3 * H), const2d),                # W_hh bwd
            pl.BlockSpec((1, H), const2d),                    # b_hn fwd
            pl.BlockSpec((1, H), const2d),                    # b_hn bwd
        ],
        out_specs=pl.BlockSpec((TB, T, H), lambda b: (b, 0, 0)),   # batch-major
        scratch_shapes=[
            pltpu.VMEM((T * TB, 6 * H), jnp.float32),         # gi (both dirs, all steps)
            pltpu.VMEM((T, TB, H), jnp.float32),              # time-major accumulator
        ],
        compiler_params=pltpu.CompilerParams(
            dimension_semantics=("parallel",),
            vmem_limit_bytes=64 * 1024 * 1024),
    )(emb_tbd, len_col, wih, bgi, whh_f, whh_b, bhn_f, bhn_b)

    # Output is already (B_pad, T, H) batch-major; just drop batch padding.
    return out[:B], lengths


# -----------------------------------------------------------------------------
# Deterministic parameter init (mirrors nn.Embedding / nn.GRU shapes)
# -----------------------------------------------------------------------------
def init_params(key, vocab_size, word_dim, embed_size):
    keys = jax.random.split(key, 9)
    k = 1.0 / jnp.sqrt(embed_size)
    embed = jax.random.uniform(keys[0], (vocab_size, word_dim),
                               minval=-0.1, maxval=0.1, dtype=jnp.float32)

    def u(kk, shape):
        return jax.random.uniform(kk, shape, minval=-k, maxval=k,
                                  dtype=jnp.float32)

    # PyTorch stores weight_ih_l0 as (3H, D); we keep the transposed (D, 3H)
    # so the kernel can do x @ W directly.  Gate order [r, z, n].
    return {
        "embed": embed,
        "wih_f": u(keys[1], (word_dim, 3 * embed_size)),
        "whh_f": u(keys[2], (embed_size, 3 * embed_size)),
        "bih_f": u(keys[3], (1, 3 * embed_size)),
        "bhh_f": u(keys[4], (1, 3 * embed_size)),
        "wih_b": u(keys[5], (word_dim, 3 * embed_size)),
        "whh_b": u(keys[6], (embed_size, 3 * embed_size)),
        "bih_b": u(keys[7], (1, 3 * embed_size)),
        "bhh_b": u(keys[8], (1, 3 * embed_size)),
    }


# -----------------------------------------------------------------------------
# Pure-JAX f32 reference (packed bi-GRU + avg + l2norm) for correctness checks
# -----------------------------------------------------------------------------
def reference_forward(ids, lengths, params):
    embed_table = params["embed"]
    B, T = ids.shape
    H = params["whh_f"].shape[0]
    emb = embed_table[ids]                          # (B, T, D)
    mask = (jnp.arange(T)[None, :] < lengths[:, None]).astype(jnp.float32)

    def cell(x, h, wih, whh, bih, bhh):
        gi = x @ wih + bih
        gh = h @ whh + bhh
        r = jax.nn.sigmoid(gi[:, :H] + gh[:, :H])
        z = jax.nn.sigmoid(gi[:, H:2 * H] + gh[:, H:2 * H])
        n = jnp.tanh(gi[:, 2 * H:] + r * gh[:, 2 * H:])
        return (1.0 - z) * n + z * h

    out_f = jnp.zeros((B, T, H), jnp.float32)
    h = jnp.zeros((B, H), jnp.float32)
    for t in range(T):
        m = mask[:, t:t + 1]
        h_new = cell(emb[:, t, :], h,
                     params["wih_f"], params["whh_f"],
                     params["bih_f"], params["bhh_f"])
        h = m * h_new + (1.0 - m) * h
        out_f = out_f.at[:, t, :].set(m * h)

    out_b = jnp.zeros((B, T, H), jnp.float32)
    h = jnp.zeros((B, H), jnp.float32)
    for t in range(T - 1, -1, -1):
        m = mask[:, t:t + 1]
        h_new = cell(emb[:, t, :], h,
                     params["wih_b"], params["whh_b"],
                     params["bih_b"], params["bhh_b"])
        h = m * h_new + (1.0 - m) * h
        out_b = out_b.at[:, t, :].set(m * h)

    cap = (out_f + out_b) / 2.0
    norm = jnp.sqrt(jnp.sum(cap * cap, axis=-1, keepdims=True)) + 1e-8
    return cap / norm, lengths


# -----------------------------------------------------------------------------
if __name__ == "__main__":
    vocab_size = 50
    word_dim = 128     # GRU input size D  (lane-aligned)
    embed_size = 128   # GRU hidden size H (lane-aligned)
    B, T = 32, 9       # odd T exercises the fused fwd/bwd midpoint

    key = jax.random.PRNGKey(0)
    k_param, k_ids, k_len = jax.random.split(key, 3)
    params = init_params(k_param, vocab_size, word_dim, embed_size)

    ids = jax.random.randint(k_ids, (B, T), 0, vocab_size, dtype=jnp.int32)
    lengths = jax.random.randint(k_len, (B,), 1, T + 1, dtype=jnp.int32)
    lengths = jnp.sort(lengths)[::-1]   # descending (pack_padded contract)

    ref_emb, _ = reference_forward(ids, lengths, params)

    # f32 matmul path: must match the pure-JAX reference tightly.
    cap32, cap_len = encoder_text_forward(ids, lengths, params,
                                          compute_dtype=jnp.float32)
    cap32 = jax.block_until_ready(cap32)
    assert cap32.shape == (B, T, embed_size)
    assert jnp.allclose(cap32, ref_emb, atol=1e-4), "f32 path mismatch vs reference"

    # bf16 MXU path (default): looser tolerance for reduced-precision matmuls.
    cap16, _ = encoder_text_forward(ids, lengths, params,
                                    compute_dtype=jnp.bfloat16)
    cap16 = jax.block_until_ready(cap16)
    assert jnp.allclose(cap16, ref_emb, atol=2e-2), "bf16 path mismatch vs reference"

    print("KERNEL_OK")
</pallas_src>

<mosaic_0001>
module attributes {stable_mosaic.version = 11 : i64} {
  func.func @_encoder_text_kernel(%arg0: i32, %arg1: memref<9x16x128xf32, #tpu.memory_space<vmem>>, %arg2: memref<16x1xi32, #tpu.memory_space<vmem>>, %arg3: memref<128x768xf32, #tpu.memory_space<vmem>>, %arg4: memref<1x768xf32, #tpu.memory_space<vmem>>, %arg5: memref<128x384xf32, #tpu.memory_space<vmem>>, %arg6: memref<128x384xf32, #tpu.memory_space<vmem>>, %arg7: memref<1x128xf32, #tpu.memory_space<vmem>>, %arg8: memref<1x128xf32, #tpu.memory_space<vmem>>, %arg9: memref<16x9x128xf32, #tpu.memory_space<vmem>>, %arg10: memref<144x768xf32, #tpu.memory_space<vmem>>, %arg11: memref<9x16x128xf32, #tpu.memory_space<vmem>>) attributes {dimension_semantics = [#tpu.dimension_semantics<parallel>], iteration_bounds = array<i64: 2>, scalar_prefetch = 0 : i64, scratch_operands = 2 : i64, tpu.core_type = #tpu.core_type<tc>, window_params = [{transform_indices = @transform_0, window_bounds = array<i64: 9, 16, 128>}, {transform_indices = @transform_1, window_bounds = array<i64: 16, 1>}, {pipeline_mode = #tpu.pipeline_mode<synchronous>, transform_indices = @transform_2, window_bounds = array<i64: 128, 768>}, {pipeline_mode = #tpu.pipeline_mode<synchronous>, transform_indices = @transform_3, window_bounds = array<i64: 1, 768>}, {pipeline_mode = #tpu.pipeline_mode<synchronous>, transform_indices = @transform_4, window_bounds = array<i64: 128, 384>}, {pipeline_mode = #tpu.pipeline_mode<synchronous>, transform_indices = @transform_5, window_bounds = array<i64: 128, 384>}, {pipeline_mode = #tpu.pipeline_mode<synchronous>, transform_indices = @transform_6, window_bounds = array<i64: 1, 128>}, {pipeline_mode = #tpu.pipeline_mode<synchronous>, transform_indices = @transform_7, window_bounds = array<i64: 1, 128>}, {transform_indices = @transform_8, window_bounds = array<i64: 16, 9, 128>}]} {
    %c0 = arith.constant 0 : index
    %c0_0 = arith.constant 0 : index
    %c0_1 = arith.constant 0 : index
    %0 = vector.load %arg1[%c0, %c0_0, %c0_1] : memref<9x16x128xf32, #tpu.memory_space<vmem>>, vector<9x16x128xf32>
    %1 = vector.shape_cast %0 : vector<9x16x128xf32> to vector<144x128xf32>
    %c0_2 = arith.constant 0 : index
    %c0_3 = arith.constant 0 : index
    %2 = vector.load %arg3[%c0_2, %c0_3] : memref<128x768xf32, #tpu.memory_space<vmem>>, vector<128x768xf32>
    %cst = arith.constant dense<0.000000e+00> : vector<144x768xf32>
    %3 = tpu.matmul %1, %2, %cst {dimension_numbers = #tpu.dot_dimension_numbers<[1], [0], [0], [1], [0, 0, 1, 1], [], []>} : vector<144x128xf32>, vector<128x768xf32>, vector<144x768xf32> -> vector<144x768xf32>
    %c0_4 = arith.constant 0 : index
    %c0_5 = arith.constant 0 : index
    %4 = vector.load %arg4[%c0_4, %c0_5] : memref<1x768xf32, #tpu.memory_space<vmem>>, vector<1x768xf32>
    %5 = vector.broadcast %4 : vector<1x768xf32> to vector<144x768xf32>
    %6 = arith.addf %3, %5 : vector<144x768xf32>
    %c0_6 = arith.constant 0 : index
    %c0_7 = arith.constant 0 : index
    %7 = vector.load %arg10[%c0_6, %c0_7] : memref<144x768xf32, #tpu.memory_space<vmem>>, vector<144x768xf32>
    tpu.vector_store %arg10[%c0_6, %c0_7], %6 {strides = array<i32>} : memref<144x768xf32, #tpu.memory_space<vmem>>, vector<144x768xf32>,
    %c0_8 = arith.constant 0 : index
    %c0_9 = arith.constant 0 : index
    %8 = vector.load %arg5[%c0_8, %c0_9] : memref<128x384xf32, #tpu.memory_space<vmem>>, vector<128x384xf32>
    %c0_10 = arith.constant 0 : index
    %c0_11 = arith.constant 0 : index
    %9 = vector.load %arg6[%c0_10, %c0_11] : memref<128x384xf32, #tpu.memory_space<vmem>>, vector<128x384xf32>
    %c0_12 = arith.constant 0 : index
    %c0_13 = arith.constant 0 : index
    %10 = vector.load %arg7[%c0_12, %c0_13] : memref<1x128xf32, #tpu.memory_space<vmem>>, vector<1x128xf32>
    %11 = vector.shape_cast %10 : vector<1x128xf32> to vector<1x128xf32>
    %12 = vector.broadcast %11 : vector<1x128xf32> to vector<16x128xf32>
    %c0_14 = arith.constant 0 : index
    %c0_15 = arith.constant 0 : index
    %13 = vector.load %arg8[%c0_14, %c0_15] : memref<1x128xf32, #tpu.memory_space<vmem>>, vector<1x128xf32>
    %14 = vector.shape_cast %13 : vector<1x128xf32> to vector<1x128xf32>
    %15 = vector.broadcast %14 : vector<1x128xf32> to vector<16x128xf32>
    %c0_16 = arith.constant 0 : index
    %c0_17 = arith.constant 0 : index
    %16 = vector.load %arg2[%c0_16, %c0_17] : memref<16x1xi32, #tpu.memory_space<vmem>>, vector<16x1xi32>
    %cst_18 = arith.constant 0.000000e+00 : f32
    %17 = vector.broadcast %cst_18 : f32 to vector<9x16x128xf32>
    %c0_19 = arith.constant 0 : index
    %c0_20 = arith.constant 0 : index
    %c0_21 = arith.constant 0 : index
    %18 = vector.load %arg11[%c0_19, %c0_20, %c0_21] : memref<9x16x128xf32, #tpu.memory_space<vmem>>, vector<9x16x128xf32>
    tpu.vector_store %arg11[%c0_19, %c0_20, %c0_21], %17 {strides = array<i32>} : memref<9x16x128xf32, #tpu.memory_space<vmem>>, vector<9x16x128xf32>,
    %cst_22 = arith.constant 0.000000e+00 : f32
    %19 = vector.broadcast %cst_22 : f32 to vector<16x128xf32>
    %c0_i32 = arith.constant 0 : i32
    %c9_i32 = arith.constant 9 : i32
    %20 = arith.addi %c0_i32, %c9_i32 : i32
    %c1_i32 = arith.constant 1 : i32
    %21:2 = scf.for %arg12 = %c0_i32 to %20 step %c1_i32 iter_args(%arg13 = %19, %arg14 = %19) -> (vector<16x128xf32>, vector<16x128xf32>)  : i32 {
      %c16_i32 = arith.constant 16 : i32
      %78 = arith.muli %arg12, %c16_i32 : i32
      %79 = tpu.assume_multiple %78, 16 : i32
      %80 = arith.index_cast %79 : i32 to index
      %c0_49 = arith.constant 0 : index
      %81 = vector.load %arg10[%80, %c0_49] : memref<144x768xf32, #tpu.memory_space<vmem>>, vector<16x384xf32>
      %cst_50 = arith.constant dense<0.000000e+00> : vector<16x384xf32>
      %82 = tpu.matmul %arg13, %8, %cst_50 {dimension_numbers = #tpu.dot_dimension_numbers<[1], [0], [0], [1], [0, 0, 1, 1], [], []>} : vector<16x128xf32>, vector<128x384xf32>, vector<16x384xf32> -> vector<16x384xf32>
      %83 = vector.extract_strided_slice %81 {offsets = [0, 0], sizes = [16, 128], strides = [1, 1]} : vector<16x384xf32> to vector<16x128xf32>
      %84 = vector.extract_strided_slice %82 {offsets = [0, 0], sizes = [16, 128], strides = [1, 1]} : vector<16x384xf32> to vector<16x128xf32>
      %85 = arith.addf %83, %84 : vector<16x128xf32>
      %86 = arith.negf %85 : vector<16x128xf32>
      %87 = math.exp %86 : vector<16x128xf32>
      %cst_51 = arith.constant 1.000000e+00 : f32
      %88 = vector.broadcast %cst_51 : f32 to vector<16x128xf32>
      %89 = arith.addf %88, %87 : vector<16x128xf32>
      %90 = arith.divf %88, %89 : vector<16x128xf32>
      %91 = vector.extract_strided_slice %81 {offsets = [0, 128], sizes = [16, 128], strides = [1, 1]} : vector<16x384xf32> to vector<16x128xf32>
      %92 = vector.extract_strided_slice %82 {offsets = [0, 128], sizes = [16, 128], strides = [1, 1]} : vector<16x384xf32> to vector<16x128xf32>
      %93 = arith.addf %91, %92 : vector<16x128xf32>
      %94 = arith.negf %93 : vector<16x128xf32>
      %95 = math.exp %94 : vector<16x128xf32>
      %cst_52 = arith.constant 1.000000e+00 : f32
      %96 = vector.broadcast %cst_52 : f32 to vector<16x128xf32>
      %97 = arith.addf %96, %95 : vector<16x128xf32>
      %98 = arith.divf %96, %97 : vector<16x128xf32>
      %99 = vector.extract_strided_slice %81 {offsets = [0, 256], sizes = [16, 128], strides = [1, 1]} : vector<16x384xf32> to vector<16x128xf32>
      %100 = vector.extract_strided_slice %82 {offsets = [0, 256], sizes = [16, 128], strides = [1, 1]} : vector<16x384xf32> to vector<16x128xf32>
      %101 = arith.addf %100, %12 : vector<16x128xf32>
      %102 = arith.mulf %90, %101 : vector<16x128xf32>
      %103 = arith.addf %99, %102 : vector<16x128xf32>
      %104 = math.tanh %103 : vector<16x128xf32>
      %cst_53 = arith.constant 1.000000e+00 : f32
      %105 = vector.broadcast %cst_53 : f32 to vector<16x128xf32>
      %106 = arith.subf %105, %98 : vector<16x128xf32>
      %107 = arith.mulf %106, %104 : vector<16x128xf32>
      %108 = arith.mulf %98, %arg13 : vector<16x128xf32>
      %109 = arith.addf %107, %108 : vector<16x128xf32>
      %110 = vector.broadcast %arg12 : i32 to vector<16x1xi32>
      %111 = arith.cmpi slt, %110, %16 : vector<16x1xi32>
      %112 = vector.shape_cast %111 : vector<16x1xi1> to vector<16x1xi1>
      %113 = vector.broadcast %112 : vector<16x1xi1> to vector<16x128xi1>
      %114 = arith.select %113, %109, %arg13 : vector<16x128xi1>, vector<16x128xf32>
      %115 = arith.index_cast %arg12 : i32 to index
      %c0_54 = arith.constant 0 : index
      %c0_55 = arith.constant 0 : index
      %116 = vector.load %arg11[%115, %c0_54, %c0_55] : memref<9x16x128xf32, #tpu.memory_space<vmem>>, vector<1x16x128xf32>
      %117 = vector.shape_cast %116 : vector<1x16x128xf32> to vector<16x128xf32>
      %cst_56 = arith.constant 0.000000e+00 : f32
      %118 = vector.shape_cast %111 : vector<16x1xi1> to vector<16x1xi1>
      %119 = vector.broadcast %118 : vector<16x1xi1> to vector<16x128xi1>
      %120 = vector.broadcast %cst_56 : f32 to vector<16x128xf32>
      %121 = arith.select %119, %114, %120 : vector<16x128xi1>, vector<16x128xf32>
      %122 = arith.addf %117, %121 : vector<16x128xf32>
      %123 = arith.index_cast %arg12 : i32 to index
      %c0_57 = arith.constant 0 : index
      %c0_58 = arith.constant 0 : index
      %124 = vector.load %arg11[%123, %c0_57, %c0_58] : memref<9x16x128xf32, #tpu.memory_space<vmem>>, vector<1x16x128xf32>
      %125 = vector.shape_cast %124 : vector<1x16x128xf32> to vector<16x128xf32>
      %126 = vector.shape_cast %122 : vector<16x128xf32> to vector<1x16x128xf32>
      tpu.vector_store %arg11[%123, %c0_57, %c0_58], %126 {strides = array<i32>} : memref<9x16x128xf32, #tpu.memory_space<vmem>>, vector<1x16x128xf32>,
      %c8_i32 = arith.constant 8 : i32
      %127 = arith.subi %c8_i32, %arg12 : i32
      %c16_i32_59 = arith.constant 16 : i32
      %128 = arith.muli %127, %c16_i32_59 : i32
      %129 = tpu.assume_multiple %128, 16 : i32
      %130 = arith.index_cast %129 : i32 to index
      %c384 = arith.constant 384 : index
      %131 = vector.load %arg10[%130, %c384] : memref<144x768xf32, #tpu.memory_space<vmem>>, vector<16x384xf32>
      %cst_60 = arith.constant dense<0.000000e+00> : vector<16x384xf32>
      %132 = tpu.matmul %arg14, %9, %cst_60 {dimension_numbers = #tpu.dot_dimension_numbers<[1], [0], [0], [1], [0, 0, 1, 1], [], []>} : vector<16x128xf32>, vector<128x384xf32>, vector<16x384xf32> -> vector<16x384xf32>
      %133 = vector.extract_strided_slice %131 {offsets = [0, 0], sizes = [16, 128], strides = [1, 1]} : vector<16x384xf32> to vector<16x128xf32>
      %134 = vector.extract_strided_slice %132 {offsets = [0, 0], sizes = [16, 128], strides = [1, 1]} : vector<16x384xf32> to vector<16x128xf32>
      %135 = arith.addf %133, %134 : vector<16x128xf32>
      %136 = arith.negf %135 : vector<16x128xf32>
      %137 = math.exp %136 : vector<16x128xf32>
      %cst_61 = arith.constant 1.000000e+00 : f32
      %138 = vector.broadcast %cst_61 : f32 to vector<16x128xf32>
      %139 = arith.addf %138, %137 : vector<16x128xf32>
      %140 = arith.divf %138, %139 : vector<16x128xf32>
      %141 = vector.extract_strided_slice %131 {offsets = [0, 128], sizes = [16, 128], strides = [1, 1]} : vector<16x384xf32> to vector<16x128xf32>
      %142 = vector.extract_strided_slice %132 {offsets = [0, 128], sizes = [16, 128], strides = [1, 1]} : vector<16x384xf32> to vector<16x128xf32>
      %143 = arith.addf %141, %142 : vector<16x128xf32>
      %144 = arith.negf %143 : vector<16x128xf32>
      %145 = math.exp %144 : vector<16x128xf32>
      %cst_62 = arith.constant 1.000000e+00 : f32
      %146 = vector.broadcast %cst_62 : f32 to vector<16x128xf32>
      %147 = arith.addf %146, %145 : vector<16x128xf32>
      %148 = arith.divf %146, %147 : vector<16x128xf32>
      %149 = vector.extract_strided_slice %131 {offsets = [0, 256], sizes = [16, 128], strides = [1, 1]} : vector<16x384xf32> to vector<16x128xf32>
      %150 = vector.extract_strided_slice %132 {offsets = [0, 256], sizes = [16, 128], strides = [1, 1]} : vector<16x384xf32> to vector<16x128xf32>
      %151 = arith.addf %150, %15 : vector<16x128xf32>
      %152 = arith.mulf %140, %151 : vector<16x128xf32>
      %153 = arith.addf %149, %152 : vector<16x128xf32>
      %154 = math.tanh %153 : vector<16x128xf32>
      %cst_63 = arith.constant 1.000000e+00 : f32
      %155 = vector.broadcast %cst_63 : f32 to vector<16x128xf32>
      %156 = arith.subf %155, %148 : vector<16x128xf32>
      %157 = arith.mulf %156, %154 : vector<16x128xf32>
      %158 = arith.mulf %148, %arg14 : vector<16x128xf32>
      %159 = arith.addf %157, %158 : vector<16x128xf32>
      %160 = vector.broadcast %127 : i32 to vector<16x1xi32>
      %161 = arith.cmpi slt, %160, %16 : vector<16x1xi32>
      %162 = vector.shape_cast %161 : vector<16x1xi1> to vector<16x1xi1>
      %163 = vector.broadcast %162 : vector<16x1xi1> to vector<16x128xi1>
      %164 = arith.select %163, %159, %arg14 : vector<16x128xi1>, vector<16x128xf32>
      %165 = arith.index_cast %127 : i32 to index
      %c0_64 = arith.constant 0 : index
      %c0_65 = arith.constant 0 : index
      %166 = vector.load %arg11[%165, %c0_64, %c0_65] : memref<9x16x128xf32, #tpu.memory_space<vmem>>, vector<1x16x128xf32>
      %167 = vector.shape_cast %166 : vector<1x16x128xf32> to vector<16x128xf32>
      %cst_66 = arith.constant 0.000000e+00 : f32
      %168 = vector.shape_cast %161 : vector<16x1xi1> to vector<16x1xi1>
      %169 = vector.broadcast %168 : vector<16x1xi1> to vector<16x128xi1>
      %170 = vector.broadcast %cst_66 : f32 to vector<16x128xf32>
      %171 = arith.select %169, %164, %170 : vector<16x128xi1>, vector<16x128xf32>
      %172 = arith.addf %167, %171 : vector<16x128xf32>
      %173 = arith.index_cast %127 : i32 to index
      %c0_67 = arith.constant 0 : index
      %c0_68 = arith.constant 0 : index
      %174 = vector.load %arg11[%173, %c0_67, %c0_68] : memref<9x16x128xf32, #tpu.memory_space<vmem>>, vector<1x16x128xf32>
      %175 = vector.shape_cast %174 : vector<1x16x128xf32> to vector<16x128xf32>
      %176 = vector.shape_cast %172 : vector<16x128xf32> to vector<1x16x128xf32>
      tpu.vector_store %arg11[%173, %c0_67, %c0_68], %176 {strides = array<i32>} : memref<9x16x128xf32, #tpu.memory_space<vmem>>, vector<1x16x128xf32>,
      scf.yield %114, %164 : vector<16x128xf32>, vector<16x128xf32>
    }
    %c9_i32_23 = arith.constant 9 : i32
    %c0_24 = arith.constant 0 : index
    %c0_25 = arith.constant 0 : index
    %c0_26 = arith.constant 0 : index
    %22 = vector.load %arg11[%c0_24, %c0_25, %c0_26] : memref<9x16x128xf32, #tpu.memory_space<vmem>>, vector<9x16x128xf32>
    %cst_27 = arith.constant 5.000000e-01 : f32
    %23 = vector.broadcast %cst_27 : f32 to vector<9x16x128xf32>
    %24 = arith.mulf %22, %23 : vector<9x16x128xf32>
    %25 = arith.mulf %24, %24 : vector<9x16x128xf32>
    %cst_28 = arith.constant dense<0.000000e+00> : vector<9x16xf32>
    %26 = vector.multi_reduction <add>, %25, %cst_28 [2] : vector<9x16x128xf32> to vector<9x16xf32>
    %27 = vector.shape_cast %26 : vector<9x16xf32> to vector<9x16x1xf32>
    %cst_29 = arith.constant 1.000000e-16 : f32
    %28 = vector.broadcast %cst_29 : f32 to vector<9x16x1xf32>
    %29 = arith.addf %27, %28 : vector<9x16x1xf32>
    %30 = math.rsqrt %29 : vector<9x16x1xf32>
    %31 = vector.broadcast %30 : vector<9x16x1xf32> to vector<9x16x128xf32>
    %32 = arith.mulf %24, %31 : vector<9x16x128xf32>
    %33 = vector.extract_strided_slice %32 {offsets = [0, 0, 0], sizes = [1, 16, 128], strides = [1, 1, 1]} : vector<9x16x128xf32> to vector<1x16x128xf32>
    %34 = vector.shape_cast %33 : vector<1x16x128xf32> to vector<16x128xf32>
    %c0_30 = arith.constant 0 : index
    %c0_31 = arith.constant 0 : index
    %c0_32 = arith.constant 0 : index
    %35 = vector.load %arg9[%c0_30, %c0_31, %c0_32] : memref<16x9x128xf32, #tpu.memory_space<vmem>>, vector<16x1x128xf32>
    %36 = vector.shape_cast %35 : vector<16x1x128xf32> to vector<16x128xf32>
    %37 = vector.shape_cast %34 : vector<16x128xf32> to vector<16x1x128xf32>
    tpu.vector_store %arg9[%c0_30, %c0_31, %c0_32], %37 {strides = array<i32>} : memref<16x9x128xf32, #tpu.memory_space<vmem>>, vector<16x1x128xf32>,
    %38 = vector.extract_strided_slice %32 {offsets = [1, 0, 0], sizes = [1, 16, 128], strides = [1, 1, 1]} : vector<9x16x128xf32> to vector<1x16x128xf32>
    %39 = vector.shape_cast %38 : vector<1x16x128xf32> to vector<16x128xf32>
    %c0_33 = arith.constant 0 : index
    %c1 = arith.constant 1 : index
    %c0_34 = arith.constant 0 : index
    %40 = vector.load %arg9[%c0_33, %c1, %c0_34] : memref<16x9x128xf32, #tpu.memory_space<vmem>>, vector<16x1x128xf32>
    %41 = vector.shape_cast %40 : vector<16x1x128xf32> to vector<16x128xf32>
    %42 = vector.shape_cast %39 : vector<16x128xf32> to vector<16x1x128xf32>
    tpu.vector_store %arg9[%c0_33, %c1, %c0_34], %42 {strides = array<i32>} : memref<16x9x128xf32, #tpu.memory_space<vmem>>, vector<16x1x128xf32>,
    %43 = vector.extract_strided_slice %32 {offsets = [2, 0, 0], sizes = [1, 16, 128], strides = [1, 1, 1]} : vector<9x16x128xf32> to vector<1x16x128xf32>
    %44 = vector.shape_cast %43 : vector<1x16x128xf32> to vector<16x128xf32>
    %c0_35 = arith.constant 0 : index
    %c2 = arith.constant 2 : index
    %c0_36 = arith.constant 0 : index
    %45 = vector.load %arg9[%c0_35, %c2, %c0_36] : memref<16x9x128xf32, #tpu.memory_space<vmem>>, vector<16x1x128xf32>
    %46 = vector.shape_cast %45 : vector<16x1x128xf32> to vector<16x128xf32>
    %47 = vector.shape_cast %44 : vector<16x128xf32> to vector<16x1x128xf32>
    tpu.vector_store %arg9[%c0_35, %c2, %c0_36], %47 {strides = array<i32>} : memref<16x9x128xf32, #tpu.memory_space<vmem>>, vector<16x1x128xf32>,
    %48 = vector.extract_strided_slice %32 {offsets = [3, 0, 0], sizes = [1, 16, 128], strides = [1, 1, 1]} : vector<9x16x128xf32> to vector<1x16x128xf32>
    %49 = vector.shape_cast %48 : vector<1x16x128xf32> to vector<16x128xf32>
    %c0_37 = arith.constant 0 : index
    %c3 = arith.constant 3 : index
    %c0_38 = arith.constant 0 : index
    %50 = vector.load %arg9[%c0_37, %c3, %c0_38] : memref<16x9x128xf32, #tpu.memory_space<vmem>>, vector<16x1x128xf32>
    %51 = vector.shape_cast %50 : vector<16x1x128xf32> to vector<16x128xf32>
    %52 = vector.shape_cast %49 : vector<16x128xf32> to vector<16x1x128xf32>
    tpu.vector_store %arg9[%c0_37, %c3, %c0_38], %52 {strides = array<i32>} : memref<16x9x128xf32, #tpu.memory_space<vmem>>, vector<16x1x128xf32>,
    %53 = vector.extract_strided_slice %32 {offsets = [4, 0, 0], sizes = [1, 16, 128], strides = [1, 1, 1]} : vector<9x16x128xf32> to vector<1x16x128xf32>
    %54 = vector.shape_cast %53 : vector<1x16x128xf32> to vector<16x128xf32>
    %c0_39 = arith.constant 0 : index
    %c4 = arith.constant 4 : index
    %c0_40 = arith.constant 0 : index
    %55 = vector.load %arg9[%c0_39, %c4, %c0_40] : memref<16x9x128xf32, #tpu.memory_space<vmem>>, vector<16x1x128xf32>
    %56 = vector.shape_cast %55 : vector<16x1x128xf32> to vector<16x128xf32>
    %57 = vector.shape_cast %54 : vector<16x128xf32> to vector<16x1x128xf32>
    tpu.vector_store %arg9[%c0_39, %c4, %c0_40], %57 {strides = array<i32>} : memref<16x9x128xf32, #tpu.memory_space<vmem>>, vector<16x1x128xf32>,
    %58 = vector.extract_strided_slice %32 {offsets = [5, 0, 0], sizes = [1, 16, 128], strides = [1, 1, 1]} : vector<9x16x128xf32> to vector<1x16x128xf32>
    %59 = vector.shape_cast %58 : vector<1x16x128xf32> to vector<16x128xf32>
    %c0_41 = arith.constant 0 : index
    %c5 = arith.constant 5 : index
    %c0_42 = arith.constant 0 : index
    %60 = vector.load %arg9[%c0_41, %c5, %c0_42] : memref<16x9x128xf32, #tpu.memory_space<vmem>>, vector<16x1x128xf32>
    %61 = vector.shape_cast %60 : vector<16x1x128xf32> to vector<16x128xf32>
    %62 = vector.shape_cast %59 : vector<16x128xf32> to vector<16x1x128xf32>
    tpu.vector_store %arg9[%c0_41, %c5, %c0_42], %62 {strides = array<i32>} : memref<16x9x128xf32, #tpu.memory_space<vmem>>, vector<16x1x128xf32>,
    %63 = vector.extract_strided_slice %32 {offsets = [6, 0, 0], sizes = [1, 16, 128], strides = [1, 1, 1]} : vector<9x16x128xf32> to vector<1x16x128xf32>
    %64 = vector.shape_cast %63 : vector<1x16x128xf32> to vector<16x128xf32>
    %c0_43 = arith.constant 0 : index
    %c6 = arith.constant 6 : index
    %c0_44 = arith.constant 0 : index
    %65 = vector.load %arg9[%c0_43, %c6, %c0_44] : memref<16x9x128xf32, #tpu.memory_space<vmem>>, vector<16x1x128xf32>
    %66 = vector.shape_cast %65 : vector<16x1x128xf32> to vector<16x128xf32>
    %67 = vector.shape_cast %64 : vector<16x128xf32> to vector<16x1x128xf32>
    tpu.vector_store %arg9[%c0_43, %c6, %c0_44], %67 {strides = array<i32>} : memref<16x9x128xf32, #tpu.memory_space<vmem>>, vector<16x1x128xf32>,
    %68 = vector.extract_strided_slice %32 {offsets = [7, 0, 0], sizes = [1, 16, 128], strides = [1, 1, 1]} : vector<9x16x128xf32> to vector<1x16x128xf32>
    %69 = vector.shape_cast %68 : vector<1x16x128xf32> to vector<16x128xf32>
    %c0_45 = arith.constant 0 : index
    %c7 = arith.constant 7 : index
    %c0_46 = arith.constant 0 : index
    %70 = vector.load %arg9[%c0_45, %c7, %c0_46] : memref<16x9x128xf32, #tpu.memory_space<vmem>>, vector<16x1x128xf32>
    %71 = vector.shape_cast %70 : vector<16x1x128xf32> to vector<16x128xf32>
    %72 = vector.shape_cast %69 : vector<16x128xf32> to vector<16x1x128xf32>
    tpu.vector_store %arg9[%c0_45, %c7, %c0_46], %72 {strides = array<i32>} : memref<16x9x128xf32, #tpu.memory_space<vmem>>, vector<16x1x128xf32>,
    %73 = vector.extract_strided_slice %32 {offsets = [8, 0, 0], sizes = [1, 16, 128], strides = [1, 1, 1]} : vector<9x16x128xf32> to vector<1x16x128xf32>
    %74 = vector.shape_cast %73 : vector<1x16x128xf32> to vector<16x128xf32>
    %c0_47 = arith.constant 0 : index
    %c8 = arith.constant 8 : index
    %c0_48 = arith.constant 0 : index
    %75 = vector.load %arg9[%c0_47, %c8, %c0_48] : memref<16x9x128xf32, #tpu.memory_space<vmem>>, vector<16x1x128xf32>
    %76 = vector.shape_cast %75 : vector<16x1x128xf32> to vector<16x128xf32>
    %77 = vector.shape_cast %74 : vector<16x128xf32> to vector<16x1x128xf32>
    tpu.vector_store %arg9[%c0_47, %c8, %c0_48], %77 {strides = array<i32>} : memref<16x9x128xf32, #tpu.memory_space<vmem>>, vector<16x1x128xf32>,
    return
  }
  func.func @transform_0(%arg0: i32) -> (i32, i32, i32) {
    %c0_i32 = arith.constant 0 : i32
    %c0_i32_0 = arith.constant 0 : i32
    %c0_i32_1 = arith.constant 0 : i32
    return %c0_i32, %arg0, %c0_i32_0 : i32, i32, i32
  }
  func.func @transform_1(%arg0: i32) -> (i32, i32) {
    %c0_i32 = arith.constant 0 : i32
    %c0_i32_0 = arith.constant 0 : i32
    return %arg0, %c0_i32 : i32, i32
  }
  func.func @transform_2(%arg0: i32) -> (i32, i32) {
    %c0_i32 = arith.constant 0 : i32
    %c0_i32_0 = arith.constant 0 : i32
    %c0_i32_1 = arith.constant 0 : i32
    return %c0_i32, %c0_i32_0 : i32, i32
  }
  func.func @transform_3(%arg0: i32) -> (i32, i32) {
    %c0_i32 = arith.constant 0 : i32
    %c0_i32_0 = arith.constant 0 : i32
    %c0_i32_1 = arith.constant 0 : i32
    return %c0_i32, %c0_i32_0 : i32, i32
  }
  func.func @transform_4(%arg0: i32) -> (i32, i32) {
    %c0_i32 = arith.constant 0 : i32
    %c0_i32_0 = arith.constant 0 : i32
    %c0_i32_1 = arith.constant 0 : i32
    return %c0_i32, %c0_i32_0 : i32, i32
  }
  func.func @transform_5(%arg0: i32) -> (i32, i32) {
    %c0_i32 = arith.constant 0 : i32
    %c0_i32_0 = arith.constant 0 : i32
    %c0_i32_1 = arith.constant 0 : i32
    return %c0_i32, %c0_i32_0 : i32, i32
  }
  func.func @transform_6(%arg0: i32) -> (i32, i32) {
    %c0_i32 = arith.constant 0 : i32
    %c0_i32_0 = arith.constant 0 : i32
    %c0_i32_1 = arith.constant 0 : i32
    return %c0_i32, %c0_i32_0 : i32, i32
  }
  func.func @transform_7(%arg0: i32) -> (i32, i32) {
    %c0_i32 = arith.constant 0 : i32
    %c0_i32_0 = arith.constant 0 : i32
    %c0_i32_1 = arith.constant 0 : i32
    return %c0_i32, %c0_i32_0 : i32, i32
  }
  func.func @transform_8(%arg0: i32) -> (i32, i32, i32) {
    %c0_i32 = arith.constant 0 : i32
    %c0_i32_0 = arith.constant 0 : i32
    %c0_i32_1 = arith.constant 0 : i32
    return %arg0, %c0_i32, %c0_i32_0 : i32, i32, i32
  }
}

</mosaic_0001>

<bundles_post_ra>
// kernel: tpu_custom_call.1
= control target key start
LH: loop header
LB: loop body
LE: loop exit
PB: predicated region body
PF: predicated region fallthrough
CT: control target
= control target key end

     0   :  { %s5921_s0 = inlined_call_operand.hbm [shape: f32[9,32,128], index: 0, kind: input, shape index: {}]   ;;  %s5922_s1 = inlined_call_operand.hbm [shape: s32[32,1], index: 1, kind: input, shape index: {}]   ;;  %s5923_s2 = inlined_call_operand.hbm [shape: f32[128,768], index: 2, kind: input, shape index: {}]   ;;  %s5924_s3 = inlined_call_operand.hbm [shape: f32[1,768], index: 3, kind: input, shape index: {}]   ;;  %s5925_s4 = inlined_call_operand.hbm [shape: f32[128,384], index: 4, kind: input, shape index: {}]   ;;  %s5926_s5 = inlined_call_operand.hbm [shape: f32[128,384], index: 5, kind: input, shape index: {}]   ;;  %s5927_s6 = inlined_call_operand.hbm [shape: f32[1,128], index: 6, kind: input, shape index: {}]   ;;  %s5928_s7 = inlined_call_operand.hbm [shape: f32[1,128], index: 7, kind: input, shape index: {}]   ;;  %s5929_s8 = inlined_call_operand.hbm [shape: f32[32,9,128], index: 8, kind: output, shape index: {}]  }
   0x1   :  { %5948 = sst [smem:[#allocation104_spill]] %s5924_s3 }
   0x2   :  { %5949 = sst [smem:[#allocation105_spill]] %s5929_s8 }
   0x3   :  { %13 = vsyncpa [#allocation5], 0 }
   0x4   :  { %15 = vsyncpa [#allocation5 + $0x1], 0 }
   0x5   :  { %16 = vsyncpa [#allocation8], 0 }
   0x6   :  { %18 = vsyncpa [#allocation8 + $0x1], 0 }
   0x7   :  { %19 = vsyncpa [#allocation11], 0 }
   0x8   :  { %20 = vsyncpa [#allocation14], 0 }
   0x9   :  { %21 = vsyncpa [#allocation17], 0 }
   0xa   :  { %22 = vsyncpa [#allocation6], 0 }
   0xb   :  { %24 = vsyncpa [#allocation6 + $0x1], 0  ;;  %s4489_s27 = smov 0   ;;  %s4491_s28 = smov 0  }
   0xc   :  { %s4493_s29 = smov 0   ;;  %s4495_s30 = smov 0  }
   0xd LB: > { %5950 = sst [smem:[#allocation29_spill]] %s4384_s27  ;;  %s4510_s9 = sadd.s32 4294967295, %s4396_s30   ;;  %s4396_s30 = sphi %s4495_s30, %s6123_s30   ;;  %s4392_s29 = sphi %s4493_s29, %s6127_s29   ;;  %s4388_s28 = sphi %s4491_s28, %s6126_s28   ;;  %s4384_s27 = sphi %s4489_s27, %s6125_s27  }
   0xe   : > { %s3376_s10 = sadd.s32 4294967294, %s4396_s30   ;;  %s4514_s11 = sadd.s32 1, %s4396_s30  }
   0xf   : > { %5951 = sst [smem:[#allocation30_spill]] %s4514_s11  ;;  %s37_s12 = sadd.s32 1, %s4392_s29 }
  0x10   : > { %s34_s13 = ssub.s32 %s4396_s30, %s4514_s11  ;;  %p44_p0 = scmp.ne.s32.totalorder %s4392_s29, %s4388_s28 }
  0x11   : > { %p35_p1 = scmp.eq.s32.totalorder %s34_s13, 0  ;;  %p45_p2 = scmp.eq.s32.totalorder %s4396_s30, 0 }
  0x12   : > { %p50_p3 = scmp.ne.s32.totalorder %s4388_s28, %s4384_s27  ;;  %p5930_p4 = scmp.eq.s32.totalorder %s4510_s9, 0 }
  0x13   : > { %s4526_s14 = scalar_select %p35_p1, %s4392_s29, %s37_s12  }
  0x14   : > { %p4528_p5 = por %p45_p2, %p44_p0  ;;  %p4534_p6 = por %p5930_p4, %p50_p3 }
  0x15   : > { %5952 = sst [smem:[#allocation31_spill]] %s4526_s14  ;;  %p226_p7 = scmp.eq.s32.totalorder %s4510_s9, 1 }
  0x16   : > { %s5953_s15 = scalar_select %p4528_p5, 1, 0 }
  0x17   : > { %s5954_s16 = scalar_select %p4534_p6, 1, 0 }
  0x18   : > { %p232_p8 = scmp.eq.s32.totalorder %s3376_s10, 1  ;;  %p3377_p9 = scmp.ge.s32.totalorder %s4396_s30, 1 }
  0x19   : > { %p239_p10 = scmp.lt.s32.totalorder %s4396_s30, 3  ;;  %p4541_p11 = por %p226_p7, %p44_p0 }
  0x1a   : > { %p4545_p12 = por %p232_p8, %p50_p3  ;;  %s4418_s20 = smov [#allocation10]  }
  0x1b   : > { %s5955_s17 = scalar_select %p4541_p11, 1, 0 }
  0x1c   : > { %s5956_s18 = scalar_select %p4545_p12, 1, 0 }
  0x1d   : > { %p4549_p13 = pnand %p3377_p9, %p239_p10  ;;  %s265_s21 = sshll.u32 %s4418_s20, 4  ;;  %s266_s21 = int_to_ptr.vmem [resolvable:$true] %s265_s21 }
  0x1e   : > { %5957 = sst [smem:[#allocation32_spill]] %s5956_s18  ;;  %s4419_s23 = smov [#allocation13]  }
  0x1f   : > { %s5958_s19 = scalar_select %p4549_p13, 1, 0 }
  0x20   : > { %p3884_p1 = pneg %p4549_p13  ;;  %s288_s24 = sshll.u32 %s4419_s23, 4  ;;  %s4561_s24 = int_to_ptr.vmem [resolvable:$true] %s288_s24 }
  0x21   : > { %s5960_s3 = sld [smem:[#allocation104_spill]] }
  0x22   : > { %p4557_p2 = pnand %p3884_p1, %p5930_p4 }
  0x24   : > { %p4571_p3 = pneg %p4557_p2 }
  0x27   : > { %s4094_s10 = scalar_lea.hbm %s5960_s3, 96 }
  0x28   : > { %p4095_p0 = scmp.ne.s32.totalorder %s5960_s3, %s4094_s10  ;;  %p4101_p9 = scmp.lt.u32.totalorder %s4094_s10, %s5960_s3 }
  0x2a   : > { %p4097_p7 = pnand %p4571_p3, %p4095_p0 }
  0x2c   : > { %p4098_p8 = pneg %p4097_p7 }
  0x2e   : > { %p4103_p10 = pnand %p4101_p9, %p4098_p8 }
  0x30   : > { %4106 = shalt.err (!%p4103_p10)
}
  0x31   : > { %s4107_s25 = scalar_lea.vmem %s266_s21, 96  ;;  %p4115_p11 = scmp.lt.s32.totalorder %s266_s21, %s266_s21 }
  0x32   : > { %p4108_p1 = scmp.ne.s32.totalorder %s266_s21, %s4107_s25  ;;  %p4116_p6 = scmp.lt.s32.totalorder %s4107_s25, %s4107_s25 }
  0x34   : > { %p4110_p4 = pnand %p4108_p1, %p4571_p3  ;;  %p4117_p13 = por %p4116_p6, %p4115_p11 }
  0x36   : > { %p4111_p12 = pneg %p4110_p4 }
  0x38   : > { %p4118_p5 = pnand %p4117_p13, %p4111_p12 }
  0x3a   : > { %4121 = shalt.err (!%p4118_p5)
}
  0x3b   : > { %3890 = dma.hbm_to_vmem [thread:$0]  (!%p4557_p2), %s5960_s3, 96, %s266_s21, [#allocation11]  }
  0x3c   : > { %s4122_s13 = scalar_lea.hbm %s5926_s5, 6144 }
  0x3d   : > { %p4123_p4 = scmp.ne.s32.totalorder %s5926_s5, %s4122_s13  ;;  %p4129_p5 = scmp.lt.u32.totalorder %s4122_s13, %s5926_s5 }
  0x3f   : > { %p4125_p0 = pnand %p4123_p4, %p4571_p3 }
  0x41   : > { %p4126_p6 = pneg %p4125_p0 }
  0x43   : > { %p4131_p11 = pnand %p4129_p5, %p4126_p6 }
  0x45   : > { %4134 = shalt.err (!%p4131_p11)
}
  0x46   : > { %s4135_s21 = scalar_lea.vmem %s4561_s24, 6144  ;;  %p4143_p8 = scmp.lt.s32.totalorder %s4561_s24, %s4561_s24 }
  0x47   : > { %p4136_p12 = scmp.ne.s32.totalorder %s4561_s24, %s4135_s21  ;;  %p4144_p9 = scmp.lt.s32.totalorder %s4135_s21, %s4135_s21 }
  0x49   : > { %p4138_p13 = pnand %p4136_p12, %p4571_p3  ;;  %p4145_p10 = por %p4144_p9, %p4143_p8 }
  0x4b   : > { %p4139_p7 = pneg %p4138_p13 }
  0x4d   : > { %p4146_p1 = pnand %p4145_p10, %p4139_p7 }
  0x4f   : > { %4149 = shalt.err (!%p4146_p1)
}
  0x50   : > { %s5940_s11 = smov 384   ;;  %s5941_s18 = smov 24  }
  0x51   : > { %3896 = dma.hbm_to_vmem [thread:$0]  (!%p4557_p2), %s5926_s5, 6144, %s4561_s24, [#allocation14], %s5940_s11, %s5940_s11, %s5941_s18  }
  0x52   : > { %s4422_s14 = smov [#allocation9]   ;;  %s4150_s25 = scalar_lea.hbm %s5923_s2, 12288 }
  0x53   : > { %s251_s10 = sshll.u32 %s4422_s14, 4  ;;  %p4151_p4 = scmp.ne.s32.totalorder %s5923_s2, %s4150_s25  ;;  %s252_s10 = int_to_ptr.vmem [resolvable:$true] %s251_s10 }
  0x54   : > { %p4157_p5 = scmp.lt.u32.totalorder %s4150_s25, %s5923_s2 }
  0x55   : > { %p4153_p0 = pnand %p4151_p4, %p4571_p3 }
  0x57   : > { %p4154_p6 = pneg %p4153_p0 }
  0x59   : > { %p4159_p11 = pnand %p4157_p5, %p4154_p6 }
  0x5b   : > { %4162 = shalt.err (!%p4159_p11)
}
  0x5c   : > { %s4163_s24 = scalar_lea.vmem %s252_s10, 12288  ;;  %p4171_p8 = scmp.lt.s32.totalorder %s252_s10, %s252_s10 }
  0x5d   : > { %p4164_p12 = scmp.ne.s32.totalorder %s252_s10, %s4163_s24  ;;  %p4172_p9 = scmp.lt.s32.totalorder %s4163_s24, %s4163_s24 }
  0x5f   : > { %p4166_p13 = pnand %p4164_p12, %p4571_p3  ;;  %p4173_p10 = por %p4172_p9, %p4171_p8 }
  0x61   : > { %p4167_p7 = pneg %p4166_p13 }
  0x63   : > { %p4174_p1 = pnand %p4173_p10, %p4167_p7 }
  0x65   : > { %4177 = shalt.err (!%p4174_p1)
}
  0x66   : > { %s4423_s3 = smov 768   ;;  %s4424_s26 = smov 48  }
  0x67   : > { %3887 = dma.hbm_to_vmem [thread:$0]  (!%p4557_p2), %s5923_s2, 12288, %s252_s10, [#allocation8], %s4423_s3, %s4423_s3, %s4424_s26  }
  0x68   : > { %s4425_s12 = smov [#allocation12]   ;;  %s4426_s13 = smov [#allocation15]  }
  0x69   : > { %s275_s14 = sshll.u32 %s4425_s12, 4  ;;  %s302_s23 = sshll.u32 %s4426_s13, 4  ;;  %s276_s14 = int_to_ptr.vmem [resolvable:$true] %s275_s14  ;;  %s4631_s23 = int_to_ptr.vmem [resolvable:$true] %s302_s23 }
  0x6a   : > { %s4178_s24 = scalar_lea.hbm %s5925_s4, 6144 }
  0x6b   : > { %p4179_p4 = scmp.ne.s32.totalorder %s5925_s4, %s4178_s24  ;;  %p4185_p5 = scmp.lt.u32.totalorder %s4178_s24, %s5925_s4 }
  0x6d   : > { %p4181_p0 = pnand %p4179_p4, %p4571_p3 }
  0x6f   : > { %p4182_p6 = pneg %p4181_p0 }
  0x71   : > { %p4187_p11 = pnand %p4185_p5, %p4182_p6 }
  0x73   : > { %4190 = shalt.err (!%p4187_p11)
}
  0x74   : > { %s4191_s3 = scalar_lea.vmem %s276_s14, 6144  ;;  %p4199_p8 = scmp.lt.s32.totalorder %s276_s14, %s276_s14 }
  0x75   : > { %p4192_p12 = scmp.ne.s32.totalorder %s276_s14, %s4191_s3  ;;  %p4200_p9 = scmp.lt.s32.totalorder %s4191_s3, %s4191_s3 }
  0x77   : > { %p4194_p13 = pnand %p4192_p12, %p4571_p3  ;;  %p4201_p10 = por %p4200_p9, %p4199_p8 }
  0x79   : > { %p4195_p7 = pneg %p4194_p13 }
  0x7b   : > { %p4202_p1 = pnand %p4201_p10, %p4195_p7 }
  0x7d   : > { %4205 = shalt.err (!%p4202_p1)
}
  0x7e   : > { %s5962_s11 = smov 24   ;;  %s5963_s18 = smov 384  }
  0x7f   : > { %3893 = dma.hbm_to_vmem [thread:$0]  (!%p4557_p2), %s5925_s4, 6144, %s276_s14, [#allocation11], %s5963_s18, %s5963_s18, %s5962_s11  }
  0x80   : > { %s4206_s25 = scalar_lea.hbm %s5927_s6, 16 }
  0x81   : > { %p4207_p4 = scmp.ne.s32.totalorder %s5927_s6, %s4206_s25  ;;  %p4213_p5 = scmp.lt.u32.totalorder %s4206_s25, %s5927_s6 }
  0x83   : > { %p4209_p0 = pnand %p4207_p4, %p4571_p3 }
  0x85   : > { %p4210_p6 = pneg %p4209_p0 }
  0x87   : > { %p4215_p11 = pnand %p4213_p5, %p4210_p6 }
  0x89   : > { %4218 = shalt.err (!%p4215_p11)
}
  0x8a   : > { %s4219_s14 = scalar_lea.vmem %s4631_s23, 16  ;;  %s4226_s3 = scalar_lea.vmem %s4631_s23, 32 }
  0x8b   : > { %p4220_p12 = scmp.ne.s32.totalorder %s4631_s23, %s4219_s14  ;;  %p4227_p8 = scmp.lt.s32.totalorder %s4631_s23, %s4631_s23 }
  0x8c   : > { %p4228_p9 = scmp.lt.s32.totalorder %s4226_s3, %s4219_s14 }
  0x8d   : > { %p4222_p13 = pnand %p4220_p12, %p4571_p3 }
  0x8e   : > { %p4229_p10 = por %p4228_p9, %p4227_p8 }
  0x8f   : > { %p4223_p7 = pneg %p4222_p13 }
  0x91   : > { %p4230_p1 = pnand %p4229_p10, %p4223_p7 }
  0x93   : > { %4233 = shalt.err (!%p4230_p1)
}
  0x94   : > { %3899 = dma.hbm_to_vmem [thread:$0]  (!%p4557_p2), %s5927_s6, 16, %s4631_s23, [#allocation14]  }
  0x95   : > { %s4427_s26 = smov [#allocation16]   ;;  %s4234_s25 = scalar_lea.hbm %s5928_s7, 16 }
  0x96   : > { %s313_s27 = sshll.u32 %s4427_s26, 4  ;;  %p4235_p4 = scmp.ne.s32.totalorder %s5928_s7, %s4234_s25  ;;  %s314_s27 = int_to_ptr.vmem [resolvable:$true] %s313_s27 }
  0x97   : > { %p4241_p5 = scmp.lt.u32.totalorder %s4234_s25, %s5928_s7 }
  0x98   : > { %p4237_p0 = pnand %p4235_p4, %p4571_p3 }
  0x9a   : > { %p4238_p6 = pneg %p4237_p0 }
  0x9c   : > { %p4243_p11 = pnand %p4241_p5, %p4238_p6 }
  0x9e   : > { %4246 = shalt.err (!%p4243_p11)
}
  0x9f   : > { %s4247_s23 = scalar_lea.vmem %s314_s27, 16  ;;  %s4254_s14 = scalar_lea.vmem %s314_s27, 32 }
  0xa0   : > { %p4248_p12 = scmp.ne.s32.totalorder %s314_s27, %s4247_s23  ;;  %p4255_p8 = scmp.lt.s32.totalorder %s314_s27, %s314_s27 }
  0xa1   : > { %p4256_p9 = scmp.lt.s32.totalorder %s4254_s14, %s4247_s23 }
  0xa2   : > { %p4250_p13 = pnand %p4248_p12, %p4571_p3 }
  0xa3   : > { %p4257_p10 = por %p4256_p9, %p4255_p8 }
  0xa4   : > { %p4251_p7 = pneg %p4250_p13 }
  0xa6   : > { %p4258_p1 = pnand %p4257_p10, %p4251_p7 }
  0xa8   : > { %4261 = shalt.err (!%p4258_p1)
}
  0xa9   : > { %3902 = dma.hbm_to_vmem [thread:$0]  (!%p4557_p2), %s5928_s7, 16, %s314_s27, [#allocation17]  }
  0xaa   : > { %p3384_p4 = scmp.ge.s32.totalorder %s4396_s30, 2 }
  0xac   : > { %320 = sbr.rel (%p3384_p4) target bundleno = 218 (0xda), region = 40 }
  0xb3   : > { %s324_s20 = sand.u32 1, %s4392_s29   ;;  %s3493_s22 = sshll.u32 %s4396_s30, 8 }
  0xb4   : > { %s3845_s18 = smul.u32 144, %s324_s20  ;;  %s4428_s26 = smov 512  }
  0xb5   : > { %p5964_p3 = scmp.ne.s32.totalorder %s5953_s15, 0  ;;  %s334_s25 = scalar_lea.hbm %s5921_s0, %s3493_s22 }
  0xb6   : > { %s328_s24 = scalar_lea.vmem [#allocation4], %s3845_s18  ;;  %s4429_s10 = smov 256  }
  0xb7   : > { %3860 = sst [smem:[#allocation20]] (%p5964_p3), %s4428_s26  ;;  %s347_s8 = sshll.u32 %s328_s24, 4  ;;  %s348_s8 = int_to_ptr.vmem [resolvable:$true] %s347_s8 }
  0xb8   : > { %s3859_s27 = scalar_select %p5964_p3, [#allocation0], [#allocation21] }
  0xb9   : > { %3861 = sst [smem:[#allocation20 + $0x1]] (%p5964_p3), %s4429_s10  ;;  %s4430_s23 = smov 2  }
  0xba   : > { %s339_s21 = sld [smem:[%s3859_s27]]   ;;  %s4431_s14 = smov 128  }
  0xbb   : > { %3862 = sst [smem:[#allocation20 + $0x2]] (%p5964_p3), %s4430_s23  ;;  %s4432_s3 = smov 8  }
  0xbc   : > { %3863 = sst [smem:[#allocation20 + $0x3]] (%p5964_p3), %s4431_s14  ;;  %s325_s18 = scalar_lea.sflag [#allocation5], %s324_s20 }
  0xbd   : > { %3864 = sst [smem:[#allocation20 + $0x4]] (%p5964_p3), %s4431_s14  ;;  %s4433_s27 = smov [#allocation19]  }
  0xbe   : > { %3865 = sst [smem:[#allocation20 + $0x5]] (%p5964_p3), %s4432_s3  ;;  %s370_s12 = sand.u32 1, %s4396_s30  }
  0xbf   : > { %s3389_s13 = sshll.u32 %s324_s20, 4  ;;  %s4724_s23 = scalar_lea.hbm %s5922_s1, %s3493_s22 }
  0xc0   : > { %s3387_s11 = sshll.u32 %s339_s21, 26  ;;  %s374_s14 = scalar_lea.vmem [#allocation7], %s3389_s13 }
  0xc1   : > { %s3388_s26 = sadd.s32 134217728, %s3387_s11  ;;  %s381_s21 = sshll.u32 %s374_s14, 4  ;;  %s4726_s21 = int_to_ptr.vmem [resolvable:$true] %s381_s21 }
  0xc2   : > { %3866 = dma.general (%p5964_p3), %s334_s25, 2304, %s348_s8, %s325_s18, %s4433_s27, [#allocation20], %s3388_s26, 0  }
  0xc3   : > { %s4728_s3 = scalar_lea.sflag [#allocation8], %s370_s12  ;;  %s4262_s25 = scalar_lea.hbm %s4724_s23, 256 }
  0xc4   : > { %p4263_p2 = scmp.ne.s32.totalorder %s4724_s23, %s4262_s25  ;;  %s4266_s22 = scalar_lea.hbm %s5922_s1, 512 }
  0xc5   : > { %p4267_p5 = scmp.lt.u32.totalorder %s4724_s23, %s5922_s1  ;;  %p4268_p11 = scmp.lt.u32.totalorder %s4266_s22, %s4262_s25 }
  0xc6   : > { %p4264_p0 = pnand %p4263_p2, %p5964_p3  ;;  %p4270_p13 = scmp.lt.u32.totalorder %s4262_s25, %s4724_s23 }
  0xc7   : > { %p4269_p12 = por %p4268_p11, %p4267_p5 }
  0xc8   : > { %p4265_p6 = pneg %p4264_p0 }
  0xc9   : > { %p4271_p7 = por %p4270_p13, %p4269_p12 }
  0xcb   : > { %p4272_p8 = pnand %p4271_p7, %p4265_p6 }
  0xcd   : > { %4275 = shalt.err (!%p4272_p8)
}
  0xce   : > { %s4276_s18 = scalar_lea.vmem %s4726_s21, 256  ;;  %s4434_s27 = smov [#allocation7]  }
  0xcf   : > { %p4277_p9 = scmp.ne.s32.totalorder %s4726_s21, %s4276_s18  ;;  %s4280_s12 = sshll.u32 %s4434_s27, 4  ;;  %s4281_s12 = int_to_ptr.vmem [resolvable:$false] %s4280_s12 }
  0xd0   : > { %s4282_s13 = scalar_lea.vmem %s4281_s12, 512  ;;  %p4283_p2 = scmp.lt.s32.totalorder %s4726_s21, %s4281_s12 }
  0xd1   : > { %p4278_p10 = pnand %p4277_p9, %p5964_p3  ;;  %p4284_p0 = scmp.lt.s32.totalorder %s4282_s13, %s4276_s18 }
  0xd3   : > { %p4279_p1 = pneg %p4278_p10  ;;  %p4285_p5 = por %p4284_p0, %p4283_p2 }
  0xd5   : > { %p4286_p11 = pnand %p4285_p5, %p4279_p1 }
  0xd7   : > { %4289 = shalt.err (!%p4286_p11)
}
  0xd8   : > { %s4435_s24 = smov 128   ;;  %s4436_s10 = smov 8  }
  0xd9   : > { %3867 = dma.hbm_to_vmem [thread:$0]  (%p5964_p3), %s4724_s23, 256, %s4726_s21, %s4728_s3, %s4435_s24, %s4435_s24, %s4436_s10  }
  0xda PF: > { %p5965_p6 = scmp.ne.s32.totalorder %s5958_s19, 0 }
  0xdc   : > { %393 = sbr.rel (%p5965_p6) target bundleno = 1251 (0x4e3), region = 52 }
  0xe3   : > { %s4755_s14 = sand.u32 1, %s4388_s28   ;;  %p5966_p12 = scmp.ne.s32.totalorder %s5954_s16, 0 }
  0xe4   : > { %s3846_s25 = smul.u32 144, %s4755_s14  ;;  %s396_s20 = scalar_lea.sflag [#allocation5], %s4755_s14 }
  0xe6   : > { %s4759_s8 = scalar_lea.vmem [#allocation4], %s3846_s25 }
  0xe7   : > { %4355 = dma.done.wait (%p5966_p12), %s396_s20, 2304  }
  0xe8   : > { %4357 = vsyncadd (%p5966_p12), %s396_s20, 4294964992  ;;  %s404_s15 = sand.u32 1, %s4510_s9   ;;  %s3393_s19 = sshll.u32 %s4755_s14, 4 }
  0xe9   : > { %s405_s23 = scalar_lea.sflag [#allocation8], %s404_s15  ;;  %s4767_s21 = scalar_lea.vmem [#allocation7], %s3393_s19 }
  0xea   : > { %4359 = dma.done.wait (%p5966_p12), %s405_s23, 256  }
  0xeb   : > { %4361 = vsyncadd (%p5966_p12), %s405_s23, 4294967040  ;;  %p5967_p3 = scmp.eq.s32.totalorder %s4510_s9, 0 }
  0xed   : > { %4363 = dma.done.wait (%p5967_p3), [#allocation8], 12288   ;;  %p5968_p13 = pmov %p5967_p3 }
  0xee   : > { %p5969_p7 = pmov %p5967_p3 }
  0xef   : > { %4365 = vsyncadd (%p5968_p13), [#allocation8], 4294955008 }
  0xf0   : > { %4367 = dma.done.wait (%p5969_p7), [#allocation11], 6240   ;;  %p5970_p8 = pmov %p5967_p3 }
  0xf1   : > { %p5971_p9 = pmov %p5967_p3 }
  0xf2   : > { %4369 = vsyncadd (%p5970_p8), [#allocation11], 4294961056 }
  0xf3   : > { %4371 = dma.done.wait (%p5971_p9), [#allocation14], 6160   ;;  %p5972_p10 = pmov %p5967_p3 }
  0xf4   : > { %p5973_p1 = pmov %p5967_p3 }
  0xf5   : > { %4373 = vsyncadd (%p5972_p10), [#allocation14], 4294961136 }
  0xf6   : > { %4375 = dma.done.wait (%p5973_p1), [#allocation17], 16   ;;  %p5974_p2 = pmov %p5973_p1 }
  0xf7   : > { %s3400_s16 = sshll.u32 %s4755_s14, 8  ;;  %v5942_v0 = vmov 0.0   ;;  %v4810_v1 = vld [vmem:[#allocation12] sm:$0xff]  ;;  %v4812_v2 = vld [vmem:[#allocation12 + $0x8] sm:$0xff]  ;;  %v4814_v3 = vld [vmem:[#allocation12 + $0x10] sm:$0xff]  ;;  %s5305_s22 = smov 0  }
  0xf8   : > { %4377 = vsyncadd (%p5974_p2), [#allocation17], 4294967280  ;;  %1358 = vst [vmem:[#allocation3] sm:$0xff] %v5942_v0  ;;  %683 = vmatprep.mubr.f32.mxu0 %v5942_v0  ;;  %737 = vmatprep.mubr.f32.mxu1 %v5942_v0  ;;  %v4816_v4 = vld [vmem:[#allocation12 + $0x18] sm:$0xff]  ;;  %v4818_v5 = vld [vmem:[#allocation12 + $0x20] sm:$0xff]  ;;  %s5295_s3 = scalar_lea.vmem [#allocation18], %s3400_s16 }
  0xf9   : > { %1359 = vst [vmem:[#allocation3 + $0x8] sm:$0xff] %v5942_v0  ;;  %1360 = vst [vmem:[#allocation3 + $0x10] sm:$0xff] %v5942_v0  ;;  %v4820_v6 = vld [vmem:[#allocation12 + $0x28] sm:$0xff]  ;;  %v4822_v7 = vld [vmem:[#allocation12 + $0x30] sm:$0xff] }
  0xfa   : > { %1361 = vst [vmem:[#allocation3 + $0x18] sm:$0xff] %v5942_v0  ;;  %1362 = vst [vmem:[#allocation3 + $0x20] sm:$0xff] %v5942_v0  ;;  %v4824_v8 = vld [vmem:[#allocation12 + $0x38] sm:$0xff]  ;;  %v4826_v9 = vld [vmem:[#allocation12 + $0x40] sm:$0xff] }
  0xfb   : > { %1363 = vst [vmem:[#allocation3 + $0x28] sm:$0xff] %v5942_v0  ;;  %1364 = vst [vmem:[#allocation3 + $0x30] sm:$0xff] %v5942_v0  ;;  %v4828_v10 = vld [vmem:[#allocation12 + $0x48] sm:$0xff]  ;;  %v4830_v11 = vld [vmem:[#allocation12 + $0x50] sm:$0xff] }
  0xfc   : > { %1365 = vst [vmem:[#allocation3 + $0x38] sm:$0xff] %v5942_v0  ;;  %1366 = vst [vmem:[#allocation3 + $0x40] sm:$0xff] %v5942_v0  ;;  %v4832_v12 = vld [vmem:[#allocation12 + $0x58] sm:$0xff]  ;;  %v4834_v13 = vld [vmem:[#allocation12 + $0x60] sm:$0xff] }
  0xfd   : > { %1367 = vst [vmem:[#allocation3 + $0x48] sm:$0xff] %v5942_v0  ;;  %1368 = vst [vmem:[#allocation3 + $0x50] sm:$0xff] %v5942_v0  ;;  %v4836_v14 = vld [vmem:[#allocation12 + $0x68] sm:$0xff]  ;;  %v4838_v15 = vld [vmem:[#allocation12 + $0x70] sm:$0xff] }
  0xfe   : > { %1369 = vst [vmem:[#allocation3 + $0x58] sm:$0xff] %v5942_v0  ;;  %1370 = vst [vmem:[#allocation3 + $0x60] sm:$0xff] %v5942_v0  ;;  %v4840_v16 = vld [vmem:[#allocation12 + $0x78] sm:$0xff]  ;;  %v4842_v17 = vld [vmem:[#allocation12 + $0x80] sm:$0xff] }
  0xff   : > { %1371 = vst [vmem:[#allocation3 + $0x68] sm:$0xff] %v5942_v0  ;;  %1372 = vst [vmem:[#allocation3 + $0x70] sm:$0xff] %v5942_v0  ;;  %v4844_v18 = vld [vmem:[#allocation12 + $0x88] sm:$0xff]  ;;  %v4846_v19 = vld [vmem:[#allocation12 + $0x90] sm:$0xff] }
 0x100   : > { %1373 = vst [vmem:[#allocation3 + $0x78] sm:$0xff] %v5942_v0  ;;  %1374 = vst [vmem:[#allocation3 + $0x80] sm:$0xff] %v5942_v0  ;;  %v4848_v20 = vld [vmem:[#allocation12 + $0x98] sm:$0xff]  ;;  %v4850_v21 = vld [vmem:[#allocation12 + $0xa0] sm:$0xff] }
 0x101   : > { %1375 = vst [vmem:[#allocation3 + $0x88] sm:$0xff] %v5942_v0  ;;  %v4852_v22 = vld [vmem:[#allocation12 + $0xa8] sm:$0xff]  ;;  %v4854_v23 = vld [vmem:[#allocation12 + $0xb0] sm:$0xff]  ;;  %v4856_v24 = vld [vmem:[#allocation12 + $0xb8] sm:$0xff] }
 0x102   : > { %v4858_v25 = vld [vmem:[#allocation12 + $0xc0] sm:$0xff]  ;;  %v4860_v26 = vld [vmem:[#allocation12 + $0xc8] sm:$0xff]  ;;  %v4862_v27 = vld [vmem:[#allocation12 + $0xd0] sm:$0xff] }
 0x103   : > { %v4864_v28 = vld [vmem:[#allocation12 + $0xd8] sm:$0xff]  ;;  %v4866_v29 = vld [vmem:[#allocation12 + $0xe0] sm:$0xff]  ;;  %v4868_v30 = vld [vmem:[#allocation12 + $0xe8] sm:$0xff] }
 0x104   : > { %5975 = vst [vmem:[#allocation33_spill] sm:$0xff] %v4868_v30  ;;  %v4870_v31 = vld [vmem:[#allocation12 + $0xf0] sm:$0xff]  ;;  %v4872_v32 = vld [vmem:[#allocation12 + $0xf8] sm:$0xff]  ;;  %v4874_v33 = vld [vmem:[#allocation12 + $0x100] sm:$0xff] }
 0x105   : > { %5976 = vst [vmem:[#allocation34_spill] sm:$0xff] %v4870_v31  ;;  %5977 = vst [vmem:[#allocation35_spill] sm:$0xff] %v4872_v32  ;;  %v4876_v34 = vld [vmem:[#allocation12 + $0x108] sm:$0xff]  ;;  %v4878_v35 = vld [vmem:[#allocation12 + $0x110] sm:$0xff] }
 0x106   : > { %5978 = vst [vmem:[#allocation36_spill] sm:$0xff] %v4874_v33  ;;  %5979 = vst [vmem:[#allocation37_spill] sm:$0xff] %v4876_v34  ;;  %v4880_v36 = vld [vmem:[#allocation12 + $0x118] sm:$0xff]  ;;  %v4882_v37 = vld [vmem:[#allocation12 + $0x120] sm:$0xff] }
 0x107   : > { %5980 = vst [vmem:[#allocation38_spill] sm:$0xff] %v4878_v35  ;;  %5981 = vst [vmem:[#allocation39_spill] sm:$0xff] %v4880_v36  ;;  %v4884_v38 = vld [vmem:[#allocation12 + $0x128] sm:$0xff]  ;;  %v4886_v39 = vld [vmem:[#allocation12 + $0x130] sm:$0xff] }
 0x108   : > { %5982 = vst [vmem:[#allocation40_spill] sm:$0xff] %v4882_v37  ;;  %5983 = vst [vmem:[#allocation41_spill] sm:$0xff] %v4884_v38  ;;  %v4888_v40 = vld [vmem:[#allocation12 + $0x138] sm:$0xff]  ;;  %v4890_v41 = vld [vmem:[#allocation12 + $0x140] sm:$0xff] }
 0x109   : > { %5984 = vst [vmem:[#allocation42_spill] sm:$0xff] %v4886_v39  ;;  %5985 = vst [vmem:[#allocation43_spill] sm:$0xff] %v4888_v40  ;;  %v4892_v42 = vld [vmem:[#allocation12 + $0x148] sm:$0xff]  ;;  %v4894_v43 = vld [vmem:[#allocation12 + $0x150] sm:$0xff] }
 0x10a   : > { %5986 = vst [vmem:[#allocation44_spill] sm:$0xff] %v4890_v41  ;;  %5987 = vst [vmem:[#allocation45_spill] sm:$0xff] %v4892_v42  ;;  %v4896_v44 = vld [vmem:[#allocation12 + $0x158] sm:$0xff]  ;;  %v4898_v45 = vld [vmem:[#allocation12 + $0x160] sm:$0xff] }
 0x10b   : > { %5988 = vst [vmem:[#allocation46_spill] sm:$0xff] %v4894_v43  ;;  %5989 = vst [vmem:[#allocation47_spill] sm:$0xff] %v4896_v44  ;;  %v4900_v46 = vld [vmem:[#allocation12 + $0x168] sm:$0xff]  ;;  %v4902_v47 = vld [vmem:[#allocation12 + $0x170] sm:$0xff] }
 0x10c   : > { %5990 = vst [vmem:[#allocation48_spill] sm:$0xff] %v4898_v45  ;;  %5991 = vst [vmem:[#allocation49_spill] sm:$0xff] %v4900_v46  ;;  %v4904_v48 = vld [vmem:[#allocation12 + $0x178] sm:$0xff]  ;;  %v4906_v49 = vld [vmem:[#allocation13] sm:$0xff] }
 0x10d   : > { %5992 = vst [vmem:[#allocation50_spill] sm:$0xff] %v4902_v47  ;;  %5993 = vst [vmem:[#allocation51_spill] sm:$0xff] %v4904_v48  ;;  %v4908_v50 = vld [vmem:[#allocation13 + $0x8] sm:$0xff]  ;;  %v4910_v51 = vld [vmem:[#allocation13 + $0x10] sm:$0xff] }
 0x10e   : > { %5994 = vst [vmem:[#allocation52_spill] sm:$0xff] %v4906_v49  ;;  %5995 = vst [vmem:[#allocation53_spill] sm:$0xff] %v4908_v50  ;;  %v4912_v52 = vld [vmem:[#allocation13 + $0x18] sm:$0xff]  ;;  %v4914_v53 = vld [vmem:[#allocation13 + $0x20] sm:$0xff] }
 0x10f   : > { %5996 = vst [vmem:[#allocation54_spill] sm:$0xff] %v4910_v51  ;;  %5997 = vst [vmem:[#allocation55_spill] sm:$0xff] %v4912_v52  ;;  %v4916_v54 = vld [vmem:[#allocation13 + $0x28] sm:$0xff]  ;;  %v4918_v55 = vld [vmem:[#allocation13 + $0x30] sm:$0xff] }
 0x110   : > { %5998 = vst [vmem:[#allocation56_spill] sm:$0xff] %v4914_v53  ;;  %5999 = vst [vmem:[#allocation57_spill] sm:$0xff] %v4916_v54  ;;  %v4920_v56 = vld [vmem:[#allocation13 + $0x38] sm:$0xff]  ;;  %v4922_v57 = vld [vmem:[#allocation13 + $0x40] sm:$0xff] }
 0x111   : > { %6000 = vst [vmem:[#allocation58_spill] sm:$0xff] %v4918_v55  ;;  %6001 = vst [vmem:[#allocation59_spill] sm:$0xff] %v4920_v56  ;;  %v4924_v58 = vld [vmem:[#allocation13 + $0x48] sm:$0xff]  ;;  %v4926_v59 = vld [vmem:[#allocation13 + $0x50] sm:$0xff] }
 0x112   : > { %6002 = vst [vmem:[#allocation60_spill] sm:$0xff] %v4922_v57  ;;  %6003 = vst [vmem:[#allocation61_spill] sm:$0xff] %v4924_v58  ;;  %v4928_v60 = vld [vmem:[#allocation13 + $0x58] sm:$0xff]  ;;  %v4930_v61 = vld [vmem:[#allocation13 + $0x60] sm:$0xff] }
 0x113   : > { %6004 = vst [vmem:[#allocation62_spill] sm:$0xff] %v4926_v59  ;;  %6005 = vst [vmem:[#allocation63_spill] sm:$0xff] %v4928_v60  ;;  %v4932_v62 = vld [vmem:[#allocation13 + $0x68] sm:$0xff]  ;;  %v4934_v63 = vld [vmem:[#allocation13 + $0x70] sm:$0xff] }
 0x114   : > { %6006 = vst [vmem:[#allocation64_spill] sm:$0xff] %v4930_v61  ;;  %6007 = vst [vmem:[#allocation65_spill] sm:$0xff] %v4932_v62  ;;  %v4936_v0 = vld [vmem:[#allocation13 + $0x78] sm:$0xff]  ;;  %v4938_v54 = vld [vmem:[#allocation13 + $0x80] sm:$0xff] }
 0x115   : > { %6008 = vst [vmem:[#allocation66_spill] sm:$0xff] %v4934_v63  ;;  %6009 = vst [vmem:[#allocation67_spill] sm:$0xff] %v4936_v0  ;;  %v4940_v55 = vld [vmem:[#allocation13 + $0x88] sm:$0xff]  ;;  %v4942_v51 = vld [vmem:[#allocation13 + $0x90] sm:$0xff] }
 0x116   : > { %6010 = vst [vmem:[#allocation68_spill] sm:$0xff] %v4938_v54  ;;  %6011 = vst [vmem:[#allocation69_spill] sm:$0xff] %v4940_v55  ;;  %v4944_v57 = vld [vmem:[#allocation13 + $0x98] sm:$0xff]  ;;  %v4946_v58 = vld [vmem:[#allocation13 + $0xa0] sm:$0xff] }
 0x117   : > { %6012 = vst [vmem:[#allocation70_spill] sm:$0xff] %v4942_v51  ;;  %6013 = vst [vmem:[#allocation71_spill] sm:$0xff] %v4944_v57  ;;  %v4948_v59 = vld [vmem:[#allocation13 + $0xa8] sm:$0xff]  ;;  %v4950_v60 = vld [vmem:[#allocation13 + $0xb0] sm:$0xff] }
 0x118   : > { %6014 = vst [vmem:[#allocation72_spill] sm:$0xff] %v4946_v58  ;;  %6015 = vst [vmem:[#allocation73_spill] sm:$0xff] %v4948_v59  ;;  %v4952_v61 = vld [vmem:[#allocation13 + $0xb8] sm:$0xff]  ;;  %v4954_v62 = vld [vmem:[#allocation13 + $0xc0] sm:$0xff] }
 0x119   : > { %6016 = vst [vmem:[#allocation74_spill] sm:$0xff] %v4950_v60  ;;  %6017 = vst [vmem:[#allocation75_spill] sm:$0xff] %v4952_v61  ;;  %v4956_v63 = vld [vmem:[#allocation13 + $0xc8] sm:$0xff]  ;;  %v4958_v0 = vld [vmem:[#allocation13 + $0xd0] sm:$0xff] }
 0x11a   : > { %6018 = vst [vmem:[#allocation76_spill] sm:$0xff] %v4954_v62  ;;  %6019 = vst [vmem:[#allocation77_spill] sm:$0xff] %v4956_v63  ;;  %v4960_v54 = vld [vmem:[#allocation13 + $0xd8] sm:$0xff]  ;;  %v4962_v55 = vld [vmem:[#allocation13 + $0xe0] sm:$0xff] }
 0x11b   : > { %6020 = vst [vmem:[#allocation78_spill] sm:$0xff] %v4958_v0  ;;  %6021 = vst [vmem:[#allocation79_spill] sm:$0xff] %v4960_v54  ;;  %v4964_v51 = vld [vmem:[#allocation13 + $0xe8] sm:$0xff]  ;;  %v4966_v57 = vld [vmem:[#allocation13 + $0xf0] sm:$0xff] }
 0x11c   : > { %6022 = vst [vmem:[#allocation80_spill] sm:$0xff] %v4962_v55  ;;  %6023 = vst [vmem:[#allocation81_spill] sm:$0xff] %v4964_v51  ;;  %v4968_v58 = vld [vmem:[#allocation13 + $0xf8] sm:$0xff]  ;;  %v4970_v59 = vld [vmem:[#allocation13 + $0x100] sm:$0xff] }
 0x11d   : > { %6024 = vst [vmem:[#allocation82_spill] sm:$0xff] %v4966_v57  ;;  %6025 = vst [vmem:[#allocation83_spill] sm:$0xff] %v4968_v58  ;;  %v4972_v60 = vld [vmem:[#allocation13 + $0x108] sm:$0xff]  ;;  %v4974_v61 = vld [vmem:[#allocation13 + $0x110] sm:$0xff] }
 0x11e   : > { %6026 = vst [vmem:[#allocation84_spill] sm:$0xff] %v4970_v59  ;;  %6027 = vst [vmem:[#allocation85_spill] sm:$0xff] %v4972_v60  ;;  %v4976_v62 = vld [vmem:[#allocation13 + $0x118] sm:$0xff]  ;;  %v4978_v0 = vld [vmem:[#allocation13 + $0x120] sm:$0xff] }
 0x11f   : > { %6028 = vst [vmem:[#allocation86_spill] sm:$0xff] %v4974_v61  ;;  %6029 = vst [vmem:[#allocation87_spill] sm:$0xff] %v4976_v62  ;;  %v4980_v54 = vld [vmem:[#allocation13 + $0x128] sm:$0xff]  ;;  %v4982_v55 = vld [vmem:[#allocation13 + $0x130] sm:$0xff] }
 0x120   : > { %6030 = vst [vmem:[#allocation88_spill] sm:$0xff] %v4978_v0  ;;  %6031 = vst [vmem:[#allocation89_spill] sm:$0xff] %v4980_v54  ;;  %v4984_v51 = vld [vmem:[#allocation13 + $0x138] sm:$0xff]  ;;  %v4986_v57 = vld [vmem:[#allocation13 + $0x140] sm:$0xff] }
 0x121   : > { %6032 = vst [vmem:[#allocation90_spill] sm:$0xff] %v4982_v55  ;;  %6033 = vst [vmem:[#allocation91_spill] sm:$0xff] %v4984_v51  ;;  %v4988_v58 = vld [vmem:[#allocation13 + $0x148] sm:$0xff]  ;;  %v4990_v59 = vld [vmem:[#allocation13 + $0x150] sm:$0xff] }
 0x122   : > { %6034 = vst [vmem:[#allocation92_spill] sm:$0xff] %v4986_v57  ;;  %6035 = vst [vmem:[#allocation93_spill] sm:$0xff] %v4988_v58  ;;  %v4992_v60 = vld [vmem:[#allocation13 + $0x158] sm:$0xff]  ;;  %v4994_v61 = vld [vmem:[#allocation13 + $0x160] sm:$0xff] }
 0x123   : > { %6036 = vst [vmem:[#allocation94_spill] sm:$0xff] %v4990_v59  ;;  %6037 = vst [vmem:[#allocation95_spill] sm:$0xff] %v4992_v60  ;;  %v4996_v62 = vld [vmem:[#allocation13 + $0x168] sm:$0xff]  ;;  %v4998_v63 = vld [vmem:[#allocation13 + $0x170] sm:$0xff] }
 0x124   : > { %6038 = vst [vmem:[#allocation96_spill] sm:$0xff] %v4994_v61  ;;  %6039 = vst [vmem:[#allocation97_spill] sm:$0xff] %v4996_v62  ;;  %v5000_v0 = vld [vmem:[#allocation13 + $0x178] sm:$0xff]  ;;  %v5002_v54 = vld [vmem:[#allocation15] ss:$0 sm:$0xff] }
 0x125   : > { %6040 = vst [vmem:[#allocation98_spill] sm:$0xff] %v4998_v63  ;;  %6041 = vst [vmem:[#allocation99_spill] sm:$0xff] %v5000_v0  ;;  %v5004_v55 = vld [vmem:[#allocation16] ss:$0 sm:$0xff]  ;;  %v5007_v51 = vld [vmem:[%s4767_s21] sm:$0xff] }
 0x126   : > { %6042 = vst [vmem:[#allocation100_spill] sm:$0xff] %v5002_v54  ;;  %6043 = vst [vmem:[#allocation101_spill] sm:$0xff] %v5004_v55  ;;  %v5010_v57 = vld [vmem:[%s4767_s21 + $0x8] sm:$0xff]  ;;  %v491_v60 = vld [vmem:[#allocation9] sm:$0xff] }
 0x127   : > { %6044 = vst [vmem:[#allocation102_spill] sm:$0xff] %v5007_v51  ;;  %6045 = vst [vmem:[#allocation103_spill] sm:$0xff] %v5010_v57  ;;  %v492_v58 = vld [vmem:[#allocation9 + $0x8] sm:$0xff]  ;;  %v498_v59 = vld [vmem:[#allocation9 + $0x38] sm:$0xff] }
 0x128   : > { %v3605_v56 = vpack.c.bf16 %v498_v59, %v492_v58  ;;  %v497_v52 = vld [vmem:[#allocation9 + $0x30] sm:$0xff]  ;;  %v504_v61 = vld [vmem:[#allocation9 + $0x68] sm:$0xff]  ;;  %v510_v62 = vld [vmem:[#allocation9 + $0x98] sm:$0xff] }
 0x129   : > { %v3607_v49 = vpack.c.bf16 %v497_v52, %v491_v60  ;;  %v503_v53 = vld [vmem:[#allocation9 + $0x60] sm:$0xff]  ;;  %v509_v63 = vld [vmem:[#allocation9 + $0x90] sm:$0xff]  ;;  %v3609_v0 = vpack.c.bf16 %v510_v62, %v504_v61  ;;  %v516_v54 = vld [vmem:[#allocation9 + $0xc8] sm:$0xff] }
 0x12a   : > { %3606 = vmatprep.subr.bf16.mxu0 %v3605_v56  ;;  %3829 = vmatprep.subr.bf16.mxu1 %v3605_v56  ;;  %v522_v50 = vld [vmem:[#allocation9 + $0xf8] sm:$0xff]  ;;  %v3611_v55 = vpack.c.bf16 %v509_v63, %v503_v53  ;;  %v515_v45 = vld [vmem:[#allocation9 + $0xc0] sm:$0xff]  ;;  %v521_v58 = vld [vmem:[#allocation9 + $0xf0] sm:$0xff] }
 0x12b   : > { %3608 = vmatpush1.bf16.msra.mxu0 %v3607_v49  ;;  %3837 = vmatpush1.bf16.msra.mxu1 %v3607_v49  ;;  %v3613_v48 = vpack.c.bf16 %v522_v50, %v516_v54  ;;  %v528_v59 = vld [vmem:[#allocation9 + $0x128] sm:$0xff]  ;;  %v534_v46 = vld [vmem:[#allocation9 + $0x158] sm:$0xff]  ;;  %v3615_v52 = vpack.c.bf16 %v521_v58, %v515_v45  ;;  %v527_v56 = vld [vmem:[#allocation9 + $0x120] sm:$0xff] }
 0x12c   : > { %3610 = vmatprep.subr.bf16.mxu0 %v3609_v0  ;;  %3830 = vmatprep.subr.bf16.mxu1 %v3609_v0  ;;  %v3617_v60 = vpack.c.bf16 %v534_v46, %v528_v59  ;;  %v533_v61 = vld [vmem:[#allocation9 + $0x150] sm:$0xff]  ;;  %v540_v62 = vld [vmem:[#allocation9 + $0x188] sm:$0xff]  ;;  %v546_v43 = vld [vmem:[#allocation9 + $0x1b8] sm:$0xff] }
 0x12d   : > { %v3619_v49 = vpack.c.bf16 %v533_v61, %v527_v56  ;;  %v3621_v0 = vpack.c.bf16 %v546_v43, %v540_v62  ;;  %v539_v50 = vld [vmem:[#allocation9 + $0x180] sm:$0xff]  ;;  %v545_v53 = vld [vmem:[#allocation9 + $0x1b0] sm:$0xff]  ;;  %v552_v54 = vld [vmem:[#allocation9 + $0x1e8] sm:$0xff] }
 0x12e   : > { %v558_v63 = vld [vmem:[#allocation9 + $0x218] sm:$0xff]  ;;  %v3623_v45 = vpack.c.bf16 %v545_v53, %v539_v50  ;;  %v564_v58 = vld [vmem:[#allocation9 + $0x248] sm:$0xff]  ;;  %v569_v56 = vld [vmem:[#allocation9 + $0x270] sm:$0xff] }
 0x12f   : > { %3612 = vmatpush1.bf16.msra.mxu0 %v3611_v55  ;;  %3838 = vmatpush1.bf16.msra.mxu1 %v3611_v55  ;;  %v3625_v46 = vpack.c.bf16 %v558_v63, %v552_v54  ;;  %v557_v55 = vld [vmem:[#allocation9 + $0x210] sm:$0xff]  ;;  %v570_v59 = vld [vmem:[#allocation9 + $0x278] sm:$0xff]  ;;  %v576_v61 = vld [vmem:[#allocation9 + $0x2a8] sm:$0xff] }
 0x130   : > { %3614 = vmatprep.subr.bf16.mxu0 %v3613_v48  ;;  %3831 = vmatprep.subr.bf16.mxu1 %v3613_v48  ;;  %v551_v48 = vld [vmem:[#allocation9 + $0x1e0] sm:$0xff]  ;;  %v3629_v43 = vpack.c.bf16 %v570_v59, %v564_v58  ;;  %v582_v62 = vld [vmem:[#allocation9 + $0x2d8] sm:$0xff]  ;;  %v581_v53 = vld [vmem:[#allocation9 + $0x2d0] sm:$0xff] }
 0x131   : > { %v575_v50 = vld [vmem:[#allocation9 + $0x2a0] sm:$0xff]  ;;  %v494_v54 = vld [vmem:[#allocation9 + $0x18] sm:$0xff]  ;;  %v500_v63 = vld [vmem:[#allocation9 + $0x48] sm:$0xff] }
 0x132   : > { %v496_v47 = vld [vmem:[#allocation9 + $0x28] sm:$0xff]  ;;  %v499_v59 = vld [vmem:[#allocation9 + $0x40] sm:$0xff]  ;;  %v505_v42 = vld [vmem:[#allocation9 + $0x70] sm:$0xff] }
 0x133   : > { %3616 = vmatpush1.bf16.msra.mxu0 %v3615_v52  ;;  %3839 = vmatpush1.bf16.msra.mxu1 %v3615_v52  ;;  %v3627_v52 = vpack.c.bf16 %v557_v55, %v551_v48  ;;  %v493_v48 = vld [vmem:[#allocation9 + $0x10] sm:$0xff]  ;;  %v3637_v55 = vpack.c.bf16 %v500_v63, %v494_v54  ;;  %v518_v39 = vld [vmem:[#allocation9 + $0xd8] sm:$0xff]  ;;  %v520_v40 = vld [vmem:[#allocation9 + $0xe8] sm:$0xff] }
 0x134   : > { %3618 = vmatprep.subr.bf16.mxu0 %v3617_v60  ;;  %3832 = vmatprep.subr.bf16.mxu1 %v3617_v60  ;;  %v563_v60 = vld [vmem:[#allocation9 + $0x240] sm:$0xff]  ;;  %v513_v54 = vld [vmem:[#allocation9 + $0xb0] sm:$0xff]  ;;  %v526_v37 = vld [vmem:[#allocation9 + $0x118] sm:$0xff] }
 0x135   : > { %v5013_v44 = vld [vmem:[%s4759_s8] sm:$0xff]  ;;  %v5034_v41 = vld [vmem:[%s4759_s8 + $0x58] sm:$0xff] }
 0x136   : > { %v554_v33 = vld [vmem:[#allocation9 + $0x1f8] sm:$0xff]  ;;  %v560_v34 = vld [vmem:[#allocation9 + $0x228] sm:$0xff] }
 0x137   : > { %3620 = vmatpush1.bf16.msra.mxu0 %v3619_v49  ;;  %3840 = vmatpush1.bf16.msra.mxu1 %v3619_v49  ;;  %v3631_v49 = vpack.c.bf16 %v569_v56, %v563_v60  ;;  %v506_v60 = vld [vmem:[#allocation9 + $0x78] sm:$0xff]  ;;  %v512_v56 = vld [vmem:[#allocation9 + $0xa8] sm:$0xff] }
 0x138   : > { %3622 = vmatprep.subr.bf16.mxu0 %v3621_v0  ;;  %3833 = vmatprep.subr.bf16.mxu1 %v3621_v0  ;;  %v3633_v0 = vpack.c.bf16 %v582_v62, %v576_v61  ;;  %v508_v61 = vld [vmem:[#allocation9 + $0x88] sm:$0xff]  ;;  %v514_v62 = vld [vmem:[#allocation9 + $0xb8] sm:$0xff]  ;;  %v3641_v63 = vpack.c.bf16 %v512_v56, %v506_v60  ;;  %v523_v60 = vld [vmem:[#allocation9 + $0x100] sm:$0xff] }
 0x139   : > { %v519_v56 = vld [vmem:[#allocation9 + $0xe0] sm:$0xff]  ;;  %v556_v31 = vld [vmem:[#allocation9 + $0x208] sm:$0xff]  ;;  %v562_v35 = vld [vmem:[#allocation9 + $0x238] sm:$0xff] }
 0x13a   : > { %v566_v32 = vld [vmem:[#allocation9 + $0x258] sm:$0xff]  ;;  %v572_v57 = vld [vmem:[#allocation9 + $0x288] sm:$0xff] }
 0x13b   : > { %3624 = vmatpush1.bf16.msra.mxu0 %v3623_v45  ;;  %3841 = vmatpush1.bf16.msra.mxu1 %v3623_v45  ;;  %v502_v45 = vld [vmem:[#allocation9 + $0x58] sm:$0xff]  ;;  %v584_v30 = vld [vmem:[#allocation9 + $0x2e8] sm:$0xff] }
 0x13c   : > { %3626 = vmatprep.subr.bf16.mxu0 %v3625_v46  ;;  %3834 = vmatprep.subr.bf16.mxu1 %v3625_v46  ;;  %v3635_v46 = vpack.c.bf16 %v581_v53, %v575_v50  ;;  %v3669_v58 = vpack.c.bf16 %v502_v45, %v496_v47  ;;  %v3639_v50 = vpack.c.bf16 %v499_v59, %v493_v48  ;;  %v511_v47 = vld [vmem:[#allocation9 + $0xa0] sm:$0xff]  ;;  %v5021_v48 = vld [vmem:[%s4759_s8 + $0x8] sm:$0xff] }
 0x13d   : > { %v3673_v45 = vpack.c.bf16 %v514_v62, %v508_v61  ;;  %v525_v61 = vld [vmem:[#allocation9 + $0x110] sm:$0xff]  ;;  %v578_v51 = vld [vmem:[#allocation9 + $0x2b8] sm:$0xff] }
 0x13e   : > { %v3679_v36 = vpack.c.bf16 %v525_v61, %v519_v56  ;;  %v5041_v56 = vld [vmem:[%s4759_s8 + $0x18] sm:$0xff]  ;;  %v5044_v61 = vld [vmem:[%s4759_s8 + $0x60] sm:$0xff] }
 0x13f   : > { %3628 = vmatpush1.bf16.msra.mxu0 %v3627_v52  ;;  %3842 = vmatpush1.bf16.msra.mxu1 %v3627_v52  ;;  %v495_v52 = vld [vmem:[#allocation9 + $0x20] sm:$0xff] }
 0x140   : > { %3630 = vmatprep.subr.bf16.mxu0 %v3629_v43  ;;  %3835 = vmatprep.subr.bf16.mxu1 %v3629_v43  ;;  %v501_v43 = vld [vmem:[#allocation9 + $0x50] sm:$0xff] }
 0x141   : > { %v3671_v53 = vpack.c.bf16 %v501_v43, %v495_v52  ;;  %v517_v52 = vld [vmem:[#allocation9 + $0xd0] sm:$0xff]  ;;  %v6046_v43 = vmov 0.0  }
 0x142   : > { %v3647_v38 = vpack.c.bf16 %v523_v60, %v517_v52  ;;  %v544_v52 = vld [vmem:[#allocation9 + $0x1a8] sm:$0xff]  ;;  %v550_v60 = vld [vmem:[#allocation9 + $0x1d8] sm:$0xff] }
 0x143   : > { %3632 = vmatpush1.bf16.msra.mxu0 %v3631_v49  ;;  %3843 = vmatpush1.bf16.msra.mxu1 %v3631_v49  ;;  %v5016_v49 = vld [vmem:[%s4759_s8 + $0x48] sm:$0xff] }
 0x144   : > { %3634 = vmatprep.subr.bf16.mxu0 %v3633_v0  ;;  %3836 = vmatprep.subr.bf16.mxu1 %v3633_v0  ;;  %v507_v0 = vld [vmem:[#allocation9 + $0x80] sm:$0xff] }
 0x145   : > { %v3675_v59 = vpack.c.bf16 %v513_v54, %v507_v0  ;;  %v538_v0 = vld [vmem:[#allocation9 + $0x178] sm:$0xff]  ;;  %v5031_v54 = vld [vmem:[%s4759_s8 + $0x10] sm:$0xff] }
 0x147   : > { %3636 = vmatpush1.bf16.msra.mxu0 %v3635_v46  ;;  %3844 = vmatpush1.bf16.msra.mxu1 %v3635_v46  ;;  %v524_v46 = vld [vmem:[#allocation9 + $0x108] sm:$0xff] }
 0x148   : > { %3638 = vmatprep.subr.bf16.mxu1 %v3637_v55  ;;  %3670 = vmatprep.subr.bf16.mxu0 %v3669_v58  ;;  %v5024_v55 = vld [vmem:[%s4759_s8 + $0x50] sm:$0xff]  ;;  %v3643_v58 = vpack.c.bf16 %v511_v47, %v505_v42  ;;  %v3645_v62 = vpack.c.bf16 %v524_v46, %v518_v39  ;;  %v536_v42 = vld [vmem:[#allocation9 + $0x168] sm:$0xff] }
 0x149   : > { %v532_v47 = vld [vmem:[#allocation9 + $0x148] sm:$0xff]  ;;  %v535_v39 = vld [vmem:[#allocation9 + $0x160] sm:$0xff]  ;;  %v537_v46 = vld [vmem:[#allocation9 + $0x170] sm:$0xff] }
 0x14a   : > { %684 = vmatmul.mubr.f32.vlgmr.msra.gmra.mrb[0].mxu0 %v5013_v44  ;;  %738 = vmatmul.mubr.f32.vlgmr.msra.gmra.mrb[0].mxu1 %v5016_v49 }
 0x14b   : > { %3640 = vmatpush1.bf16.msra.mxu1 %v3639_v50  ;;  %3672 = vmatpush1.bf16.msra.mxu0 %v3671_v53  ;;  %v3677_v50 = vpack.c.bf16 %v526_v37, %v520_v40  ;;  %v530_v53 = vld [vmem:[#allocation9 + $0x138] sm:$0xff]  ;;  %v529_v37 = vld [vmem:[#allocation9 + $0x130] sm:$0xff] }
 0x14c   : > { %689 = vmatprep.mubr.f32.mxu0 %v6046_v43  ;;  %743 = vmatprep.mubr.f32.mxu1 %v6046_v43  ;;  %v3649_v40 = vpack.c.bf16 %v536_v42, %v530_v53  ;;  %v541_v53 = vld [vmem:[#allocation9 + $0x190] sm:$0xff]  ;;  %v547_v42 = vld [vmem:[#allocation9 + $0x1c0] sm:$0xff] }
 0x14d   : > { %3642 = vmatprep.subr.bf16.mxu1 %v3641_v63  ;;  %3674 = vmatprep.subr.bf16.mxu0 %v3673_v45  ;;  %v3681_v63 = vpack.c.bf16 %v538_v0, %v532_v47  ;;  %v531_v45 = vld [vmem:[#allocation9 + $0x140] sm:$0xff]  ;;  %v3685_v0 = vpack.c.bf16 %v550_v60, %v544_v52  ;;  %v561_v60 = vld [vmem:[#allocation9 + $0x230] sm:$0xff] }
 0x14e   : > { %690 = vmatmul.mubr.f32.gmra.mrb[2].mxu0 %v5021_v48  ;;  %744 = vmatmul.mubr.f32.gmra.mrb[2].mxu1 %v5024_v55  ;;  %v555_v52 = vld [vmem:[#allocation9 + $0x200] sm:$0xff] }
 0x14f   : > { %3644 = vmatpush1.bf16.msra.mxu1 %v3643_v58  ;;  %3676 = vmatpush1.bf16.msra.mxu0 %v3675_v59  ;;  %v542_v58 = vld [vmem:[#allocation9 + $0x198] sm:$0xff]  ;;  %v548_v59 = vld [vmem:[#allocation9 + $0x1c8] sm:$0xff] }
 0x150   : > { %695 = vmatprep.mubr.f32.mxu0 %v6046_v43  ;;  %749 = vmatprep.mubr.f32.mxu1 %v6046_v43  ;;  %v3653_v47 = vpack.c.bf16 %v548_v59, %v542_v58  ;;  %v3657_v58 = vpack.c.bf16 %v560_v34, %v554_v33  ;;  %v3689_v59 = vpack.c.bf16 %v562_v35, %v556_v31  ;;  %v565_v34 = vld [vmem:[#allocation9 + $0x250] sm:$0xff]  ;;  %v571_v35 = vld [vmem:[#allocation9 + $0x280] sm:$0xff] }
 0x151   : > { %3646 = vmatprep.subr.bf16.mxu1 %v3645_v62  ;;  %3678 = vmatprep.subr.bf16.mxu0 %v3677_v50  ;;  %v3651_v62 = vpack.c.bf16 %v535_v39, %v529_v37  ;;  %v3683_v50 = vpack.c.bf16 %v537_v46, %v531_v45  ;;  %v5053_v37 = vld [vmem:[%s4759_s8 + $0x20] sm:$0xff]  ;;  %v5056_v39 = vld [vmem:[%s4759_s8 + $0x68] sm:$0xff]  ;;  %v3691_v33 = vpack.c.bf16 %v561_v60, %v555_v52 }
 0x152   : > { %696 = vmatmul.mubr.f32.gmra.mrb[4].mxu0 %v5031_v54  ;;  %750 = vmatmul.mubr.f32.gmra.mrb[4].mxu1 %v5034_v41  ;;  %v553_v45 = vld [vmem:[#allocation9 + $0x1f0] sm:$0xff]  ;;  %v559_v46 = vld [vmem:[#allocation9 + $0x220] sm:$0xff] }
 0x153   : > { %3648 = vmatpush1.bf16.msra.mxu1 %v3647_v38  ;;  %3680 = vmatpush1.bf16.msra.mxu0 %v3679_v36  ;;  %v543_v38 = vld [vmem:[#allocation9 + $0x1a0] sm:$0xff]  ;;  %v549_v36 = vld [vmem:[#allocation9 + $0x1d0] sm:$0xff]  ;;  %v3659_v31 = vpack.c.bf16 %v559_v46, %v553_v45  ;;  %v5074_v46 = vld [vmem:[%s4759_s8 + $0x78] sm:$0xff] }
 0x154   : > { %701 = vmatprep.mubr.f32.mxu0 %v6046_v43  ;;  %755 = vmatprep.mubr.f32.mxu1 %v6046_v43  ;;  %v479_v45 = vld [vmem:[%s4759_s8 + $0x30] sm:$0xff] }
 0x155   : > { %3650 = vmatprep.subr.bf16.mxu1 %v3649_v40  ;;  %3682 = vmatprep.subr.bf16.mxu0 %v3681_v63  ;;  %v3655_v40 = vpack.c.bf16 %v547_v42, %v541_v53  ;;  %v3687_v63 = vpack.c.bf16 %v549_v36, %v543_v38  ;;  %v5063_v53 = vld [vmem:[%s4759_s8 + $0x28] sm:$0xff]  ;;  %v5066_v42 = vld [vmem:[%s4759_s8 + $0x70] sm:$0xff] }
 0x156   : > { %702 = vmatmul.mubr.f32.gmra.mrb[6].mxu0 %v5041_v56  ;;  %756 = vmatmul.mubr.f32.gmra.mrb[6].mxu1 %v5044_v61  ;;  %v567_v38 = vld [vmem:[#allocation9 + $0x260] sm:$0xff]  ;;  %v573_v36 = vld [vmem:[#allocation9 + $0x290] sm:$0xff] }
 0x157   : > { %707 = vmatprep.mubr.f32.mxu0 %v6046_v43  ;;  %761 = vmatprep.mubr.f32.mxu1 %v6046_v43  ;;  %v583_v60 = vld [vmem:[#allocation9 + $0x2e0] sm:$0xff] }
 0x158   : > { %3652 = vmatpush1.bf16.msra.mxu1 %v3651_v62  ;;  %3684 = vmatpush1.bf16.msra.mxu0 %v3683_v50  ;;  %v568_v62 = vld [vmem:[#allocation9 + $0x268] sm:$0xff]  ;;  %v574_v50 = vld [vmem:[#allocation9 + $0x298] sm:$0xff] }
 0x159   : > { %3654 = vmatprep.subr.bf16.mxu1 %v3653_v47  ;;  %3686 = vmatprep.subr.bf16.mxu0 %v3685_v0  ;;  %v3661_v47 = vpack.c.bf16 %v572_v57, %v566_v32  ;;  %v3693_v0 = vpack.c.bf16 %v574_v50, %v568_v62  ;;  %v3663_v32 = vpack.c.bf16 %v571_v35, %v565_v34  ;;  %v579_v62 = vld [vmem:[#allocation9 + $0x2c0] sm:$0xff]  ;;  %v585_v50 = vld [vmem:[#allocation9 + $0x2f0] sm:$0xff]  ;;  %v5088_v35 = vld [vmem:[%s4759_s8 + $0x88] sm:$0xff] }
 0x15a   : > { %708 = vmatmul.mubr.f32.gmra.mrb[8].mxu0 %v5053_v37  ;;  %762 = vmatmul.mubr.f32.gmra.mrb[8].mxu1 %v5056_v39  ;;  %v3695_v57 = vpack.c.bf16 %v573_v36, %v567_v38 }
 0x15b   : > { %713 = vmatprep.mubr.f32.mxu0 %v6046_v43  ;;  %767 = vmatprep.mubr.f32.mxu1 %v6046_v43 }
 0x15c   : > { %3656 = vmatpush1.bf16.msra.mxu1 %v3655_v40  ;;  %3688 = vmatpush1.bf16.msra.mxu0 %v3687_v63  ;;  %v580_v40 = vld [vmem:[#allocation9 + $0x2c8] sm:$0xff]  ;;  %v586_v63 = vld [vmem:[#allocation9 + $0x2f8] sm:$0xff] }
 0x15d   : > { %3658 = vmatprep.subr.bf16.mxu1 %v3657_v58  ;;  %3690 = vmatprep.subr.bf16.mxu0 %v3689_v59  ;;  %v577_v58 = vld [vmem:[#allocation9 + $0x2b0] sm:$0xff]  ;;  %v3665_v59 = vpack.c.bf16 %v584_v30, %v578_v51  ;;  %v3697_v52 = vpack.c.bf16 %v586_v63, %v580_v40  ;;  %v3699_v30 = vpack.c.bf16 %v585_v50, %v579_v62 }
 0x15e   : > { %714 = vmatmul.mubr.f32.gmra.mrb[10].mxu0 %v5063_v53  ;;  %768 = vmatmul.mubr.f32.gmra.mrb[10].mxu1 %v5066_v42  ;;  %v3667_v34 = vpack.c.bf16 %v583_v60, %v577_v58  ;;  %v481_v51 = vld [vmem:[%s4759_s8 + $0x40] sm:$0xff] }
 0x15f   : > { %719 = vmatprep.mubr.f32.mxu0 %v6046_v43  ;;  %773 = vmatprep.mubr.f32.mxu1 %v6046_v43 }
 0x160   : > { %3660 = vmatpush1.bf16.msra.mxu1 %v3659_v31  ;;  %3692 = vmatpush1.bf16.msra.mxu0 %v3691_v33  ;;  %v480_v31 = vld [vmem:[%s4759_s8 + $0x38] sm:$0xff]  ;;  %v5081_v33 = vld [vmem:[%s4759_s8 + $0x80] sm:$0xff] }
 0x161   : > { %3662 = vmatprep.subr.bf16.mxu1 %v3661_v47  ;;  %3694 = vmatprep.subr.bf16.mxu0 %v3693_v0 }
 0x162   : > { %720 = vmatmul.mubr.f32.gmra.mrb[12].mxu0 %v479_v45  ;;  %774 = vmatmul.mubr.f32.gmra.mrb[12].mxu1 %v5074_v46 }
 0x163   : > { %725 = vmatprep.mubr.f32.mxu0 %v6046_v43  ;;  %779 = vmatprep.mubr.f32.mxu1 %v6046_v43 }
 0x164   : > { %3664 = vmatpush1.bf16.msra.mxu1 %v3663_v32  ;;  %3696 = vmatpush1.bf16.msra.mxu0 %v3695_v57 }
 0x165   : > { %3666 = vmatprep.subr.bf16.mxu1 %v3665_v59  ;;  %3698 = vmatprep.subr.bf16.mxu0 %v3697_v52 }
 0x166   : > { %726 = vmatmul.mubr.f32.gmra.mrb[14].mxu0 %v480_v31  ;;  %780 = vmatmul.mubr.f32.gmra.mrb[14].mxu1 %v5081_v33 }
 0x167   : > { %731 = vmatprep.mubr.f32.mxu0 %v6046_v43  ;;  %785 = vmatprep.mubr.f32.mxu1 %v6046_v43 }
 0x168   : > { %3668 = vmatpush1.bf16.msra.mxu1 %v3667_v34  ;;  %3700 = vmatpush1.bf16.msra.mxu0 %v3699_v30 }
 0x16a   : > { %732 = vmatmul.mubr.f32.gmra.mrb[16].mxu0 %v481_v51  ;;  %786 = vmatmul.mubr.f32.gmra.mrb[16].mxu1 %v5088_v35 }
 0x16b   : > { %856 = vmatprep.mubr.f32.mxu1 %v6046_v43  ;;  %1029 = vmatprep.mubr.f32.mxu0 %v6046_v43 }
 0x16e   : > { %857 = vmatmul.mubr.f32.vlgmr.msra.gmra.mrb[18].mxu1 %v5013_v44  ;;  %1030 = vmatmul.mubr.f32.vlgmr.msra.gmra.mrb[18].mxu0 %v5013_v44 }
 0x16f   : > { %862 = vmatprep.mubr.f32.mxu1 %v6046_v43  ;;  %1035 = vmatprep.mubr.f32.mxu0 %v6046_v43 }
 0x172   : > { %863 = vmatmul.mubr.f32.gmra.mrb[20].mxu1 %v5021_v48  ;;  %1036 = vmatmul.mubr.f32.gmra.mrb[20].mxu0 %v5021_v48  ;;  %v5160_v48 = vld [vmem:[#allocation10] sm:$0x3f] }
 0x173   : > { %868 = vmatprep.mubr.f32.mxu1 %v6046_v43  ;;  %1041 = vmatprep.mubr.f32.mxu0 %v6046_v43 }
 0x176   : > { %869 = vmatmul.mubr.f32.gmra.mrb[22].mxu1 %v5031_v54  ;;  %1042 = vmatmul.mubr.f32.gmra.mrb[22].mxu0 %v5031_v54 }
 0x177   : > { %874 = vmatprep.mubr.f32.mxu1 %v6046_v43  ;;  %1047 = vmatprep.mubr.f32.mxu0 %v6046_v43 }
 0x17a   : > { %875 = vmatmul.mubr.f32.gmra.mrb[24].mxu1 %v5041_v56  ;;  %1048 = vmatmul.mubr.f32.gmra.mrb[24].mxu0 %v5041_v56 }
 0x17b   : > { %880 = vmatprep.mubr.f32.mxu1 %v6046_v43  ;;  %1053 = vmatprep.mubr.f32.mxu0 %v6046_v43 }
 0x17e   : > { %881 = vmatmul.mubr.f32.gmra.mrb[26].mxu1 %v5053_v37  ;;  %1054 = vmatmul.mubr.f32.gmra.mrb[26].mxu0 %v5053_v37 }
 0x17f   : > { %886 = vmatprep.mubr.f32.mxu1 %v6046_v43  ;;  %1059 = vmatprep.mubr.f32.mxu0 %v6046_v43 }
 0x182   : > { %887 = vmatmul.mubr.f32.gmra.mrb[28].mxu1 %v5063_v53  ;;  %1060 = vmatmul.mubr.f32.gmra.mrb[28].mxu0 %v5063_v53 }
 0x183   : > { %892 = vmatprep.mubr.f32.mxu1 %v6046_v43  ;;  %1065 = vmatprep.mubr.f32.mxu0 %v6046_v43 }
 0x186   : > { %893 = vmatmul.mubr.f32.gmra.mrb[30].mxu1 %v479_v45  ;;  %1066 = vmatmul.mubr.f32.gmra.mrb[30].mxu0 %v479_v45 }
 0x187   : > { %898 = vmatprep.mubr.f32.mxu1 %v6046_v43  ;;  %1071 = vmatprep.mubr.f32.mxu0 %v6046_v43 }
 0x18a   : > { %899 = vmatmul.mubr.f32.gmra.mrb[32].mxu1 %v480_v31  ;;  %1072 = vmatmul.mubr.f32.gmra.mrb[32].mxu0 %v480_v31 }
 0x18b   : > { %904 = vmatprep.mubr.f32.mxu1 %v6046_v43  ;;  %1077 = vmatprep.mubr.f32.mxu0 %v6046_v43 }
 0x18e   : > { %905 = vmatmul.mubr.f32.gmra.mrb[34].mxu1 %v481_v51  ;;  %1078 = vmatmul.mubr.f32.gmra.mrb[34].mxu0 %v481_v51 }
 0x18f   : > { %910 = vmatprep.mubr.f32.mxu1 %v6046_v43  ;;  %1083 = vmatprep.mubr.f32.mxu0 %v6046_v43 }
 0x192   : > { %911 = vmatmul.mubr.f32.gmra.mrb[36].mxu1 %v5016_v49  ;;  %1084 = vmatmul.mubr.f32.gmra.mrb[36].mxu0 %v5016_v49 }
 0x193   : > { %916 = vmatprep.mubr.f32.mxu1 %v6046_v43  ;;  %1089 = vmatprep.mubr.f32.mxu0 %v6046_v43 }
 0x196   : > { %917 = vmatmul.mubr.f32.gmra.mrb[38].mxu1 %v5024_v55  ;;  %1090 = vmatmul.mubr.f32.gmra.mrb[38].mxu0 %v5024_v55 }
 0x197   : > { %922 = vmatprep.mubr.f32.mxu1 %v6046_v43  ;;  %1095 = vmatprep.mubr.f32.mxu0 %v6046_v43 }
 0x19a   : > { %923 = vmatmul.mubr.f32.gmra.mrb[40].mxu1 %v5034_v41  ;;  %1096 = vmatmul.mubr.f32.gmra.mrb[40].mxu0 %v5034_v41  ;;  %v589_v41 = vlaneseq }
 0x19b   : > { %928 = vmatprep.mubr.f32.mxu1 %v6046_v43  ;;  %1101 = vmatprep.mubr.f32.mxu0 %v6046_v43 }
 0x19c   : > { %v5157_v44 = vshrl.u32 %v589_v41, 7 }
 0x19e   : > { %929 = vmatmul.mubr.f32.gmra.mrb[42].mxu1 %v5044_v61  ;;  %1102 = vmatmul.mubr.f32.gmra.mrb[42].mxu0 %v5044_v61  ;;  %v591_v49 = vsub.s32 0, %v5157_v44  ;;  %v595_v55 = vsub.s32 1, %v5157_v44 }
 0x19f   : > { %934 = vmatprep.mubr.f32.mxu1 %v6046_v43  ;;  %1107 = vmatprep.mubr.f32.mxu0 %v6046_v43 }
 0x1a0   : > { %v5164_v54 = vrot.slane %v5160_v48, %v591_v49  ;;  %v5167_v56 = vrot.slane %v5160_v48, %v595_v55 }
 0x1a2   : > { %935 = vmatmul.mubr.f32.gmra.mrb[44].mxu1 %v5056_v39  ;;  %1108 = vmatmul.mubr.f32.gmra.mrb[44].mxu0 %v5056_v39 }
 0x1a3   : > { %940 = vmatprep.mubr.f32.mxu1 %v6046_v43  ;;  %1113 = vmatprep.mubr.f32.mxu0 %v6046_v43 }
 0x1a6   : > { %941 = vmatmul.mubr.f32.gmra.mrb[46].mxu1 %v5066_v42  ;;  %1114 = vmatmul.mubr.f32.gmra.mrb[46].mxu0 %v5066_v42 }
 0x1a7   : > { %946 = vmatprep.mubr.f32.mxu1 %v6046_v43  ;;  %1119 = vmatprep.mubr.f32.mxu0 %v6046_v43 }
 0x1aa   : > { %947 = vmatmul.mubr.f32.gmra.mrb[48].mxu1 %v5074_v46  ;;  %1120 = vmatmul.mubr.f32.gmra.mrb[48].mxu0 %v5074_v46 }
 0x1ab   : > { %952 = vmatprep.mubr.f32.mxu1 %v6046_v43  ;;  %1125 = vmatprep.mubr.f32.mxu0 %v6046_v43 }
 0x1ae   : > { %953 = vmatmul.mubr.f32.gmra.mrb[50].mxu1 %v5081_v33  ;;  %1126 = vmatmul.mubr.f32.gmra.mrb[50].mxu0 %v5081_v33 }
 0x1af   : > { %958 = vmatprep.mubr.f32.mxu1 %v6046_v43  ;;  %1131 = vmatprep.mubr.f32.mxu0 %v6046_v43 }
 0x1b2   : > { %959 = vmatmul.mubr.f32.gmra.mrb[52].mxu1 %v5088_v35  ;;  %1132 = vmatmul.mubr.f32.gmra.mrb[52].mxu0 %v5088_v35 }
 0x21d   : > { %v685_v43 = vpop.f32.mrb[0].mxu0  ;;  %v739_v61 = vpop.f32.mrb[0].mxu1 }
 0x21e   : > { %v686_v37 = vadd.f32 %v685_v43, %v5164_v54  ;;  %v740_v39 = vadd.f32 %v739_v61, %v5164_v54  ;;  %v687_v53 = vpop.f32.mrb[1].mxu0  ;;  %v741_v42 = vpop.f32.mrb[1].mxu1 }
 0x21f   : > { %v688_v47 = vadd.f32 %v687_v53, %v5167_v56  ;;  %v742_v0 = vadd.f32 %v741_v42, %v5167_v56 }
 0x220   : > { %1138 = vst [vmem:[#allocation2] sm:$0xff] %v686_v37  ;;  %1192 = vst [vmem:[#allocation2 + $0x1b0] sm:$0xff] %v740_v39 }
 0x221   : > { %1139 = vst [vmem:[#allocation2 + $0x8] sm:$0xff] %v688_v47  ;;  %1193 = vst [vmem:[#allocation2 + $0x1b8] sm:$0xff] %v742_v0  ;;  %v691_v38 = vpop.f32.mrb[2].mxu0  ;;  %v745_v36 = vpop.f32.mrb[2].mxu1 }
 0x222   : > { %v692_v40 = vadd.f32 %v691_v38, %v5164_v54  ;;  %v746_v63 = vadd.f32 %v745_v36, %v5164_v54  ;;  %v693_v45 = vpop.f32.mrb[3].mxu0  ;;  %v747_v46 = vpop.f32.mrb[3].mxu1 }
 0x223   : > { %v694_v32 = vadd.f32 %v693_v45, %v5167_v56  ;;  %v748_v57 = vadd.f32 %v747_v46, %v5167_v56 }
 0x224   : > { %1144 = vst [vmem:[#allocation2 + $0x30] sm:$0xff] %v692_v40  ;;  %1198 = vst [vmem:[#allocation2 + $0x1e0] sm:$0xff] %v746_v63 }
 0x225   : > { %1145 = vst [vmem:[#allocation2 + $0x38] sm:$0xff] %v694_v32  ;;  %1199 = vst [vmem:[#allocation2 + $0x1e8] sm:$0xff] %v748_v57  ;;  %v697_v58 = vpop.f32.mrb[4].mxu0  ;;  %v751_v59 = vpop.f32.mrb[4].mxu1 }
 0x226   : > { %v698_v52 = vadd.f32 %v697_v58, %v5164_v54  ;;  %v752_v60 = vadd.f32 %v751_v59, %v5164_v54  ;;  %v699_v62 = vpop.f32.mrb[5].mxu0  ;;  %v753_v50 = vpop.f32.mrb[5].mxu1 }
 0x227   : > { %v700_v31 = vadd.f32 %v699_v62, %v5167_v56  ;;  %v754_v33 = vadd.f32 %v753_v50, %v5167_v56 }
 0x228   : > { %1150 = vst [vmem:[#allocation2 + $0x60] sm:$0xff] %v698_v52  ;;  %1204 = vst [vmem:[#allocation2 + $0x210] sm:$0xff] %v752_v60 }
 0x229   : > { %1151 = vst [vmem:[#allocation2 + $0x68] sm:$0xff] %v700_v31  ;;  %1205 = vst [vmem:[#allocation2 + $0x218] sm:$0xff] %v754_v33  ;;  %v703_v34 = vpop.f32.mrb[6].mxu0  ;;  %v757_v30 = vpop.f32.mrb[6].mxu1 }
 0x22a   : > { %v704_v51 = vadd.f32 %v703_v34, %v5164_v54  ;;  %v758_v35 = vadd.f32 %v757_v30, %v5164_v54  ;;  %v705_v41 = vpop.f32.mrb[7].mxu0  ;;  %v759_v49 = vpop.f32.mrb[7].mxu1 }
 0x22b   : > { %v706_v55 = vadd.f32 %v705_v41, %v5167_v56  ;;  %v760_v43 = vadd.f32 %v759_v49, %v5167_v56 }
 0x22c   : > { %1156 = vst [vmem:[#allocation2 + $0x90] sm:$0xff] %v704_v51  ;;  %1210 = vst [vmem:[#allocation2 + $0x240] sm:$0xff] %v758_v35 }
 0x22d   : > { %1157 = vst [vmem:[#allocation2 + $0x98] sm:$0xff] %v706_v55  ;;  %1211 = vst [vmem:[#allocation2 + $0x248] sm:$0xff] %v760_v43  ;;  %v709_v61 = vpop.f32.mrb[8].mxu0  ;;  %v763_v37 = vpop.f32.mrb[8].mxu1  ;;  %v599_v43 = vsub.s32 2, %v5157_v44 }
 0x22e   : > { %v710_v39 = vadd.f32 %v709_v61, %v5164_v54  ;;  %v764_v53 = vadd.f32 %v763_v37, %v5164_v54  ;;  %v711_v42 = vpop.f32.mrb[9].mxu0  ;;  %v765_v47 = vpop.f32.mrb[9].mxu1  ;;  %v607_v61 = vsub.s32 4, %v5157_v44 }
 0x22f   : > { %v712_v0 = vadd.f32 %v711_v42, %v5167_v56  ;;  %v766_v38 = vadd.f32 %v765_v47, %v5167_v56  ;;  %v611_v42 = vsub.s32 5, %v5157_v44 }
 0x230   : > { %1162 = vst [vmem:[#allocation2 + $0xc0] sm:$0xff] %v710_v39  ;;  %1216 = vst [vmem:[#allocation2 + $0x270] sm:$0xff] %v764_v53  ;;  %v603_v53 = vsub.s32 3, %v5157_v44 }
 0x231   : > { %1163 = vst [vmem:[#allocation2 + $0xc8] sm:$0xff] %v712_v0  ;;  %1217 = vst [vmem:[#allocation2 + $0x278] sm:$0xff] %v766_v38  ;;  %v715_v36 = vpop.f32.mrb[10].mxu0  ;;  %v769_v40 = vpop.f32.mrb[10].mxu1 }
 0x232   : > { %v716_v63 = vadd.f32 %v715_v36, %v5164_v54  ;;  %v770_v45 = vadd.f32 %v769_v40, %v5164_v54  ;;  %v717_v46 = vpop.f32.mrb[11].mxu0  ;;  %v771_v32 = vpop.f32.mrb[11].mxu1 }
 0x233   : > { %v718_v57 = vadd.f32 %v717_v46, %v5167_v56  ;;  %v772_v58 = vadd.f32 %v771_v32, %v5167_v56  ;;  %v5211_v46 = vrot.slane %v5160_v48, %v607_v61 }
 0x234   : > { %1168 = vst [vmem:[#allocation2 + $0xf0] sm:$0xff] %v716_v63  ;;  %1222 = vst [vmem:[#allocation2 + $0x2a0] sm:$0xff] %v770_v45  ;;  %v5208_v45 = vrot.slane %v5160_v48, %v599_v43 }
 0x235   : > { %1169 = vst [vmem:[#allocation2 + $0xf8] sm:$0xff] %v718_v57  ;;  %1223 = vst [vmem:[#allocation2 + $0x2a8] sm:$0xff] %v772_v58  ;;  %v721_v59 = vpop.f32.mrb[12].mxu0  ;;  %v775_v52 = vpop.f32.mrb[12].mxu1  ;;  %v5216_v58 = vrot.slane %v5160_v48, %v603_v53 }
 0x236   : > { %v722_v60 = vadd.f32 %v721_v59, %v5164_v54  ;;  %v776_v62 = vadd.f32 %v775_v52, %v5164_v54  ;;  %v723_v50 = vpop.f32.mrb[13].mxu0  ;;  %v777_v31 = vpop.f32.mrb[13].mxu1  ;;  %v5219_v59 = vrot.slane %v5160_v48, %v611_v42 }
 0x237   : > { %v724_v33 = vadd.f32 %v723_v50, %v5167_v56  ;;  %v778_v34 = vadd.f32 %v777_v31, %v5167_v56 }
 0x238   : > { %1174 = vst [vmem:[#allocation2 + $0x120] sm:$0xff] %v722_v60  ;;  %1228 = vst [vmem:[#allocation2 + $0x2d0] sm:$0xff] %v776_v62 }
 0x239   : > { %1175 = vst [vmem:[#allocation2 + $0x128] sm:$0xff] %v724_v33  ;;  %1229 = vst [vmem:[#allocation2 + $0x2d8] sm:$0xff] %v778_v34  ;;  %v727_v30 = vpop.f32.mrb[14].mxu0  ;;  %v781_v51 = vpop.f32.mrb[14].mxu1 }
 0x23a   : > { %v728_v35 = vadd.f32 %v727_v30, %v5164_v54  ;;  %v782_v41 = vadd.f32 %v781_v51, %v5164_v54  ;;  %v729_v49 = vpop.f32.mrb[15].mxu0  ;;  %v783_v55 = vpop.f32.mrb[15].mxu1 }
 0x23b   : > { %v730_v37 = vadd.f32 %v729_v49, %v5167_v56  ;;  %v784_v39 = vadd.f32 %v783_v55, %v5167_v56 }
 0x23c   : > { %1180 = vst [vmem:[#allocation2 + $0x150] sm:$0xff] %v728_v35  ;;  %1234 = vst [vmem:[#allocation2 + $0x300] sm:$0xff] %v782_v41 }
 0x23d   : > { %1181 = vst [vmem:[#allocation2 + $0x158] sm:$0xff] %v730_v37  ;;  %1235 = vst [vmem:[#allocation2 + $0x308] sm:$0xff] %v784_v39  ;;  %v733_v47 = vpop.f32.mrb[16].mxu0  ;;  %v787_v0 = vpop.f32.mrb[16].mxu1 }
 0x23e   : > { %v734_v38 = vadd.f32 %v733_v47, %v5164_v54  ;;  %v788_v36 = vadd.f32 %v787_v0, %v5164_v54  ;;  %v735_v40 = vpop.f32.mrb[17].mxu0  ;;  %v789_v63 = vpop.f32.mrb[17].mxu1 }
 0x23f   : > { %v736_v32 = vadd.f32 %v735_v40, %v5167_v56  ;;  %v790_v57 = vadd.f32 %v789_v63, %v5167_v56 }
 0x240   : > { %1186 = vst [vmem:[#allocation2 + $0x180] sm:$0xff] %v734_v38  ;;  %1240 = vst [vmem:[#allocation2 + $0x330] sm:$0xff] %v788_v36 }
 0x241   : > { %1187 = vst [vmem:[#allocation2 + $0x188] sm:$0xff] %v736_v32  ;;  %1241 = vst [vmem:[#allocation2 + $0x338] sm:$0xff] %v790_v57  ;;  %v858_v54 = vpop.f32.mrb[18].mxu1  ;;  %v1031_v52 = vpop.f32.mrb[18].mxu0 }
 0x242   : > { %v859_v60 = vadd.f32 %v858_v54, %v5208_v45  ;;  %v1032_v62 = vadd.f32 %v1031_v52, %v5211_v46  ;;  %v860_v50 = vpop.f32.mrb[19].mxu1  ;;  %v1033_v31 = vpop.f32.mrb[19].mxu0 }
 0x243   : > { %v861_v56 = vadd.f32 %v860_v50, %v5216_v58  ;;  %v1034_v33 = vadd.f32 %v1033_v31, %v5219_v59 }
 0x244   : > { %1140 = vst [vmem:[#allocation2 + $0x10] sm:$0xff] %v859_v60  ;;  %1142 = vst [vmem:[#allocation2 + $0x20] sm:$0xff] %v1032_v62 }
 0x245   : > { %1141 = vst [vmem:[#allocation2 + $0x18] sm:$0xff] %v861_v56  ;;  %1143 = vst [vmem:[#allocation2 + $0x28] sm:$0xff] %v1034_v33  ;;  %v864_v48 = vpop.f32.mrb[20].mxu1  ;;  %v1037_v34 = vpop.f32.mrb[20].mxu0 }
 0x246   : > { %v865_v30 = vadd.f32 %v864_v48, %v5208_v45  ;;  %v1038_v51 = vadd.f32 %v1037_v34, %v5211_v46  ;;  %v866_v35 = vpop.f32.mrb[21].mxu1  ;;  %v1039_v41 = vpop.f32.mrb[21].mxu0 }
 0x247   : > { %v867_v49 = vadd.f32 %v866_v35, %v5216_v58  ;;  %v1040_v55 = vadd.f32 %v1039_v41, %v5219_v59 }
 0x248   : > { %1146 = vst [vmem:[#allocation2 + $0x40] sm:$0xff] %v865_v30  ;;  %1148 = vst [vmem:[#allocation2 + $0x50] sm:$0xff] %v1038_v51 }
 0x249   : > { %1147 = vst [vmem:[#allocation2 + $0x48] sm:$0xff] %v867_v49  ;;  %1149 = vst [vmem:[#allocation2 + $0x58] sm:$0xff] %v1040_v55  ;;  %v870_v43 = vpop.f32.mrb[22].mxu1  ;;  %v1043_v61 = vpop.f32.mrb[22].mxu0 }
 0x24a   : > { %v871_v37 = vadd.f32 %v870_v43, %v5208_v45  ;;  %v1044_v39 = vadd.f32 %v1043_v61, %v5211_v46  ;;  %v872_v53 = vpop.f32.mrb[23].mxu1  ;;  %v1045_v42 = vpop.f32.mrb[23].mxu0 }
 0x24b   : > { %v873_v47 = vadd.f32 %v872_v53, %v5216_v58  ;;  %v1046_v0 = vadd.f32 %v1045_v42, %v5219_v59 }
 0x24c   : > { %1152 = vst [vmem:[#allocation2 + $0x70] sm:$0xff] %v871_v37  ;;  %1154 = vst [vmem:[#allocation2 + $0x80] sm:$0xff] %v1044_v39 }
 0x24d   : > { %1153 = vst [vmem:[#allocation2 + $0x78] sm:$0xff] %v873_v47  ;;  %1155 = vst [vmem:[#allocation2 + $0x88] sm:$0xff] %v1046_v0  ;;  %v876_v38 = vpop.f32.mrb[24].mxu1  ;;  %v1049_v36 = vpop.f32.mrb[24].mxu0 }
 0x24e   : > { %v877_v40 = vadd.f32 %v876_v38, %v5208_v45  ;;  %v1050_v63 = vadd.f32 %v1049_v36, %v5211_v46  ;;  %v878_v32 = vpop.f32.mrb[25].mxu1  ;;  %v1051_v57 = vpop.f32.mrb[25].mxu0 }
 0x24f   : > { %v879_v54 = vadd.f32 %v878_v32, %v5216_v58  ;;  %v1052_v52 = vadd.f32 %v1051_v57, %v5219_v59 }
 0x250   : > { %1158 = vst [vmem:[#allocation2 + $0xa0] sm:$0xff] %v877_v40  ;;  %1160 = vst [vmem:[#allocation2 + $0xb0] sm:$0xff] %v1050_v63 }
 0x251   : > { %1159 = vst [vmem:[#allocation2 + $0xa8] sm:$0xff] %v879_v54  ;;  %1161 = vst [vmem:[#allocation2 + $0xb8] sm:$0xff] %v1052_v52  ;;  %v882_v60 = vpop.f32.mrb[26].mxu1  ;;  %v1055_v62 = vpop.f32.mrb[26].mxu0 }
 0x252   : > { %v883_v50 = vadd.f32 %v882_v60, %v5208_v45  ;;  %v1056_v31 = vadd.f32 %v1055_v62, %v5211_v46  ;;  %v884_v56 = vpop.f32.mrb[27].mxu1  ;;  %v1057_v33 = vpop.f32.mrb[27].mxu0 }
 0x253   : > { %v885_v48 = vadd.f32 %v884_v56, %v5216_v58  ;;  %v1058_v34 = vadd.f32 %v1057_v33, %v5219_v59 }
 0x254   : > { %1164 = vst [vmem:[#allocation2 + $0xd0] sm:$0xff] %v883_v50  ;;  %1166 = vst [vmem:[#allocation2 + $0xe0] sm:$0xff] %v1056_v31 }
 0x255   : > { %1165 = vst [vmem:[#allocation2 + $0xd8] sm:$0xff] %v885_v48  ;;  %1167 = vst [vmem:[#allocation2 + $0xe8] sm:$0xff] %v1058_v34  ;;  %v888_v30 = vpop.f32.mrb[28].mxu1  ;;  %v1061_v51 = vpop.f32.mrb[28].mxu0 }
 0x256   : > { %v889_v35 = vadd.f32 %v888_v30, %v5208_v45  ;;  %v1062_v41 = vadd.f32 %v1061_v51, %v5211_v46  ;;  %v890_v49 = vpop.f32.mrb[29].mxu1  ;;  %v1063_v55 = vpop.f32.mrb[29].mxu0 }
 0x257   : > { %v891_v43 = vadd.f32 %v890_v49, %v5216_v58  ;;  %v1064_v61 = vadd.f32 %v1063_v55, %v5219_v59 }
 0x258   : > { %1170 = vst [vmem:[#allocation2 + $0x100] sm:$0xff] %v889_v35  ;;  %1172 = vst [vmem:[#allocation2 + $0x110] sm:$0xff] %v1062_v41 }
 0x259   : > { %1171 = vst [vmem:[#allocation2 + $0x108] sm:$0xff] %v891_v43  ;;  %1173 = vst [vmem:[#allocation2 + $0x118] sm:$0xff] %v1064_v61  ;;  %v894_v37 = vpop.f32.mrb[30].mxu1  ;;  %v1067_v39 = vpop.f32.mrb[30].mxu0 }
 0x25a   : > { %v895_v53 = vadd.f32 %v894_v37, %v5208_v45  ;;  %v1068_v42 = vadd.f32 %v1067_v39, %v5211_v46  ;;  %v896_v47 = vpop.f32.mrb[31].mxu1  ;;  %v1069_v0 = vpop.f32.mrb[31].mxu0 }
 0x25b   : > { %v897_v38 = vadd.f32 %v896_v47, %v5216_v58  ;;  %v1070_v36 = vadd.f32 %v1069_v0, %v5219_v59 }
 0x25c   : > { %1176 = vst [vmem:[#allocation2 + $0x130] sm:$0xff] %v895_v53  ;;  %1178 = vst [vmem:[#allocation2 + $0x140] sm:$0xff] %v1068_v42 }
 0x25d   : > { %1177 = vst [vmem:[#allocation2 + $0x138] sm:$0xff] %v897_v38  ;;  %1179 = vst [vmem:[#allocation2 + $0x148] sm:$0xff] %v1070_v36  ;;  %v900_v40 = vpop.f32.mrb[32].mxu1  ;;  %v1073_v63 = vpop.f32.mrb[32].mxu0 }
 0x25e   : > { %v901_v32 = vadd.f32 %v900_v40, %v5208_v45  ;;  %v1074_v57 = vadd.f32 %v1073_v63, %v5211_v46  ;;  %v902_v54 = vpop.f32.mrb[33].mxu1  ;;  %v1075_v52 = vpop.f32.mrb[33].mxu0 }
 0x25f   : > { %v903_v60 = vadd.f32 %v902_v54, %v5216_v58  ;;  %v1076_v62 = vadd.f32 %v1075_v52, %v5219_v59 }
 0x260   : > { %1182 = vst [vmem:[#allocation2 + $0x160] sm:$0xff] %v901_v32  ;;  %1184 = vst [vmem:[#allocation2 + $0x170] sm:$0xff] %v1074_v57 }
 0x261   : > { %1183 = vst [vmem:[#allocation2 + $0x168] sm:$0xff] %v903_v60  ;;  %1185 = vst [vmem:[#allocation2 + $0x178] sm:$0xff] %v1076_v62  ;;  %v906_v50 = vpop.f32.mrb[34].mxu1  ;;  %v1079_v31 = vpop.f32.mrb[34].mxu0 }
 0x262   : > { %v907_v56 = vadd.f32 %v906_v50, %v5208_v45  ;;  %v1080_v33 = vadd.f32 %v1079_v31, %v5211_v46  ;;  %v908_v48 = vpop.f32.mrb[35].mxu1  ;;  %v1081_v34 = vpop.f32.mrb[35].mxu0 }
 0x263   : > { %v909_v30 = vadd.f32 %v908_v48, %v5216_v58  ;;  %v1082_v51 = vadd.f32 %v1081_v34, %v5219_v59 }
 0x264   : > { %1188 = vst [vmem:[#allocation2 + $0x190] sm:$0xff] %v907_v56  ;;  %1190 = vst [vmem:[#allocation2 + $0x1a0] sm:$0xff] %v1080_v33 }
 0x265   : > { %1189 = vst [vmem:[#allocation2 + $0x198] sm:$0xff] %v909_v30  ;;  %1191 = vst [vmem:[#allocation2 + $0x1a8] sm:$0xff] %v1082_v51  ;;  %v912_v35 = vpop.f32.mrb[36].mxu1  ;;  %v1085_v41 = vpop.f32.mrb[36].mxu0 }
 0x266   : > { %v913_v49 = vadd.f32 %v912_v35, %v5208_v45  ;;  %v1086_v55 = vadd.f32 %v1085_v41, %v5211_v46  ;;  %v914_v43 = vpop.f32.mrb[37].mxu1  ;;  %v1087_v61 = vpop.f32.mrb[37].mxu0 }
 0x267   : > { %v915_v37 = vadd.f32 %v914_v43, %v5216_v58  ;;  %v1088_v39 = vadd.f32 %v1087_v61, %v5219_v59 }
 0x268   : > { %1194 = vst [vmem:[#allocation2 + $0x1c0] sm:$0xff] %v913_v49  ;;  %1196 = vst [vmem:[#allocation2 + $0x1d0] sm:$0xff] %v1086_v55 }
 0x269   : > { %1195 = vst [vmem:[#allocation2 + $0x1c8] sm:$0xff] %v915_v37  ;;  %1197 = vst [vmem:[#allocation2 + $0x1d8] sm:$0xff] %v1088_v39  ;;  %v918_v53 = vpop.f32.mrb[38].mxu1  ;;  %v1091_v42 = vpop.f32.mrb[38].mxu0 }
 0x26a   : > { %v919_v47 = vadd.f32 %v918_v53, %v5208_v45  ;;  %v1092_v0 = vadd.f32 %v1091_v42, %v5211_v46  ;;  %v920_v38 = vpop.f32.mrb[39].mxu1  ;;  %v1093_v36 = vpop.f32.mrb[39].mxu0 }
 0x26b   : > { %v921_v40 = vadd.f32 %v920_v38, %v5216_v58  ;;  %v1094_v63 = vadd.f32 %v1093_v36, %v5219_v59 }
 0x26c   : > { %1200 = vst [vmem:[#allocation2 + $0x1f0] sm:$0xff] %v919_v47  ;;  %1202 = vst [vmem:[#allocation2 + $0x200] sm:$0xff] %v1092_v0 }
 0x26d   : > { %1201 = vst [vmem:[#allocation2 + $0x1f8] sm:$0xff] %v921_v40  ;;  %1203 = vst [vmem:[#allocation2 + $0x208] sm:$0xff] %v1094_v63  ;;  %v924_v32 = vpop.f32.mrb[40].mxu1  ;;  %v1097_v57 = vpop.f32.mrb[40].mxu0 }
 0x26e   : > { %v925_v54 = vadd.f32 %v924_v32, %v5208_v45  ;;  %v1098_v52 = vadd.f32 %v1097_v57, %v5211_v46  ;;  %v926_v60 = vpop.f32.mrb[41].mxu1  ;;  %v1099_v62 = vpop.f32.mrb[41].mxu0 }
 0x26f   : > { %v927_v50 = vadd.f32 %v926_v60, %v5216_v58  ;;  %v1100_v31 = vadd.f32 %v1099_v62, %v5219_v59 }
 0x270   : > { %1206 = vst [vmem:[#allocation2 + $0x220] sm:$0xff] %v925_v54  ;;  %1208 = vst [vmem:[#allocation2 + $0x230] sm:$0xff] %v1098_v52 }
 0x271   : > { %1207 = vst [vmem:[#allocation2 + $0x228] sm:$0xff] %v927_v50  ;;  %1209 = vst [vmem:[#allocation2 + $0x238] sm:$0xff] %v1100_v31  ;;  %v930_v56 = vpop.f32.mrb[42].mxu1  ;;  %v1103_v33 = vpop.f32.mrb[42].mxu0 }
 0x272   : > { %v931_v48 = vadd.f32 %v930_v56, %v5208_v45  ;;  %v1104_v34 = vadd.f32 %v1103_v33, %v5211_v46  ;;  %v932_v30 = vpop.f32.mrb[43].mxu1  ;;  %v1105_v51 = vpop.f32.mrb[43].mxu0 }
 0x273   : > { %v933_v35 = vadd.f32 %v932_v30, %v5216_v58  ;;  %v1106_v41 = vadd.f32 %v1105_v51, %v5219_v59 }
 0x274   : > { %1212 = vst [vmem:[#allocation2 + $0x250] sm:$0xff] %v931_v48  ;;  %1214 = vst [vmem:[#allocation2 + $0x260] sm:$0xff] %v1104_v34 }
 0x275   : > { %1213 = vst [vmem:[#allocation2 + $0x258] sm:$0xff] %v933_v35  ;;  %1215 = vst [vmem:[#allocation2 + $0x268] sm:$0xff] %v1106_v41  ;;  %v936_v49 = vpop.f32.mrb[44].mxu1  ;;  %v1109_v55 = vpop.f32.mrb[44].mxu0 }
 0x276   : > { %v937_v43 = vadd.f32 %v936_v49, %v5208_v45  ;;  %v1110_v61 = vadd.f32 %v1109_v55, %v5211_v46  ;;  %v938_v37 = vpop.f32.mrb[45].mxu1  ;;  %v1111_v39 = vpop.f32.mrb[45].mxu0 }
 0x277   : > { %v939_v53 = vadd.f32 %v938_v37, %v5216_v58  ;;  %v1112_v42 = vadd.f32 %v1111_v39, %v5219_v59 }
 0x278   : > { %1218 = vst [vmem:[#allocation2 + $0x280] sm:$0xff] %v937_v43  ;;  %1220 = vst [vmem:[#allocation2 + $0x290] sm:$0xff] %v1110_v61 }
 0x279   : > { %1219 = vst [vmem:[#allocation2 + $0x288] sm:$0xff] %v939_v53  ;;  %1221 = vst [vmem:[#allocation2 + $0x298] sm:$0xff] %v1112_v42  ;;  %v942_v47 = vpop.f32.mrb[46].mxu1  ;;  %v1115_v0 = vpop.f32.mrb[46].mxu0 }
 0x27a   : > { %v943_v38 = vadd.f32 %v942_v47, %v5208_v45  ;;  %v1116_v36 = vadd.f32 %v1115_v0, %v5211_v46  ;;  %v944_v40 = vpop.f32.mrb[47].mxu1  ;;  %v1117_v63 = vpop.f32.mrb[47].mxu0 }
 0x27b   : > { %v945_v32 = vadd.f32 %v944_v40, %v5216_v58  ;;  %v1118_v57 = vadd.f32 %v1117_v63, %v5219_v59 }
 0x27c   : > { %1224 = vst [vmem:[#allocation2 + $0x2b0] sm:$0xff] %v943_v38  ;;  %1226 = vst [vmem:[#allocation2 + $0x2c0] sm:$0xff] %v1116_v36  ;;  %v5297_v38 = vmov 0.0   ;;  %v5299_v36 = vmov 0.0  }
 0x27d   : > { %1225 = vst [vmem:[#allocation2 + $0x2b8] sm:$0xff] %v945_v32  ;;  %1227 = vst [vmem:[#allocation2 + $0x2c8] sm:$0xff] %v1118_v57  ;;  %v948_v54 = vpop.f32.mrb[48].mxu1  ;;  %v1121_v52 = vpop.f32.mrb[48].mxu0 }
 0x27e   : > { %v949_v60 = vadd.f32 %v948_v54, %v5208_v45  ;;  %v1122_v62 = vadd.f32 %v1121_v52, %v5211_v46  ;;  %v950_v50 = vpop.f32.mrb[49].mxu1  ;;  %v1123_v31 = vpop.f32.mrb[49].mxu0 }
 0x27f   : > { %v951_v56 = vadd.f32 %v950_v50, %v5216_v58  ;;  %v1124_v33 = vadd.f32 %v1123_v31, %v5219_v59 }
 0x280   : > { %1230 = vst [vmem:[#allocation2 + $0x2e0] sm:$0xff] %v949_v60  ;;  %1232 = vst [vmem:[#allocation2 + $0x2f0] sm:$0xff] %v1122_v62 }
 0x281   : > { %1231 = vst [vmem:[#allocation2 + $0x2e8] sm:$0xff] %v951_v56  ;;  %1233 = vst [vmem:[#allocation2 + $0x2f8] sm:$0xff] %v1124_v33  ;;  %v954_v48 = vpop.f32.mrb[50].mxu1  ;;  %v1127_v34 = vpop.f32.mrb[50].mxu0 }
 0x282   : > { %v955_v30 = vadd.f32 %v954_v48, %v5208_v45  ;;  %v1128_v51 = vadd.f32 %v1127_v34, %v5211_v46  ;;  %v956_v35 = vpop.f32.mrb[51].mxu1  ;;  %v1129_v41 = vpop.f32.mrb[51].mxu0 }
 0x283   : > { %v957_v49 = vadd.f32 %v956_v35, %v5216_v58  ;;  %v1130_v55 = vadd.f32 %v1129_v41, %v5219_v59 }
 0x284   : > { %1236 = vst [vmem:[#allocation2 + $0x310] sm:$0xff] %v955_v30  ;;  %1238 = vst [vmem:[#allocation2 + $0x320] sm:$0xff] %v1128_v51 }
 0x285   : > { %1237 = vst [vmem:[#allocation2 + $0x318] sm:$0xff] %v957_v49  ;;  %1239 = vst [vmem:[#allocation2 + $0x328] sm:$0xff] %v1130_v55  ;;  %v960_v43 = vpop.f32.mrb[52].mxu1  ;;  %v1133_v61 = vpop.f32.mrb[52].mxu0 }
 0x286   : > { %v961_v37 = vadd.f32 %v960_v43, %v5208_v45  ;;  %v1134_v39 = vadd.f32 %v1133_v61, %v5211_v46  ;;  %v962_v53 = vpop.f32.mrb[53].mxu1  ;;  %v1135_v42 = vpop.f32.mrb[53].mxu0  ;;  %v5301_v45 = vmov 0.0   ;;  %v5303_v46 = vmov 0.0  }
 0x287   : > { %v963_v47 = vadd.f32 %v962_v53, %v5216_v58  ;;  %v1136_v0 = vadd.f32 %v1135_v42, %v5219_v59 }
 0x288   : > { %1242 = vst [vmem:[#allocation2 + $0x340] sm:$0xff] %v961_v37  ;;  %1244 = vst [vmem:[#allocation2 + $0x350] sm:$0xff] %v1134_v39 }
 0x289   : > { %1243 = vst [vmem:[#allocation2 + $0x348] sm:$0xff] %v963_v47  ;;  %1245 = vst [vmem:[#allocation2 + $0x358] sm:$0xff] %v1136_v0 }
 0x28a LB: >> { %v3701_v58 = vpack.c.bf16 %v4818_v5, %v4812_v2  ;;  %v3703_v59 = vpack.c.bf16 %v4816_v4, %v4810_v1  ;;  %v3705_v40 = vpack.c.bf16 %v4830_v11, %v4824_v8  ;;  %v3707_v63 = vpack.c.bf16 %v4828_v10, %v4822_v7  ;;  %3567 = vmatprep.mubr.f32.mxu1 %v4412_v46  ;;  %s1618_s11 = ssub.s32 8, %s4416_s22  ;;  %v6047_v34 = vld [vmem:[#allocation33_spill] sm:$0xff]  ;;  %v6048_v41 = vld [vmem:[#allocation102_spill] sm:$0xff]  ;;  %v6049_v49 = vld [vmem:[#allocation103_spill] sm:$0xff]  ;;  %s3403_s26 = sshll.u32 %s4416_s22, 4  ;;  %s4416_s22 = sphi %s5305_s22, %s1381_s22   ;;  %v4412_v46 = vphi %v5303_v46, %v5467_v46   ;;  %v4408_v45 = vphi %v5301_v45, %v1608_v45   ;;  %v4404_v36 = vphi %v5299_v36, %v1840_v36   ;;  %v4400_v38 = vphi %v5297_v38, %v1841_v38  }
 0x28b   : >> { %v3733_v32 = vpack.c.bf16 %v4820_v6, %v4814_v3  ;;  %v3709_v57 = vpack.c.bf16 %v4842_v17, %v4836_v14  ;;  %v3737_v54 = vpack.c.bf16 %v4832_v12, %v4826_v9  ;;  %v4438_v52 = vmov 0.0   ;;  %v6050_v55 = vld [vmem:[#allocation35_spill] sm:$0xff]  ;;  %v6051_v43 = vld [vmem:[#allocation38_spill] sm:$0xff]  ;;  %v6053_v0 = vld [vmem:[#allocation37_spill] sm:$0xff]  ;;  %s1387_s18 = sshra.s32 %s3403_s26, 3  ;;  %s5449_s13 = sshll.u32 %s1618_s11, 4 }
 0x28c   : >> { %3702 = vmatprep.subr.bf16.mxu0 %v3701_v58  ;;  %1462 = vmatprep.mubr.f32.mxu0 %v4438_v52  ;;  %v3711_v60 = vpack.c.bf16 %v4840_v16, %v4834_v13  ;;  %v3741_v62 = vpack.c.bf16 %v4844_v18, %v4838_v15  ;;  %v3713_v50 = vpack.c.bf16 %v4854_v23, %v4848_v20  ;;  %v1594_v51 = vstv %s4416_s22  ;;  %v6052_v47 = vld [vmem:[#allocation34_spill] sm:$0xff]  ;;  %s3495_s27 = smul.u32 48, %s1387_s18  ;;  %s1620_s24 = sshra.s32 %s5449_s13, 3 }
 0x28d   : >> { %3704 = vmatpush1.bf16.msra.mxu0 %v3703_v59  ;;  %3734 = vmatprep.subr.bf16.mxu1 %v3733_v32  ;;  %v3715_v31 = vpack.c.bf16 %v4852_v22, %v4846_v19  ;;  %v3745_v56 = vpack.c.bf16 %v4856_v24, %v4850_v21  ;;  %v3717_v33 = vpack.c.bf16 %v4866_v29, %v4860_v26  ;;  %v1827_v35 = vstv %s1618_s11  ;;  %v6054_v59 = vld [vmem:[#allocation36_spill] sm:$0xff]  ;;  %s3496_s10 = smul.u32 48, %s1620_s24  ;;  %s1609_s20 = scalar_lea.vmem [#allocation3], %s3403_s26 }
 0x28e   : >> { %3706 = vmatprep.subr.bf16.mxu0 %v3705_v40  ;;  %3736 = vmatpush3.bf16.msra.mxu1 %v3733_v32  ;;  %v3719_v48 = vpack.c.bf16 %v4864_v28, %v4858_v25  ;;  %v3749_v30 = vpack.c.bf16 %v6047_v34, %v4862_v27  ;;  %vm1595_vm0 = vcmp.lt.s32.totalorder %v1594_v51, %v6048_v41  ;;  %v4439_v37 = vmov 0   ;;  %v6055_v40 = vld [vmem:[#allocation39_spill] sm:$0xff]  ;;  %s5441_s12 = scalar_lea.vmem [#allocation2], %s3495_s27  ;;  %s1842_s8 = scalar_lea.vmem [#allocation3], %s5449_s13 }
 0x28f   : >> { %3738 = vmatprep.subr.bf16.mxu1 %v3737_v54  ;;  %vm1596_vm1 = vcmp.lt.s32.totalorder %v1594_v51, %v6049_v49  ;;  %vm1828_vm2 = vcmp.lt.s32.totalorder %v1827_v35, %v6048_v41  ;;  %v3721_v61 = vpack.c.bf16 %v6051_v43, %v6050_v55  ;;  %4016 = vset.pattern.permute.xlu0 %v4439_v37  ;;  %v1597_v39 = vsel %vm1595_vm0, 1, %v4439_v37  ;;  %v6062_v34 = vld [vmem:[#allocation47_spill] sm:$0xff]  ;;  %v6063_v51 = vld [vmem:[#allocation50_spill] sm:$0xff]  ;;  %v6065_v43 = vld [vmem:[#allocation49_spill] sm:$0xff]  ;;  %s5455_s25 = scalar_lea.vmem [#allocation2], %s3496_s10  ;;  %s1381_s22 = sadd.s32 1, %s4416_s22  }
 0x290   : >> { %v1830_v53 = vsel %vm1828_vm2, 1, %v4439_v37  ;;  %vm1829_vm3 = vcmp.lt.s32.totalorder %v1827_v35, %v6049_v49  ;;  %1600 = vperm.xlu0 %4016, %v1597_v39   ;;  %4017 = vset.pattern.permute.xlu1 %v4439_v37  ;;  %v1598_v42 = vsel %vm1596_vm1, 1, %v4439_v37  ;;  %v3723_v58 = vpack.c.bf16 %v6053_v0, %v6052_v47  ;;  %v6064_v55 = vld [vmem:[#allocation46_spill] sm:$0xff]  ;;  %v6070_v0 = vld [vmem:[#allocation52_spill] sm:$0xff]  ;;  %p1378_p0 = scmp.ge.s32.totalorder %s1381_s22, 9  }
 0x291   : >> { %3708 = vmatpush1.bf16.msra.mxu0 %v3707_v63  ;;  %1833 = vperm.xlu1 %4017, %v1830_v53   ;;  %v3753_v63 = vpack.c.bf16 %v6055_v40, %v6054_v59  ;;  %v1831_v32 = vsel %vm1829_vm3, 1, %v4439_v37  ;;  %v3729_v35 = vpack.c.bf16 %v6063_v51, %v6062_v34  ;;  %v6067_v37 = vld [vmem:[#allocation51_spill] sm:$0xff]  ;;  %v6068_v53 = vld [vmem:[#allocation53_spill] sm:$0xff]  ;;  %v6081_v51 = vld [vmem:[#allocation68_spill] sm:$0xff]  ;;  %s3498_s15 = sshll.u32 (%p1378_p0), %s4510_s9, 12  ;;  %s3198_s19 = sshll.u32 (%p1378_p0), %s5295_s3, 4  ;;  %s5874_s19 = int_to_ptr.vmem [resolvable:$true] %s3198_s19 }
 0x292   : >> { %3710 = vmatprep.subr.bf16.mxu0 %v3709_v57  ;;  %3740 = vmatpush3.bf16.msra.mxu1 %v3737_v54  ;;  %v6056_v57 = vld [vmem:[#allocation41_spill] sm:$0xff]  ;;  %v6057_v54 = vld [vmem:[#allocation44_spill] sm:$0xff]  ;;  %v6072_v40 = vld [vmem:[#allocation59_spill] sm:$0xff]  ;;  %s6118_s16 = sld [smem:[#allocation105_spill]] (%p1378_p0)  ;;  %s3184_s22 = scalar_lea.sflag (%p1378_p0), [#allocation6], %s4755_s14 }
 0x293   : >> { %3742 = vmatprep.subr.bf16.mxu1 %v3741_v62  ;;  %v6080_v34 = vld [vmem:[#allocation65_spill] sm:$0xff]  ;;  %s4290_s11 = scalar_lea.vmem (%p1378_p0), %s5874_s19, 4096  ;;  %p6119_p11 = scmp.ne.s32.totalorder (%p1378_p0), %s5955_s17, 0 }
 0x294   : >> { %1603 = vperm.xlu0 %4016, %v1598_v42   ;;  %v6069_v42 = vld [vmem:[#allocation56_spill] sm:$0xff]  ;;  %p4291_p5 = scmp.ne.s32.totalorder (%p1378_p0), %s5874_s19, %s4290_s11  ;;  %s4441_s26 = smov (%p1378_p0), [#allocation18]  }
 0x295   : >> { %3712 = vmatpush1.bf16.msra.mxu0 %v3711_v60  ;;  %v3725_v60 = vpack.c.bf16 %v6057_v54, %v6056_v57  ;;  %1836 = vperm.xlu1 %4017, %v1831_v32   ;;  %v3765_v47 = vpack.c.bf16 %v6069_v42, %v6068_v53  ;;  %v6074_v57 = vld [vmem:[#allocation54_spill] sm:$0xff]  ;;  %v6075_v54 = vld [vmem:[#allocation57_spill] sm:$0xff]  ;;  %v6086_v53 = vld [vmem:[#allocation71_spill] sm:$0xff]  ;;  %s4294_s18 = sshll.u32 (%p1378_p0), %s4441_s26, 4  ;;  %s4295_s18 = int_to_ptr.vmem [resolvable:$false] %s4294_s18 }
 0x296   : >> { %3714 = vmatprep.subr.bf16.mxu0 %v3713_v50  ;;  %3744 = vmatpush3.bf16.msra.mxu1 %v3741_v62  ;;  %v6058_v62 = vld [vmem:[#allocation40_spill] sm:$0xff]  ;;  %v6059_v50 = vld [vmem:[#allocation43_spill] sm:$0xff]  ;;  %v6087_v42 = vld [vmem:[#allocation74_spill] sm:$0xff]  ;;  %p4292_p6 = pnand (%p1378_p0), %p4291_p5, %p6119_p11  ;;  %s4296_s27 = scalar_lea.vmem (%p1378_p0), %s4295_s18, 8192 }
 0x297   : >> { %3746 = vmatprep.subr.bf16.mxu1 %v3745_v56  ;;  %p4297_p3 = scmp.lt.s32.totalorder (%p1378_p0), %s5874_s19, %s4295_s18  ;;  %p4298_p13 = scmp.lt.s32.totalorder (%p1378_p0), %s4296_s27, %s4290_s11 }
 0x298   : > { %s5872_s9 = scalar_lea.hbm (%p1378_p0), %s6118_s16, %s3498_s15  ;;  %p4293_p12 = pneg (%p1378_p0), %p4292_p6 }
 0x299   : >> { %3716 = vmatpush1.bf16.msra.mxu0 %v3715_v31  ;;  %v3727_v31 = vpack.c.bf16 %v6059_v50, %v6058_v62  ;;  %v6076_v62 = vld [vmem:[#allocation58_spill] sm:$0xff]  ;;  %v6077_v50 = vld [vmem:[#allocation61_spill] sm:$0xff]  ;;  %p4299_p7 = por (%p1378_p0), %p4298_p13, %p4297_p3 }
 0x29a   : >> { %3718 = vmatprep.subr.bf16.mxu0 %v3717_v33  ;;  %3748 = vmatpush3.bf16.msra.mxu1 %v3745_v56  ;;  %v6060_v56 = vld [vmem:[#allocation42_spill] sm:$0xff]  ;;  %v6061_v33 = vld [vmem:[#allocation45_spill] sm:$0xff] }
 0x29b   : >> { %3750 = vmatprep.subr.bf16.mxu1 %v3749_v30  ;;  %p4300_p8 = pnand (%p1378_p0), %p4299_p7, %p4293_p12 }
 0x29d   : >> { %3720 = vmatpush1.bf16.msra.mxu0 %v3719_v48  ;;  %v3757_v48 = vpack.c.bf16 %v6061_v33, %v6060_v56  ;;  %v6078_v56 = vld [vmem:[#allocation60_spill] sm:$0xff]  ;;  %v6079_v33 = vld [vmem:[#allocation63_spill] sm:$0xff] }
 0x29e   : >> { %3722 = vmatprep.subr.bf16.mxu0 %v3721_v61  ;;  %3752 = vmatpush3.bf16.msra.mxu1 %v3749_v30  ;;  %v3731_v61 = vpack.c.bf16 %v6065_v43, %v6064_v55  ;;  %v6066_v30 = vld [vmem:[#allocation48_spill] sm:$0xff]  ;;  %v6083_v43 = vld [vmem:[#allocation67_spill] sm:$0xff] }
 0x29f   : >> { %3754 = vmatprep.subr.bf16.mxu1 %v3753_v63  ;;  %v3761_v39 = vpack.c.bf16 %v6067_v37, %v6066_v30  ;;  %v6082_v55 = vld [vmem:[#allocation64_spill] sm:$0xff]  ;;  %v6084_v30 = vld [vmem:[#allocation66_spill] sm:$0xff]  ;;  %v6085_v37 = vld [vmem:[#allocation69_spill] sm:$0xff] }
 0x2a1   : >> { %3724 = vmatpush1.bf16.msra.mxu0 %v3723_v58  ;;  %v6071_v58 = vld [vmem:[#allocation55_spill] sm:$0xff] }
 0x2a2   : >> { %3726 = vmatprep.subr.bf16.mxu0 %v3725_v60  ;;  %3756 = vmatpush3.bf16.msra.mxu1 %v3753_v63  ;;  %v3767_v59 = vpack.c.bf16 %v6071_v58, %v6070_v0  ;;  %v6073_v63 = vld [vmem:[#allocation62_spill] sm:$0xff]  ;;  %v3797_v60 = vpack.c.bf16 %v6075_v54, %v6074_v57  ;;  %v6089_v58 = vld [vmem:[#allocation73_spill] sm:$0xff]  ;;  %v6093_v54 = vld [vmem:[#allocation80_spill] sm:$0xff] }
 0x2a3   : >> { %3758 = vmatprep.subr.bf16.mxu1 %v3757_v48  ;;  %v3769_v32 = vpack.c.bf16 %v6073_v63, %v6072_v40  ;;  %v6088_v0 = vld [vmem:[#allocation70_spill] sm:$0xff]  ;;  %v6090_v40 = vld [vmem:[#allocation72_spill] sm:$0xff]  ;;  %v6091_v63 = vld [vmem:[#allocation75_spill] sm:$0xff] }
 0x2a4   : >> { %v6092_v57 = vld [vmem:[#allocation77_spill] sm:$0xff] }
 0x2a5   : >> { %3728 = vmatpush1.bf16.msra.mxu0 %v3727_v31  ;;  %v3771_v31 = vpack.c.bf16 %v6077_v50, %v6076_v62  ;;  %v6094_v62 = vld [vmem:[#allocation76_spill] sm:$0xff]  ;;  %v6095_v50 = vld [vmem:[#allocation79_spill] sm:$0xff] }
 0x2a6   : >> { %3730 = vmatprep.subr.bf16.mxu0 %v3729_v35  ;;  %3760 = vmatpush3.bf16.msra.mxu1 %v3757_v48  ;;  %v3801_v48 = vpack.c.bf16 %v6079_v33, %v6078_v56  ;;  %v3773_v35 = vpack.c.bf16 %v6081_v51, %v6080_v34  ;;  %v6096_v56 = vld [vmem:[#allocation78_spill] sm:$0xff]  ;;  %v6097_v33 = vld [vmem:[#allocation81_spill] sm:$0xff]  ;;  %v6098_v34 = vld [vmem:[#allocation83_spill] sm:$0xff] }
 0x2a7   : >> { %3762 = vmatprep.subr.bf16.mxu1 %v3761_v39  ;;  %v6099_v51 = vld [vmem:[#allocation86_spill] sm:$0xff] }
 0x2a9   : >> { %3732 = vmatpush1.bf16.msra.mxu0 %v3731_v61  ;;  %v3775_v61 = vpack.c.bf16 %v6083_v43, %v6082_v55  ;;  %v6100_v55 = vld [vmem:[#allocation82_spill] sm:$0xff]  ;;  %v6101_v43 = vld [vmem:[#allocation85_spill] sm:$0xff] }
 0x2aa   : >> { %3766 = vmatprep.subr.bf16.mxu0 %v3765_v47  ;;  %3764 = vmatpush3.bf16.msra.mxu1 %v3761_v39  ;;  %v3805_v39 = vpack.c.bf16 %v6085_v37, %v6084_v30  ;;  %v3777_v47 = vpack.c.bf16 %v6087_v42, %v6086_v53  ;;  %v6102_v30 = vld [vmem:[#allocation84_spill] sm:$0xff]  ;;  %v6103_v37 = vld [vmem:[#allocation87_spill] sm:$0xff]  ;;  %v6104_v53 = vld [vmem:[#allocation89_spill] sm:$0xff] }
 0x2ab   : >> { %3798 = vmatprep.subr.bf16.mxu1 %v3797_v60  ;;  %v6105_v42 = vld [vmem:[#allocation92_spill] sm:$0xff] }
 0x2ac   : >> { %1463 = vmatmul.mubr.f32.vlgmr.msra.gmra.mrb[0].mxu0 %v4412_v46 }
 0x2ad   : >> { %3768 = vmatpush1.bf16.msra.mxu0 %v3767_v59  ;;  %1468 = vmatprep.mubr.f32.mxu0 %v4438_v52  ;;  %v3779_v59 = vpack.c.bf16 %v6089_v58, %v6088_v0  ;;  %v6106_v0 = vld [vmem:[#allocation88_spill] sm:$0xff]  ;;  %v6107_v58 = vld [vmem:[#allocation91_spill] sm:$0xff] }
 0x2ae   : >> { %3770 = vmatprep.subr.bf16.mxu0 %v3769_v32  ;;  %3568 = vmatmul.mubr.f32.vlgmr.msra.gmra.mrb[0].mxu1 %v4408_v45  ;;  %v3809_v32 = vpack.c.bf16 %v6091_v63, %v6090_v40  ;;  %v6108_v40 = vld [vmem:[#allocation90_spill] sm:$0xff]  ;;  %v6109_v63 = vld [vmem:[#allocation93_spill] sm:$0xff] }
 0x2af   : >> { %3800 = vmatpush3.bf16.msra.mxu1 %v3797_v60  ;;  %3602 = vmatprep.mubr.f32.mxu1 %v4404_v36  ;;  %v3781_v60 = vpack.c.bf16 %v6093_v54, %v6092_v57  ;;  %v6110_v57 = vld [vmem:[#allocation95_spill] sm:$0xff]  ;;  %v6111_v54 = vld [vmem:[#allocation98_spill] sm:$0xff] }
 0x2b0   : >> { %1469 = vmatmul.mubr.f32.gmra.mrb[2].mxu0 %v4408_v45  ;;  %3802 = vmatprep.subr.bf16.mxu1 %v3801_v48 }
 0x2b1   : >> { %3772 = vmatpush1.bf16.msra.mxu0 %v3771_v31  ;;  %1695 = vmatprep.mubr.f32.mxu0 %v4438_v52  ;;  %v3783_v31 = vpack.c.bf16 %v6095_v50, %v6094_v62  ;;  %v6112_v62 = vld [vmem:[#allocation94_spill] sm:$0xff]  ;;  %v6113_v50 = vld [vmem:[#allocation97_spill] sm:$0xff] }
 0x2b2   : >> { %3774 = vmatprep.subr.bf16.mxu0 %v3773_v35  ;;  %v3785_v35 = vpack.c.bf16 %v6099_v51, %v6098_v34  ;;  %v1392_v34 = vld [vmem:[%s5441_s12] sm:$0xff]  ;;  %v1393_v51 = vld [vmem:[%s5441_s12 + $0x8] sm:$0xff] }
 0x2b3   : >> { %3804 = vmatpush3.bf16.msra.mxu1 %v3801_v48  ;;  %v3813_v48 = vpack.c.bf16 %v6097_v33, %v6096_v56  ;;  %v6114_v56 = vld [vmem:[#allocation96_spill] sm:$0xff]  ;;  %v6115_v33 = vld [vmem:[#allocation99_spill] sm:$0xff] }
 0x2b4   : >> { %3806 = vmatprep.subr.bf16.mxu1 %v3805_v39 }
 0x2b5   : >> { %3776 = vmatpush1.bf16.msra.mxu0 %v3775_v61  ;;  %v3787_v61 = vpack.c.bf16 %v6101_v43, %v6100_v55 }
 0x2b6   : >> { %3778 = vmatprep.subr.bf16.mxu0 %v3777_v47  ;;  %v3789_v47 = vpack.c.bf16 %v6105_v42, %v6104_v53 }
 0x2b7   : >> { %3808 = vmatpush3.bf16.msra.mxu1 %v3805_v39  ;;  %v3817_v39 = vpack.c.bf16 %v6103_v37, %v6102_v30  ;;  %v1396_v37 = vld [vmem:[%s5441_s12 + $0x38] sm:$0xff] }
 0x2b8   : >> { %3810 = vmatprep.subr.bf16.mxu1 %v3809_v32 }
 0x2b9   : >> { %3780 = vmatpush1.bf16.msra.mxu0 %v3779_v59  ;;  %v3791_v59 = vpack.c.bf16 %v6107_v58, %v6106_v0 }
 0x2ba   : >> { %3782 = vmatprep.subr.bf16.mxu0 %v3781_v60  ;;  %v3793_v60 = vpack.c.bf16 %v6111_v54, %v6110_v57 }
 0x2bb   : >> { %3812 = vmatpush3.bf16.msra.mxu1 %v3809_v32  ;;  %v3821_v32 = vpack.c.bf16 %v6109_v63, %v6108_v40 }
 0x2bc   : >> { %3814 = vmatprep.subr.bf16.mxu1 %v3813_v48 }
 0x2bd   : >> { %3784 = vmatpush1.bf16.msra.mxu0 %v3783_v31  ;;  %v3795_v31 = vpack.c.bf16 %v6113_v50, %v6112_v62 }
 0x2be   : >> { %3786 = vmatprep.subr.bf16.mxu0 %v3785_v35 }
 0x2bf   : >> { %3816 = vmatpush3.bf16.msra.mxu1 %v3813_v48  ;;  %v3825_v48 = vpack.c.bf16 %v6115_v33, %v6114_v56  ;;  %v6116_v56 = vld [vmem:[#allocation100_spill] sm:$0xff] }
 0x2c0   : >> { %3818 = vmatprep.subr.bf16.mxu1 %v3817_v39 }
 0x2c1   : >> { %3788 = vmatpush1.bf16.msra.mxu0 %v3787_v61  ;;  %v1395_v61 = vld [vmem:[%s5441_s12 + $0x30] sm:$0xff] }
 0x2c2   : >> { %3790 = vmatprep.subr.bf16.mxu0 %v3789_v47 }
 0x2c3   : >> { %3820 = vmatpush3.bf16.msra.mxu1 %v3817_v39 }
 0x2c4   : >> { %3822 = vmatprep.subr.bf16.mxu1 %v3821_v32 }
 0x2c5   : >> { %3792 = vmatpush1.bf16.msra.mxu0 %v3791_v59 }
 0x2c6   : >> { %3794 = vmatprep.subr.bf16.mxu0 %v3793_v60 }
 0x2c7   : >> { %3824 = vmatpush3.bf16.msra.mxu1 %v3821_v32 }
 0x2c8   : >> { %3826 = vmatprep.subr.bf16.mxu1 %v3825_v48 }
 0x2c9   : >> { %3796 = vmatpush1.bf16.msra.mxu0 %v3795_v31 }
 0x2cb   : >> { %3828 = vmatpush3.bf16.msra.mxu1 %v3825_v48 }
 0x2cc   : >> { %1696 = vmatmul.mubr.f32.vlgmr.msra.gmra.mrb[4].mxu0 %v4404_v36 }
 0x2cd   : >> { %1701 = vmatprep.mubr.f32.mxu0 %v4438_v52 }
 0x2ce   : >> { %3603 = vmatmul.mubr.f32.vlgmr.msra.gmra.mrb[2].mxu1 %v4400_v38 }
 0x2d0   : >> { %1702 = vmatmul.mubr.f32.gmra.mrb[6].mxu0 %v4400_v38 }
 0x37f   : >> { %v1464_v35 = vpop.f32.mrb[0].mxu0 }
 0x380   : >> { %v1550_v55 = vadd.f32 %v1464_v35, %v1392_v34  ;;  %v1466_v43 = vpop.f32.mrb[1].mxu0 }
 0x381   : >> { %v1564_v52 = vadd.f32 %v1466_v43, %v1393_v51  ;;  %v3569_v39 = vpop.f32.mrb[0].mxu1  ;;  %v1394_v51 = vld [vmem:[%s5441_s12 + $0x10] sm:$0xff]  ;;  %v1625_v43 = vld [vmem:[%s5455_s25 + $0x18] sm:$0xff] }
 0x382   : >> { %v3405_v30 = vmul.f32 -1.442695, %v1550_v55  ;;  %v1541_v42 = vpop.f32.mrb[1].mxu1  ;;  %v1579_v35 = vadd.f32 %v3569_v39, %v6116_v56  ;;  %v1628_v39 = vld [vmem:[%s5455_s25 + $0x48] sm:$0xff] }
 0x383   : >> { %v1470_v53 = vpop.f32.mrb[2].mxu0  ;;  %v3407_v40 = vmul.f32 -1.442695, %v1564_v52  ;;  %v1578_v33 = vadd.f32 %v6116_v56, %v1541_v42 }
 0x384   : >> { %4018 = vpow2.f32 %v3405_v30  ;;  %v1551_v47 = vadd.f32 %v1470_v53, %v1395_v61  ;;  %v1472_v0 = vpop.f32.mrb[3].mxu0  ;;  %v1626_v61 = vld [vmem:[%s5455_s25 + $0x20] sm:$0xff] }
 0x385   : >> { %v1565_v58 = vadd.f32 %v1472_v0, %v1396_v37  ;;  %v1397_v37 = vld [vmem:[%s5441_s12 + $0x40] sm:$0xff] }
 0x386   : >> { %v3406_v59 = vmul.f32 -1.442695, %v1551_v47 }
 0x387   : >> { %v3408_v63 = vmul.f32 -1.442695, %v1565_v58 }
 0x388   : >> { %4020 = vpow2.f32 %v3406_v59 }
 0x389   : >> { %4022 = vpow2.f32 %v3407_v40 }
 0x38a   : >> { %4024 = vpow2.f32 %v3408_v63  ;;  %v1629_v63 = vld [vmem:[%s5455_s25 + $0x50] sm:$0xff] }
 0x38e   : >> { %v4019_v32 = vpop.eup %4018 }
 0x38f   : >> { %v1558_v57 = vadd.f32 1.0, %v4019_v32 }
 0x391   : >> { %4026 = vrcp.f32 %v1558_v57 }
 0x392   : >> { %v4021_v54 = vpop.eup %4020 }
 0x393   : >> { %v1559_v60 = vadd.f32 1.0, %v4021_v54  ;;  %v4023_v62 = vpop.eup %4022 }
 0x394   : >> { %v4025_v50 = vpop.eup %4024  ;;  %v1572_v31 = vadd.f32 1.0, %v4023_v62 }
 0x395   : >> { %4028 = vrcp.f32 %v1559_v60  ;;  %v1573_v48 = vadd.f32 1.0, %v4025_v50 }
 0x396   : >> { %4030 = vrcp.f32 %v1572_v31 }
 0x397   : >> { %4032 = vrcp.f32 %v1573_v48  ;;  %v1601_v48 = vpop.permute.xlu0 %1600 }
 0x398   : >> { %vm1605_vm4 = vcmp.eq.s32.totalorder %v1601_v48, 1 }
 0x39b   : >> { %v4027_v34 = vpop.eup %4026 }
 0x39c   : >> { %v1580_v55 = vmul.f32 %v4027_v34, %v1578_v33 }
 0x39e   : >> { %v1582_v52 = vadd.f32 %v1580_v55, %v1394_v51 }
 0x39f   : >> { %v4029_v30 = vpop.eup %4028  ;;  %v1697_v53 = vpop.f32.mrb[4].mxu0 }
 0x3a0   : >> { %v1581_v42 = vmul.f32 %v4029_v30, %v1579_v35  ;;  %4034 = vtanh.f32 %v1582_v52  ;;  %v1783_v47 = vadd.f32 %v1697_v53, %v1625_v43  ;;  %v1699_v0 = vpop.f32.mrb[5].mxu0  ;;  %v4031_v31 = vpop.eup %4030  ;;  %v1610_v53 = vld [vmem:[%s1609_s20] sm:$0xff] }
 0x3a1   : >> { %v1797_v58 = vadd.f32 %v1699_v0, %v1626_v61  ;;  %v3604_v32 = vpop.f32.mrb[2].mxu1  ;;  %v4033_v34 = vpop.eup %4032  ;;  %v1586_v35 = vsub.f32 1.0, %v4031_v31  ;;  %v1590_v61 = vmul.f32 %v4412_v46, %v4031_v31 }
 0x3a2   : >> { %v1583_v59 = vadd.f32 %v1581_v42, %v1397_v37  ;;  %v3411_v40 = vmul.f32 -1.442695, %v1783_v47  ;;  %v1774_v54 = vpop.f32.mrb[3].mxu1  ;;  %v1587_v30 = vsub.f32 1.0, %v4033_v34  ;;  %v1604_v42 = vpop.permute.xlu0 %1603  ;;  %v1591_v47 = vmul.f32 %v4408_v45, %v4033_v34 }
 0x3a3   : >> { %v1703_v57 = vpop.f32.mrb[6].mxu0  ;;  %v3413_v51 = vmul.f32 -1.442695, %v1797_v58  ;;  %vm1606_vm5 = vcmp.eq.s32.totalorder %v1604_v42, 1  ;;  %v1630_v42 = vld [vmem:[%s5455_s25 + $0x58] sm:$0xff] }
 0x3a4   : >> { %4036 = vtanh.f32 %v1583_v59  ;;  %v1784_v60 = vadd.f32 %v1703_v57, %v1628_v39  ;;  %v1705_v62 = vpop.f32.mrb[7].mxu0 }
 0x3a5   : >> { %4038 = vpow2.f32 %v3411_v40  ;;  %v1798_v50 = vadd.f32 %v1705_v62, %v1629_v63 }
 0x3a6   : >> { %v3412_v33 = vmul.f32 -1.442695, %v1784_v60  ;;  %v1611_v60 = vld [vmem:[%s1609_s20 + $0x8] sm:$0xff] }
 0x3a7   : >> { %v3414_v43 = vmul.f32 -1.442695, %v1798_v50 }
 0x3a8   : >> { %4040 = vpow2.f32 %v3412_v33 }
 0x3a9   : >> { %4042 = vpow2.f32 %v3413_v51 }
 0x3aa   : >> { %v4035_v55 = vpop.eup %4034  ;;  %4044 = vpow2.f32 %v3414_v43 }
 0x3ab   : >> { %v1588_v52 = vmul.f32 %v4035_v55, %v1586_v35  ;;  %v6117_v35 = vld [vmem:[#allocation101_spill] sm:$0xff] }
 0x3ac   : >> { %v1811_v55 = vadd.f32 %v6117_v35, %v1774_v54 }
 0x3ad   : >> { %v1592_v37 = vadd.f32 %v1590_v61, %v1588_v52  ;;  %v1812_v61 = vadd.f32 %v3604_v32, %v6117_v35 }
 0x3ae   : >> { %v4037_v0 = vpop.eup %4036 }
 0x3af   : >> { %v4039_v39 = vpop.eup %4038  ;;  %v5467_v46 = vsel %vm1605_vm4, %v1592_v37, %v4412_v46   ;;  %v1612_v58 = vsel %vm1605_vm4, %v1592_v37, 0.0  ;;  %v1589_v59 = vmul.f32 %v4037_v0, %v1587_v30  ;;  %v1627_v30 = vld [vmem:[%s5455_s25 + $0x28] sm:$0xff] }
 0x3b0   : >> { %v1791_v40 = vadd.f32 1.0, %v4039_v39  ;;  %v1614_v63 = vadd.f32 %v1612_v58, %v1610_v53 }
 0x3b1   : >> { %v1593_v57 = vadd.f32 %v1591_v47, %v1589_v59  ;;  %v1834_v59 = vpop.permute.xlu1 %1833 }
 0x3b2   : >> { %v4041_v62 = vpop.eup %4040  ;;  %4046 = vrcp.f32 %v1791_v40  ;;  %1616 = vst [vmem:[%s1609_s20] sm:$0xff] %v1614_v63  ;;  %vm1838_vm6 = vcmp.eq.s32.totalorder %v1834_v59, 1 }
 0x3b3   : >> { %v1792_v50 = vadd.f32 1.0, %v4041_v62  ;;  %v1608_v45 = vsel %vm1606_vm5, %v1593_v57, %v4408_v45   ;;  %v1613_v31 = vsel %vm1606_vm5, %v1593_v57, 0.0  ;;  %v4043_v48 = vpop.eup %4042 }
 0x3b4   : >> { %v1615_v33 = vadd.f32 %v1613_v31, %v1611_v60  ;;  %v4045_v34 = vpop.eup %4044  ;;  %v1805_v51 = vadd.f32 1.0, %v4043_v48 }
 0x3b5   : >> { %4048 = vrcp.f32 %v1792_v50  ;;  %v1806_v52 = vadd.f32 1.0, %v4045_v34  ;;  %v1837_v31 = vpop.permute.xlu1 %1836 }
 0x3b6   : >> { %1617 = vst [vmem:[%s1609_s20 + $0x8] sm:$0xff] %v1615_v33  ;;  %4050 = vrcp.f32 %v1805_v51  ;;  %vm1839_vm7 = vcmp.eq.s32.totalorder %v1837_v31, 1 }
 0x3b7   : >> { %4052 = vrcp.f32 %v1806_v52 }
 0x3bc   : >> { %v4047_v43 = vpop.eup %4046 }
 0x3bd   : >> { %v1813_v37 = vmul.f32 %v4047_v43, %v1811_v55  ;;  %v1843_v34 = vld [vmem:[%s1842_s8] sm:$0xff]  ;;  %v1844_v52 = vld [vmem:[%s1842_s8 + $0x8] sm:$0xff] }
 0x3bf   : >> { %v4049_v53 = vpop.eup %4048  ;;  %v1815_v47 = vadd.f32 %v1813_v37, %v1627_v30 }
 0x3c0   : >> { %v1814_v0 = vmul.f32 %v4049_v53, %v1812_v61  ;;  %v4051_v58 = vpop.eup %4050 }
 0x3c1   : >> { %4054 = vtanh.f32 %v1815_v47  ;;  %v4053_v40 = vpop.eup %4052  ;;  %v1819_v54 = vsub.f32 1.0, %v4051_v58  ;;  %v1823_v32 = vmul.f32 %v4404_v36, %v4051_v58 }
 0x3c2   : >> { %v1816_v39 = vadd.f32 %v1814_v0, %v1630_v42  ;;  %v1820_v60 = vsub.f32 1.0, %v4053_v40  ;;  %v1824_v48 = vmul.f32 %v4400_v38, %v4053_v40 }
 0x3c4   : >> { %4056 = vtanh.f32 %v1816_v39 }
 0x3cb   : >> { %v4055_v63 = vpop.eup %4054 }
 0x3cc   : >> { %v1821_v57 = vmul.f32 %v4055_v63, %v1819_v54 }
 0x3ce   : >> { %v4057_v62 = vpop.eup %4056  ;;  %v1825_v50 = vadd.f32 %v1823_v32, %v1821_v57 }
 0x3cf   : >> { %v1822_v33 = vmul.f32 %v4057_v62, %v1820_v60 }
 0x3d0   : >> { %v1840_v36 = vsel %vm1838_vm6, %v1825_v50, %v4404_v36   ;;  %v1845_v51 = vsel %vm1838_vm6, %v1825_v50, 0.0  ;;  %1380 = sbr.rel (!%p1378_p0) target bundleno = 650 (0x28a), region = 150 }
 0x3d1   : >> { %v1847_v55 = vadd.f32 %v1845_v51, %v1843_v34  ;;  %v1826_v43 = vadd.f32 %v1824_v48, %v1822_v33 }
 0x3d3   : >> { %1849 = vst [vmem:[%s1842_s8] sm:$0xff] %v1847_v55  ;;  %v1841_v38 = vsel %vm1839_vm7, %v1826_v43, %v4400_v38   ;;  %v1846_v61 = vsel %vm1839_vm7, %v1826_v43, 0.0  ;;  %v4440_v55 = vmov (%p1378_p0), 1966171168  }
 0x3d4   : >> { %v1848_v30 = vadd.f32 %v1846_v61, %v1844_v52  ;;  %v1999_v43 = vunpack.c.l.s4 (%p1378_p0), %v4440_v55 }
 0x3d6   : >> { %1850 = vst [vmem:[%s1842_s8 + $0x8] sm:$0xff] %v1848_v30 }
 0x3dd   : > { %v1853_v37 = vld [vmem:[#allocation3 + $0x10] sm:$0xff]  ;;  %v1851_v53 = vld [vmem:[#allocation3] sm:$0xff]  ;;  %v1854_v42 = vld [vmem:[#allocation3 + $0x18] sm:$0xff] }
 0x3de   : > { %v5491_v47 = vmul.f32 0.5, %v1853_v37  ;;  %v5493_v0 = vmul.f32 0.5, %v1851_v53  ;;  %v5495_v39 = vmul.f32 0.5, %v1854_v42  ;;  %v1852_v58 = vld [vmem:[#allocation3 + $0x8] sm:$0xff]  ;;  %v1855_v54 = vld [vmem:[#allocation3 + $0x20] sm:$0xff]  ;;  %v1858_v5 = vld [vmem:[#allocation3 + $0x38] sm:$0xff]  ;;  %v2000_v53 = vunpack.c.0.s8 %v1999_v43 }
 0x3df   : > { %v5497_v59 = vmul.f32 0.5, %v1852_v58  ;;  %v1856_v40 = vld [vmem:[#allocation3 + $0x28] sm:$0xff]  ;;  %v5509_v4 = vmul.f32 0.5, %v1855_v54  ;;  %v1857_v6 = vld [vmem:[#allocation3 + $0x30] sm:$0xff]  ;;  %v5515_v9 = vmul.f32 0.5, %v1858_v5  ;;  %v1859_v12 = vld [vmem:[#allocation3 + $0x40] sm:$0xff] }
 0x3e0   : > { %v1889_v46 = vmul.f32 %v5491_v47, %v5491_v47  ;;  %v1887_v63 = vmul.f32 %v5493_v0, %v5493_v0  ;;  %v1890_v1 = vmul.f32 %v5495_v39, %v5495_v39  ;;  %v5507_v3 = vmul.f32 0.5, %v1856_v40  ;;  %v1860_v11 = vld [vmem:[#allocation3 + $0x48] sm:$0xff]  ;;  %v1862_v17 = vld [vmem:[#allocation3 + $0x58] sm:$0xff]  ;;  %v1861_v18 = vld [vmem:[#allocation3 + $0x50] sm:$0xff] }
 0x3e1   : > { %v1888_v2 = vmul.f32 %v5497_v59, %v5497_v59  ;;  %v1891_v8 = vmul.f32 %v5509_v4, %v5509_v4  ;;  %v5517_v10 = vmul.f32 0.5, %v1857_v6  ;;  %v1894_v13 = vmul.f32 %v5515_v9, %v5515_v9  ;;  %v1864_v23 = vld [vmem:[#allocation3 + $0x68] sm:$0xff]  ;;  %v1863_v24 = vld [vmem:[#allocation3 + $0x60] sm:$0xff]  ;;  %v1866_v29 = vld [vmem:[#allocation3 + $0x78] sm:$0xff] }
 0x3e2   : > { %1909 = vadd.xlane.f32.xlu1 %v1889_v46  ;;  %1905 = vadd.xlane.f32.xlu0 %v1887_v63  ;;  %v1892_v7 = vmul.f32 %v5507_v3, %v5507_v3  ;;  %v5523_v15 = vmul.f32 0.5, %v1860_v11  ;;  %v5525_v16 = vmul.f32 0.5, %v1859_v12  ;;  %v5531_v21 = vmul.f32 0.5, %v1862_v17  ;;  %v1865_v38 = vld [vmem:[#allocation3 + $0x70] sm:$0xff]  ;;  %v1868_v56 = vld [vmem:[#allocation3 + $0x88] sm:$0xff]  ;;  %v1867_v35 = vld [vmem:[#allocation3 + $0x80] sm:$0xff] }
 0x3e3   : > { %v1893_v14 = vmul.f32 %v5517_v10, %v5517_v10  ;;  %v5533_v22 = vmul.f32 0.5, %v1861_v18  ;;  %v5539_v27 = vmul.f32 0.5, %v1864_v23  ;;  %v5541_v28 = vmul.f32 0.5, %v1863_v24 }
 0x3e4   : > { %v1896_v19 = vmul.f32 %v5523_v15, %v5523_v15  ;;  %v1895_v20 = vmul.f32 %v5525_v16, %v5525_v16  ;;  %v1898_v25 = vmul.f32 %v5531_v21, %v5531_v21  ;;  %v5547_v41 = vmul.f32 0.5, %v1866_v29 }
 0x3e5   : > { %v1897_v26 = vmul.f32 %v5533_v22, %v5533_v22  ;;  %v1900_v36 = vmul.f32 %v5539_v27, %v5539_v27  ;;  %v1899_v45 = vmul.f32 %v5541_v28, %v5541_v28  ;;  %v5549_v49 = vmul.f32 0.5, %v1865_v38 }
 0x3e6   : > { %1911 = vadd.xlane.f32.xlu1 %v1890_v1  ;;  %1907 = vadd.xlane.f32.xlu0 %v1888_v2  ;;  %v1902_v57 = vmul.f32 %v5547_v41, %v5547_v41  ;;  %v5555_v60 = vmul.f32 0.5, %v1868_v56  ;;  %v5557_v62 = vmul.f32 0.5, %v1867_v35  ;;  %v5564_v46 = vsub.s32 %v2000_v53, %v5157_v44 }
 0x3e7   : > { %v1901_v32 = vmul.f32 %v5549_v49, %v5549_v49 }
 0x3e8   : > { %v1904_v50 = vmul.f32 %v5555_v60, %v5555_v60  ;;  %v1903_v31 = vmul.f32 %v5557_v62, %v5557_v62 }
 0x3ea   : > { %1915 = vadd.xlane.f32.xlu1 %v1892_v7  ;;  %1913 = vadd.xlane.f32.xlu0 %v1891_v8 }
 0x3ee   : > { %1919 = vadd.xlane.f32.xlu1 %v1894_v13  ;;  %1917 = vadd.xlane.f32.xlu0 %v1893_v14 }
 0x3f2   : > { %1923 = vadd.xlane.f32.xlu1 %v1896_v19  ;;  %1921 = vadd.xlane.f32.xlu0 %v1895_v20 }
 0x3f6   : > { %1927 = vadd.xlane.f32.xlu1 %v1898_v25  ;;  %1925 = vadd.xlane.f32.xlu0 %v1897_v26 }
 0x3fa   : > { %1931 = vadd.xlane.f32.xlu1 %v1900_v36  ;;  %1929 = vadd.xlane.f32.xlu0 %v1899_v45 }
 0x3fe   : > { %1935 = vadd.xlane.f32.xlu1 %v1902_v57  ;;  %1933 = vadd.xlane.f32.xlu0 %v1901_v32 }
 0x402   : > { %1939 = vadd.xlane.f32.xlu1 %v1904_v50  ;;  %1937 = vadd.xlane.f32.xlu0 %v1903_v31 }
 0x46f   : > { %v1910_v33 = vpop.xlane.xlu1 %1909  ;;  %v1906_v48 = vpop.xlane.xlu0 %1905 }
 0x470   : > { %v1943_v34 = vadd.f32 1e-16, %v1910_v33  ;;  %v1941_v51 = vadd.f32 1e-16, %v1906_v48 }
 0x472   : > { %4058 = vrsqrt.f32 %v1943_v34 }
 0x473   : > { %4060 = vrsqrt.f32 %v1941_v51  ;;  %v1912_v52 = vpop.xlane.xlu1 %1911  ;;  %v1908_v61 = vpop.xlane.xlu0 %1907 }
 0x474   : > { %v1944_v30 = vadd.f32 1e-16, %v1912_v52  ;;  %v1942_v37 = vadd.f32 1e-16, %v1908_v61 }
 0x476   : > { %4062 = vrsqrt.f32 %v1944_v30 }
 0x477   : > { %4064 = vrsqrt.f32 %v1942_v37  ;;  %v1916_v42 = vpop.xlane.xlu1 %1915  ;;  %v1914_v58 = vpop.xlane.xlu0 %1913 }
 0x478   : > { %v1946_v40 = vadd.f32 1e-16, %v1916_v42  ;;  %v1945_v54 = vadd.f32 1e-16, %v1914_v58 }
 0x47a   : > { %4066 = vrsqrt.f32 %v1946_v40 }
 0x47b   : > { %v1920_v63 = vpop.xlane.xlu1 %1919  ;;  %v1918_v1 = vpop.xlane.xlu0 %1917  ;;  %4068 = vrsqrt.f32 %v1945_v54 }
 0x47c   : > { %v4059_v2 = vpop.eup %4058  ;;  %v1948_v5 = vadd.f32 1e-16, %v1920_v63  ;;  %v1947_v6 = vadd.f32 1e-16, %v1918_v1 }
 0x47d   : > { %v4061_v7 = vpop.eup %4060  ;;  %v1979_v8 = vmul.f32 %v4059_v2, %v5491_v47 }
 0x47e   : > { %v1977_v11 = vmul.f32 %v4061_v7, %v5493_v0  ;;  %4070 = vrsqrt.f32 %v1948_v5 }
 0x47f   : > { %v2129_v12 = vcombine.high %v1979_v8, %v1979_v8  ;;  %v2136_v13 = vrot.slane %v1979_v8, %v5564_v46  ;;  %4072 = vrsqrt.f32 %v1947_v6  ;;  %v1924_v44 = vpop.xlane.xlu1 %1923  ;;  %v1922_v14 = vpop.xlane.xlu0 %1921 }
 0x480   : > { %v4063_v17 = vpop.eup %4062  ;;  %v1997_v18 = vcombine.high %v1977_v11, %v1977_v11  ;;  %v2004_v19 = vrot.slane %v1977_v11, %v5564_v46  ;;  %v5570_v20 = vadd.f32 1e-16, %v1924_v44  ;;  %v5572_v23 = vadd.f32 1e-16, %v1922_v14 }
 0x481   : > { %v4065_v47 = vpop.eup %4064  ;;  %v2143_v0 = vrot.slane %v2129_v12, %v5564_v46  ;;  %v2144_v24 = vcombine.high %v2136_v13, %v2136_v13  ;;  %v2152_v25 = vrot.slane %v2136_v13, %v5564_v46  ;;  %3423 = vst.sshfl [vmem:[%s5295_s3 + $0x1] sm:$0x1 pattern:$0x73625140] %v2136_v13  ;;  %v1980_v26 = vmul.f32 %v4063_v17, %v5495_v39 }
 0x482   : > { %v2011_v29 = vrot.slane %v1997_v18, %v5564_v46  ;;  %v2012_v38 = vcombine.high %v2004_v19, %v2004_v19  ;;  %v2020_v36 = vrot.slane %v2004_v19, %v5564_v46  ;;  %3415 = vst.sshfl [vmem:[%s5295_s3] sm:$0x1 pattern:$0x73625140] %v2004_v19  ;;  %v1978_v45 = vmul.f32 %v4065_v47, %v5497_v59 }
 0x483   : > { %v2145_v56 = vcombine.high %v2143_v0, %v2143_v0  ;;  %v2159_v35 = vrot.slane %v2143_v0, %v5564_v46  ;;  %v2166_v57 = vrot.slane %v2144_v24, %v5564_v46  ;;  %v2174_v32 = vcombine.high %v2152_v25, %v2152_v25  ;;  %3424 = vst.sshfl [vmem:[%s5295_s3 + $0x11] sm:$0x1 pattern:$0x73625140] %v2144_v24 }
 0x484   : > { %3425 = vst.sshfl [vmem:[%s5295_s3 + $0x41] sm:$0x1 pattern:$0x73625140] %v2143_v0  ;;  %v2013_v39 = vcombine.high %v2011_v29, %v2011_v29  ;;  %v2027_v50 = vrot.slane %v2011_v29, %v5564_v46  ;;  %v2034_v31 = vrot.slane %v2012_v38, %v5564_v46  ;;  %v2042_v33 = vcombine.high %v2020_v36, %v2020_v36  ;;  %v4067_v59 = vpop.eup %4066 }
 0x485   : > { %3416 = vst.sshfl [vmem:[%s5295_s3 + $0x10] sm:$0x1 pattern:$0x73625140] %v2012_v38  ;;  %v2173_v48 = vrot.slane %v2145_v56, %v5564_v46  ;;  %v2175_v34 = vcombine.high %v2159_v35, %v2159_v35  ;;  %v2176_v51 = vcombine.high %v2166_v57, %v2166_v57  ;;  %2245 = vst [vmem:[%s5295_s3 + $0x21] sm:$0x1] %v2174_v32  ;;  %v4069_v37 = vpop.eup %4068  ;;  %4074 = vrsqrt.f32 %v5570_v20 }
 0x486   : > { %3417 = vst.sshfl [vmem:[%s5295_s3 + $0x40] sm:$0x1 pattern:$0x73625140] %v2011_v29  ;;  %v2178_v55 = vcombine.high %v1980_v26, %v1980_v26  ;;  %v2041_v43 = vrot.slane %v2013_v39, %v5564_v46  ;;  %v2043_v52 = vcombine.high %v2027_v50, %v2027_v50  ;;  %v2044_v61 = vcombine.high %v2034_v31, %v2034_v31  ;;  %v5625_v29 = vpop.xlane.xlu1 %1927  ;;  %v5636_v50 = vpop.xlane.xlu0 %1925 }
 0x487   : > { %3426 = vst.sshfl [vmem:[%s5295_s3 + $0x51] sm:$0x1 pattern:$0x73625140] %v2145_v56  ;;  %2113 = vst [vmem:[%s5295_s3 + $0x20] sm:$0x1] %v2042_v33  ;;  %v2185_v30 = vrot.slane %v1980_v26, %v5564_v46  ;;  %v2177_v53 = vcombine.high %v2173_v48, %v2173_v48  ;;  %v2046_v58 = vcombine.high %v1978_v45, %v1978_v45  ;;  %4076 = vrsqrt.f32 %v5572_v23 }
 0x488   : > { %3418 = vst.sshfl [vmem:[%s5295_s3 + $0x50] sm:$0x1 pattern:$0x73625140] %v2013_v39  ;;  %2246 = vst [vmem:[%s5295_s3 + $0x31] sm:$0x1] %v2176_v51  ;;  %v2192_v42 = vrot.slane %v2178_v55, %v5564_v46  ;;  %v2053_v40 = vrot.slane %v1978_v45, %v5564_v46  ;;  %v4071_v54 = vpop.eup %4070  ;;  %v2045_v63 = vcombine.high %v2041_v43, %v2041_v43 }
 0x489   : > { %2249 = vst [vmem:[%s5295_s3 + $0x61] sm:$0x1] %v2175_v34  ;;  %2114 = vst [vmem:[%s5295_s3 + $0x30] sm:$0x1] %v2044_v61  ;;  %v2193_v1 = vcombine.high %v2185_v30, %v2185_v30  ;;  %v2201_v2 = vrot.slane %v2185_v30, %v5564_v46  ;;  %v1982_v5 = vmul.f32 %v4067_v59, %v5507_v3  ;;  %v5606_v6 = vpop.eup %4072 }
 0x48a   : > { %2117 = vst [vmem:[%s5295_s3 + $0x60] sm:$0x1] %v2043_v52  ;;  %3427 = vst.sshfl [vmem:[%s5295_s3 + $0x81] sm:$0x1 pattern:$0x73625140] %v2185_v30  ;;  %v2194_v7 = vcombine.high %v2192_v42, %v2192_v42  ;;  %v2208_v8 = vrot.slane %v2192_v42, %v5564_v46  ;;  %v2060_v11 = vrot.slane %v2046_v58, %v5564_v46  ;;  %v1932_v58 = vpop.xlane.xlu1 %1931 }
 0x48b   : > { %2250 = vst [vmem:[%s5295_s3 + $0x71] sm:$0x1] %v2177_v53  ;;  %3429 = vst.sshfl [vmem:[%s5295_s3 + $0xc1] sm:$0x1 pattern:$0x73625140] %v2192_v42  ;;  %v2061_v12 = vcombine.high %v2053_v40, %v2053_v40  ;;  %v2215_v13 = vrot.slane %v2193_v1, %v5564_v46  ;;  %v2223_v44 = vcombine.high %v2201_v2, %v2201_v2 }
 0x48c   : > { %3419 = vst.sshfl [vmem:[%s5295_s3 + $0x80] sm:$0x1 pattern:$0x73625140] %v2053_v40  ;;  %2118 = vst [vmem:[%s5295_s3 + $0x70] sm:$0x1] %v2045_v63  ;;  %v2069_v3 = vrot.slane %v2053_v40, %v5564_v46  ;;  %v2310_v14 = vcombine.high %v1982_v5, %v1982_v5  ;;  %v2222_v17 = vrot.slane %v2194_v7, %v5564_v46 }
 0x48d   : > { %3428 = vst.sshfl [vmem:[%s5295_s3 + $0x91] sm:$0x1 pattern:$0x73625140] %v2193_v1  ;;  %v2224_v18 = vcombine.high %v2208_v8, %v2208_v8  ;;  %v2062_v19 = vcombine.high %v2060_v11, %v2060_v11  ;;  %v2076_v47 = vrot.slane %v2060_v11, %v5564_v46  ;;  %v2225_v0 = vcombine.high %v2215_v13, %v2215_v13 }
 0x48e   : > { %3430 = vst.sshfl [vmem:[%s5295_s3 + $0xd1] sm:$0x1 pattern:$0x73625140] %v2194_v7  ;;  %2253 = vst [vmem:[%s5295_s3 + $0xa1] sm:$0x1] %v2223_v44  ;;  %v2083_v24 = vrot.slane %v2061_v12, %v5564_v46  ;;  %v2091_v25 = vcombine.high %v2069_v3, %v2069_v3  ;;  %v2317_v26 = vrot.slane %v1982_v5, %v5564_v46 }
 0x48f   : > { %3420 = vst.sshfl [vmem:[%s5295_s3 + $0x90] sm:$0x1 pattern:$0x73625140] %v2061_v12  ;;  %v2226_v38 = vcombine.high %v2222_v17, %v2222_v17  ;;  %2257 = vst [vmem:[%s5295_s3 + $0xe1] sm:$0x1] %v2224_v18  ;;  %v2090_v36 = vrot.slane %v2062_v19, %v5564_v46  ;;  %v2092_v45 = vcombine.high %v2076_v47, %v2076_v47 }
 0x490   : > { %3421 = vst.sshfl [vmem:[%s5295_s3 + $0xc0] sm:$0x1 pattern:$0x73625140] %v2060_v11  ;;  %v2324_v56 = vrot.slane %v2310_v14, %v5564_v46  ;;  %2254 = vst [vmem:[%s5295_s3 + $0xb1] sm:$0x1] %v2225_v0  ;;  %v2093_v35 = vcombine.high %v2083_v24, %v2083_v24  ;;  %v2325_v57 = vcombine.high %v2317_v26, %v2317_v26  ;;  %v1930_v11 = vpop.xlane.xlu0 %1929 }
 0x491   : > { %3422 = vst.sshfl [vmem:[%s5295_s3 + $0xd0] sm:$0x1 pattern:$0x73625140] %v2062_v19  ;;  %2121 = vst [vmem:[%s5295_s3 + $0xa0] sm:$0x1] %v2091_v25  ;;  %v2333_v32 = vrot.slane %v2317_v26, %v5564_v46  ;;  %v1981_v39 = vmul.f32 %v4069_v37, %v5509_v4  ;;  %v2094_v31 = vcombine.high %v2090_v36, %v2090_v36 }
 0x492   : > { %3435 = vst.sshfl [vmem:[%s5295_s3 + $0x82] sm:$0x1 pattern:$0x73625140] %v2317_v26  ;;  %2258 = vst [vmem:[%s5295_s3 + $0xf1] sm:$0x1] %v2226_v38  ;;  %v2326_v33 = vcombine.high %v2324_v56, %v2324_v56  ;;  %v2340_v59 = vrot.slane %v2324_v56, %v5564_v46  ;;  %v1984_v48 = vmul.f32 %v4071_v54, %v5515_v9 }
 0x493   : > { %2125 = vst [vmem:[%s5295_s3 + $0xe0] sm:$0x1] %v2092_v45  ;;  %3437 = vst.sshfl [vmem:[%s5295_s3 + $0xc2] sm:$0x1 pattern:$0x73625140] %v2324_v56  ;;  %v2347_v34 = vrot.slane %v2325_v57, %v5564_v46  ;;  %v2355_v51 = vcombine.high %v2333_v32, %v2333_v32  ;;  %v2261_v4 = vcombine.high %v1981_v39, %v1981_v39 }
 0x494   : > { %2122 = vst [vmem:[%s5295_s3 + $0xb0] sm:$0x1] %v2093_v35  ;;  %3436 = vst.sshfl [vmem:[%s5295_s3 + $0x92] sm:$0x1 pattern:$0x73625140] %v2325_v57  ;;  %v2268_v55 = vrot.slane %v1981_v39, %v5564_v46  ;;  %v2354_v43 = vrot.slane %v2326_v33, %v5564_v46  ;;  %v2356_v52 = vcombine.high %v2340_v59, %v2340_v59  ;;  %v1934_v23 = vpop.xlane.xlu0 %1933 }
 0x495   : > { %2126 = vst [vmem:[%s5295_s3 + $0xf0] sm:$0x1] %v2094_v31  ;;  %3438 = vst.sshfl [vmem:[%s5295_s3 + $0xd2] sm:$0x1 pattern:$0x73625140] %v2326_v33  ;;  %v2442_v61 = vcombine.high %v1984_v48, %v1984_v48  ;;  %v2449_v9 = vrot.slane %v1984_v48, %v5564_v46  ;;  %v2357_v30 = vcombine.high %v2347_v34, %v2347_v34 }
 0x496   : > { %2385 = vst [vmem:[%s5295_s3 + $0xa2] sm:$0x1] %v2355_v51  ;;  %v2275_v37 = vrot.slane %v2261_v4, %v5564_v46  ;;  %v2276_v53 = vcombine.high %v2268_v55, %v2268_v55  ;;  %v2284_v42 = vrot.slane %v2268_v55, %v5564_v46  ;;  %3431 = vst.sshfl [vmem:[%s5295_s3 + $0x2] sm:$0x1 pattern:$0x73625140] %v2268_v55 }
 0x497   : > { %v2358_v40 = vcombine.high %v2354_v43, %v2354_v43  ;;  %2389 = vst [vmem:[%s5295_s3 + $0xe2] sm:$0x1] %v2356_v52  ;;  %v2456_v54 = vrot.slane %v2442_v61, %v5564_v46  ;;  %v2457_v63 = vcombine.high %v2449_v9, %v2449_v9  ;;  %v2465_v1 = vrot.slane %v2449_v9, %v5564_v46  ;;  %v4075_v52 = vpop.eup %4074 }
 0x498   : > { %3443 = vst.sshfl [vmem:[%s5295_s3 + $0x83] sm:$0x1 pattern:$0x73625140] %v2449_v9  ;;  %2386 = vst [vmem:[%s5295_s3 + $0xb2] sm:$0x1] %v2357_v30  ;;  %v2277_v2 = vcombine.high %v2275_v37, %v2275_v37  ;;  %v2291_v5 = vrot.slane %v2275_v37, %v5564_v46  ;;  %v2298_v7 = vrot.slane %v2276_v53, %v5564_v46  ;;  %v1938_v43 = vpop.xlane.xlu0 %1937  ;;  %v4077_v9 = vpop.eup %4076 }
 0x499   : > { %v2306_v8 = vcombine.high %v2284_v42, %v2284_v42  ;;  %3432 = vst.sshfl [vmem:[%s5295_s3 + $0x12] sm:$0x1 pattern:$0x73625140] %v2276_v53  ;;  %2390 = vst [vmem:[%s5295_s3 + $0xf2] sm:$0x1] %v2358_v40  ;;  %v2458_v12 = vcombine.high %v2456_v54, %v2456_v54  ;;  %v2472_v13 = vrot.slane %v2456_v54, %v5564_v46 }
 0x49a   : > { %3433 = vst.sshfl [vmem:[%s5295_s3 + $0x42] sm:$0x1 pattern:$0x73625140] %v2275_v37  ;;  %v2479_v44 = vrot.slane %v2457_v63, %v5564_v46  ;;  %v2487_v3 = vcombine.high %v2465_v1, %v2465_v1  ;;  %v2305_v14 = vrot.slane %v2277_v2, %v5564_v46  ;;  %v2307_v17 = vcombine.high %v2291_v5, %v2291_v5 }
 0x49b   : > { %3444 = vst.sshfl [vmem:[%s5295_s3 + $0x93] sm:$0x1 pattern:$0x73625140] %v2457_v63  ;;  %v2308_v18 = vcombine.high %v2298_v7, %v2298_v7  ;;  %2377 = vst [vmem:[%s5295_s3 + $0x22] sm:$0x1] %v2306_v8  ;;  %v1983_v19 = vmul.f32 %v5606_v6, %v5517_v10  ;;  %v2486_v47 = vrot.slane %v2458_v12, %v5564_v46  ;;  %v1936_v10 = vpop.xlane.xlu1 %1935 }
 0x49c   : > { %3445 = vst.sshfl [vmem:[%s5295_s3 + $0xc3] sm:$0x1 pattern:$0x73625140] %v2456_v54  ;;  %v2488_v0 = vcombine.high %v2472_v13, %v2472_v13  ;;  %v2489_v24 = vcombine.high %v2479_v44, %v2479_v44  ;;  %2517 = vst [vmem:[%s5295_s3 + $0xa3] sm:$0x1] %v2487_v3  ;;  %v2309_v25 = vcombine.high %v2305_v14, %v2305_v14 }
 0x49d   : > { %3434 = vst.sshfl [vmem:[%s5295_s3 + $0x52] sm:$0x1 pattern:$0x73625140] %v2277_v2  ;;  %2378 = vst [vmem:[%s5295_s3 + $0x32] sm:$0x1] %v2308_v18  ;;  %v2393_v26 = vcombine.high %v1983_v19, %v1983_v19  ;;  %v2400_v38 = vrot.slane %v1983_v19, %v5564_v46  ;;  %v2490_v6 = vcombine.high %v2486_v47, %v2486_v47 }
 0x49e   : > { %3446 = vst.sshfl [vmem:[%s5295_s3 + $0xd3] sm:$0x1 pattern:$0x73625140] %v2458_v12  ;;  %2381 = vst [vmem:[%s5295_s3 + $0x62] sm:$0x1] %v2307_v17  ;;  %v1986_v30 = vmul.f32 %v4075_v52, %v5523_v15  ;;  %v1985_v37 = vmul.f32 %v4077_v9, %v5525_v16 }
 0x49f   : > { %2518 = vst [vmem:[%s5295_s3 + $0xb3] sm:$0x1] %v2489_v24  ;;  %2521 = vst [vmem:[%s5295_s3 + $0xe3] sm:$0x1] %v2488_v0  ;;  %v1952_v36 = vadd.f32 1e-16, %v5625_v29  ;;  %v2407_v20 = vrot.slane %v2393_v26, %v5564_v46  ;;  %v2408_v45 = vcombine.high %v2400_v38, %v2400_v38  ;;  %v2416_v56 = vrot.slane %v2400_v38, %v5564_v46  ;;  %v1940_v34 = vpop.xlane.xlu1 %1939 }
 0x4a0   : > { %2382 = vst [vmem:[%s5295_s3 + $0x72] sm:$0x1] %v2309_v25  ;;  %3439 = vst.sshfl [vmem:[%s5295_s3 + $0x3] sm:$0x1 pattern:$0x73625140] %v2400_v38  ;;  %v2574_v42 = vcombine.high %v1986_v30, %v1986_v30  ;;  %v2525_v54 = vcombine.high %v1985_v37, %v1985_v37  ;;  %v2532_v63 = vrot.slane %v1985_v37, %v5564_v46 }
 0x4a1   : > { %v1951_v35 = vadd.f32 1e-16, %v5636_v50  ;;  %2522 = vst [vmem:[%s5295_s3 + $0xf3] sm:$0x1] %v2490_v6  ;;  %4078 = vrsqrt.f32 %v1952_v36  ;;  %v1954_v57 = vadd.f32 1e-16, %v1932_v58  ;;  %v2409_v39 = vcombine.high %v2407_v20, %v2407_v20 }
 0x4a2   : > { %v1953_v32 = vadd.f32 1e-16, %v1930_v11  ;;  %v2423_v29 = vrot.slane %v2407_v20, %v5564_v46  ;;  %v2430_v31 = vrot.slane %v2408_v45, %v5564_v46  ;;  %v2438_v33 = vcombine.high %v2416_v56, %v2416_v56  ;;  %3440 = vst.sshfl [vmem:[%s5295_s3 + $0x13] sm:$0x1 pattern:$0x73625140] %v2408_v45 }
 0x4a3   : > { %3441 = vst.sshfl [vmem:[%s5295_s3 + $0x43] sm:$0x1 pattern:$0x73625140] %v2407_v20  ;;  %v2437_v59 = vrot.slane %v2409_v39, %v5564_v46  ;;  %4080 = vrsqrt.f32 %v1951_v35  ;;  %v1956_v51 = vadd.f32 1e-16, %v1936_v10  ;;  %v2581_v58 = vrot.slane %v1986_v30, %v5564_v46 }
 0x4a4   : > { %v2439_v48 = vcombine.high %v2423_v29, %v2423_v29  ;;  %v2440_v50 = vcombine.high %v2430_v31, %v2430_v31  ;;  %2509 = vst [vmem:[%s5295_s3 + $0x23] sm:$0x1] %v2438_v33  ;;  %3442 = vst.sshfl [vmem:[%s5295_s3 + $0x53] sm:$0x1 pattern:$0x73625140] %v2409_v39  ;;  %4082 = vrsqrt.f32 %v1954_v57  ;;  %v2588_v1 = vrot.slane %v2574_v42, %v5564_v46 }
 0x4a5   : > { %v2441_v4 = vcombine.high %v2437_v59, %v2437_v59  ;;  %4084 = vrsqrt.f32 %v1953_v32  ;;  %v1955_v55 = vadd.f32 1e-16, %v1934_v23  ;;  %v1958_v61 = vadd.f32 1e-16, %v1940_v34 }
 0x4a6   : > { %2510 = vst [vmem:[%s5295_s3 + $0x33] sm:$0x1] %v2440_v50  ;;  %2513 = vst [vmem:[%s5295_s3 + $0x63] sm:$0x1] %v2439_v48  ;;  %4086 = vrsqrt.f32 %v1956_v51  ;;  %v1957_v53 = vadd.f32 1e-16, %v1938_v43  ;;  %v2589_v2 = vcombine.high %v2581_v58, %v2581_v58  ;;  %v2597_v15 = vrot.slane %v2581_v58, %v5564_v46 }
 0x4a7   : > { %2514 = vst [vmem:[%s5295_s3 + $0x73] sm:$0x1] %v2441_v4  ;;  %4088 = vrsqrt.f32 %v1955_v55  ;;  %3451 = vst.sshfl [vmem:[%s5295_s3 + $0x84] sm:$0x1 pattern:$0x73625140] %v2581_v58  ;;  %v2539_v5 = vrot.slane %v2525_v54, %v5564_v46  ;;  %v2540_v7 = vcombine.high %v2532_v63, %v2532_v63  ;;  %v2548_v8 = vrot.slane %v2532_v63, %v5564_v46 }
 0x4a8   : > { %4090 = vrsqrt.f32 %v1958_v61  ;;  %3447 = vst.sshfl [vmem:[%s5295_s3 + $0x4] sm:$0x1 pattern:$0x73625140] %v2532_v63  ;;  %v2590_v12 = vcombine.high %v2588_v1, %v2588_v1  ;;  %v2604_v13 = vrot.slane %v2588_v1, %v5564_v46  ;;  %v2611_v44 = vrot.slane %v2589_v2, %v5564_v46 }
 0x4a9   : > { %4092 = vrsqrt.f32 %v1957_v53  ;;  %v2619_v3 = vcombine.high %v2597_v15, %v2597_v15  ;;  %3452 = vst.sshfl [vmem:[%s5295_s3 + $0x94] sm:$0x1 pattern:$0x73625140] %v2589_v2  ;;  %v2541_v14 = vcombine.high %v2539_v5, %v2539_v5  ;;  %v2555_v17 = vrot.slane %v2539_v5, %v5564_v46 }
 0x4aa   : > { %3453 = vst.sshfl [vmem:[%s5295_s3 + $0xc4] sm:$0x1 pattern:$0x73625140] %v2588_v1  ;;  %v2562_v18 = vrot.slane %v2540_v7, %v5564_v46  ;;  %v2570_v19 = vcombine.high %v2548_v8, %v2548_v8  ;;  %v2618_v0 = vrot.slane %v2590_v12, %v5564_v46  ;;  %v2620_v24 = vcombine.high %v2604_v13, %v2604_v13 }
 0x4ab   : > { %v4079_v40 = vpop.eup %4078  ;;  %3448 = vst.sshfl [vmem:[%s5295_s3 + $0x14] sm:$0x1 pattern:$0x73625140] %v2540_v7  ;;  %v2621_v25 = vcombine.high %v2611_v44, %v2611_v44  ;;  %2649 = vst [vmem:[%s5295_s3 + $0xa4] sm:$0x1] %v2619_v3  ;;  %v2569_v38 = vrot.slane %v2541_v14, %v5564_v46  ;;  %v2571_v10 = vcombine.high %v2555_v17, %v2555_v17 }
 0x4ac   : > { %v1988_v16 = vmul.f32 %v4079_v40, %v5531_v21  ;;  %3449 = vst.sshfl [vmem:[%s5295_s3 + $0x44] sm:$0x1 pattern:$0x73625140] %v2539_v5  ;;  %v2572_v6 = vcombine.high %v2562_v18, %v2562_v18  ;;  %2641 = vst [vmem:[%s5295_s3 + $0x24] sm:$0x1] %v2570_v19  ;;  %v2622_v20 = vcombine.high %v2618_v0, %v2618_v0 }
 0x4ad   : > { %v4081_v11 = vpop.eup %4080  ;;  %3454 = vst.sshfl [vmem:[%s5295_s3 + $0xd4] sm:$0x1 pattern:$0x73625140] %v2590_v12  ;;  %2650 = vst [vmem:[%s5295_s3 + $0xb4] sm:$0x1] %v2621_v25  ;;  %v2573_v57 = vcombine.high %v2569_v38, %v2569_v38 }
 0x4ae   : > { %v4083_v21 = vpop.eup %4082  ;;  %v2706_v26 = vcombine.high %v1988_v16, %v1988_v16  ;;  %3450 = vst.sshfl [vmem:[%s5295_s3 + $0x54] sm:$0x1 pattern:$0x73625140] %v2541_v14  ;;  %v2713_v36 = vrot.slane %v1988_v16, %v5564_v46  ;;  %2653 = vst [vmem:[%s5295_s3 + $0xe4] sm:$0x1] %v2620_v24  ;;  %v1987_v56 = vmul.f32 %v4081_v11, %v5533_v22 }
 0x4af   : > { %v4085_v47 = vpop.eup %4084  ;;  %v1990_v35 = vmul.f32 %v4083_v21, %v5539_v27  ;;  %2642 = vst [vmem:[%s5295_s3 + $0x34] sm:$0x1] %v2572_v6  ;;  %2645 = vst [vmem:[%s5295_s3 + $0x64] sm:$0x1] %v2571_v10 }
 0x4b0   : > { %v2720_v45 = vrot.slane %v2706_v26, %v5564_v46  ;;  %v5732_v23 = vpop.eup %4086  ;;  %v2721_v32 = vcombine.high %v2713_v36, %v2713_v36  ;;  %v2729_v39 = vrot.slane %v2713_v36, %v5564_v46  ;;  %3459 = vst.sshfl [vmem:[%s5295_s3 + $0x85] sm:$0x1 pattern:$0x73625140] %v2713_v36  ;;  %v5739_v29 = vmul.f32 %v4085_v47, %v5541_v28 }
 0x4b1   : > { %v5741_v31 = vpop.eup %4088  ;;  %2654 = vst [vmem:[%s5295_s3 + $0xf4] sm:$0x1] %v2622_v20  ;;  %v2657_v33 = vcombine.high %v1987_v56, %v1987_v56  ;;  %v2664_v59 = vrot.slane %v1987_v56, %v5564_v46  ;;  %2646 = vst [vmem:[%s5295_s3 + $0x74] sm:$0x1] %v2573_v57  ;;  %v2838_v28 = vcombine.high %v1990_v35, %v1990_v35 }
 0x4b2   : > { %v2722_v22 = vcombine.high %v2720_v45, %v2720_v45  ;;  %v2736_v27 = vrot.slane %v2720_v45, %v5564_v46  ;;  %3461 = vst.sshfl [vmem:[%s5295_s3 + $0xc5] sm:$0x1 pattern:$0x73625140] %v2720_v45  ;;  %v4091_v48 = vpop.eup %4090  ;;  %v2743_v50 = vrot.slane %v2721_v32, %v5564_v46  ;;  %v2751_v34 = vcombine.high %v2729_v39, %v2729_v39 }
 0x4b3   : > { %3460 = vst.sshfl [vmem:[%s5295_s3 + $0x95] sm:$0x1 pattern:$0x73625140] %v2721_v32  ;;  %v2845_v51 = vrot.slane %v1990_v35, %v5564_v46  ;;  %v2671_v43 = vrot.slane %v2657_v33, %v5564_v46  ;;  %v2672_v52 = vcombine.high %v2664_v59, %v2664_v59  ;;  %v5755_v61 = vpop.eup %4092  ;;  %v2680_v30 = vrot.slane %v2664_v59, %v5564_v46 }
 0x4b4   : > { %v2750_v4 = vrot.slane %v2722_v22, %v5564_v46  ;;  %v2752_v55 = vcombine.high %v2736_v27, %v2736_v27  ;;  %3462 = vst.sshfl [vmem:[%s5295_s3 + $0xd5] sm:$0x1 pattern:$0x73625140] %v2722_v22  ;;  %v2753_v9 = vcombine.high %v2743_v50, %v2743_v50  ;;  %2781 = vst [vmem:[%s5295_s3 + $0xa5] sm:$0x1] %v2751_v34 }
 0x4b5   : > { %3455 = vst.sshfl [vmem:[%s5295_s3 + $0x5] sm:$0x1 pattern:$0x73625140] %v2664_v59  ;;  %v2852_v37 = vrot.slane %v2838_v28, %v5564_v46  ;;  %v2853_v53 = vcombine.high %v2845_v51, %v2845_v51  ;;  %v2673_v58 = vcombine.high %v2671_v43, %v2671_v43  ;;  %v2687_v40 = vrot.slane %v2671_v43, %v5564_v46 }
 0x4b6   : > { %3467 = vst.sshfl [vmem:[%s5295_s3 + $0x86] sm:$0x1 pattern:$0x73625140] %v2845_v51  ;;  %v2754_v42 = vcombine.high %v2750_v4, %v2750_v4  ;;  %2785 = vst [vmem:[%s5295_s3 + $0xe5] sm:$0x1] %v2752_v55  ;;  %v2694_v54 = vrot.slane %v2672_v52, %v5564_v46  ;;  %v2702_v63 = vcombine.high %v2680_v30, %v2680_v30 }
 0x4b7   : > { %3456 = vst.sshfl [vmem:[%s5295_s3 + $0x15] sm:$0x1 pattern:$0x73625140] %v2672_v52  ;;  %2782 = vst [vmem:[%s5295_s3 + $0xb5] sm:$0x1] %v2753_v9  ;;  %v2854_v1 = vcombine.high %v2852_v37, %v2852_v37  ;;  %v2861_v2 = vrot.slane %v2845_v51, %v5564_v46  ;;  %v2868_v15 = vrot.slane %v2852_v37, %v5564_v46 }
 0x4b8   : > { %3457 = vst.sshfl [vmem:[%s5295_s3 + $0x45] sm:$0x1 pattern:$0x73625140] %v2671_v43  ;;  %2786 = vst [vmem:[%s5295_s3 + $0xf5] sm:$0x1] %v2754_v42  ;;  %v2701_v16 = vrot.slane %v2673_v58, %v5564_v46  ;;  %v2703_v5 = vcombine.high %v2687_v40, %v2687_v40  ;;  %v2704_v7 = vcombine.high %v2694_v54, %v2694_v54 }
 0x4b9   : > { %3468 = vst.sshfl [vmem:[%s5295_s3 + $0x96] sm:$0x1 pattern:$0x73625140] %v2853_v53  ;;  %v2875_v8 = vrot.slane %v2853_v53, %v5564_v46  ;;  %2773 = vst [vmem:[%s5295_s3 + $0x25] sm:$0x1] %v2702_v63  ;;  %v2882_v11 = vrot.slane %v2854_v1, %v5564_v46  ;;  %v2883_v12 = vcombine.high %v2861_v2, %v2861_v2 }
 0x4ba   : > { %3469 = vst.sshfl [vmem:[%s5295_s3 + $0xc6] sm:$0x1 pattern:$0x73625140] %v2852_v37  ;;  %v2884_v13 = vcombine.high %v2868_v15, %v2868_v15  ;;  %v2789_v44 = vcombine.high %v5739_v29, %v5739_v29  ;;  %v2705_v3 = vcombine.high %v2701_v16, %v2701_v16  ;;  %2774 = vst [vmem:[%s5295_s3 + $0x35] sm:$0x1] %v2704_v7 }
 0x4bb   : > { %3458 = vst.sshfl [vmem:[%s5295_s3 + $0x55] sm:$0x1 pattern:$0x73625140] %v2673_v58  ;;  %2777 = vst [vmem:[%s5295_s3 + $0x65] sm:$0x1] %v2703_v5  ;;  %v2885_v21 = vcombine.high %v2875_v8, %v2875_v8  ;;  %v2796_v14 = vrot.slane %v5739_v29, %v5564_v46  ;;  %v1992_v17 = vmul.f32 %v5732_v23, %v5547_v41 }
 0x4bc   : > { %3470 = vst.sshfl [vmem:[%s5295_s3 + $0xd6] sm:$0x1 pattern:$0x73625140] %v2854_v1  ;;  %v2886_v18 = vcombine.high %v2882_v11, %v2882_v11  ;;  %2913 = vst [vmem:[%s5295_s3 + $0xa6] sm:$0x1] %v2883_v12  ;;  %v2803_v19 = vrot.slane %v2789_v44, %v5564_v46  ;;  %v1991_v47 = vmul.f32 %v5741_v31, %v5549_v49 }
 0x4bd   : > { %2917 = vst [vmem:[%s5295_s3 + $0xe6] sm:$0x1] %v2884_v13  ;;  %v5792_v0 = vmul.f32 %v4091_v48, %v5555_v60  ;;  %2778 = vst [vmem:[%s5295_s3 + $0x75] sm:$0x1] %v2705_v3  ;;  %v2804_v24 = vcombine.high %v2796_v14, %v2796_v14  ;;  %v2812_v25 = vrot.slane %v2796_v14, %v5564_v46 }
 0x4be   : > { %2914 = vst [vmem:[%s5295_s3 + $0xb6] sm:$0x1] %v2885_v21  ;;  %3463 = vst.sshfl [vmem:[%s5295_s3 + $0x6] sm:$0x1 pattern:$0x73625140] %v2796_v14  ;;  %v2970_v41 = vcombine.high %v1992_v17, %v1992_v17  ;;  %v2977_v26 = vrot.slane %v1992_v17, %v5564_v46  ;;  %v2805_v38 = vcombine.high %v2803_v19, %v2803_v19 }
 0x4bf   : > { %2918 = vst [vmem:[%s5295_s3 + $0xf6] sm:$0x1] %v2886_v18  ;;  %v2819_v49 = vrot.slane %v2803_v19, %v5564_v46  ;;  %3465 = vst.sshfl [vmem:[%s5295_s3 + $0x46] sm:$0x1 pattern:$0x73625140] %v2803_v19  ;;  %v2921_v60 = vcombine.high %v1991_v47, %v1991_v47  ;;  %v2928_v10 = vrot.slane %v1991_v47, %v5564_v46 }
 0x4c0   : > { %v2826_v6 = vrot.slane %v2804_v24, %v5564_v46  ;;  %v2834_v36 = vcombine.high %v2812_v25, %v2812_v25  ;;  %3464 = vst.sshfl [vmem:[%s5295_s3 + $0x16] sm:$0x1 pattern:$0x73625140] %v2804_v24  ;;  %v2984_v20 = vrot.slane %v2970_v41, %v5564_v46  ;;  %v2985_v45 = vcombine.high %v2977_v26, %v2977_v26 }
 0x4c1   : > { %3475 = vst.sshfl [vmem:[%s5295_s3 + $0x87] sm:$0x1 pattern:$0x73625140] %v2977_v26  ;;  %v2833_v56 = vrot.slane %v2805_v38, %v5564_v46  ;;  %v2835_v35 = vcombine.high %v2819_v49, %v2819_v49  ;;  %v2993_v23 = vrot.slane %v2977_v26, %v5564_v46  ;;  %v2935_v57 = vrot.slane %v2921_v60, %v5564_v46 }
 0x4c2   : > { %3466 = vst.sshfl [vmem:[%s5295_s3 + $0x56] sm:$0x1 pattern:$0x73625140] %v2805_v38  ;;  %v2836_v32 = vcombine.high %v2826_v6, %v2826_v6  ;;  %2905 = vst [vmem:[%s5295_s3 + $0x26] sm:$0x1] %v2834_v36  ;;  %v2986_v39 = vcombine.high %v2984_v20, %v2984_v20  ;;  %v3000_v29 = vrot.slane %v2984_v20, %v5564_v46 }
 0x4c3   : > { %3471 = vst.sshfl [vmem:[%s5295_s3 + $0x7] sm:$0x1 pattern:$0x73625140] %v2928_v10  ;;  %v3007_v31 = vrot.slane %v2985_v45, %v5564_v46  ;;  %v2837_v22 = vcombine.high %v2833_v56, %v2833_v56  ;;  %2909 = vst [vmem:[%s5295_s3 + $0x66] sm:$0x1] %v2835_v35  ;;  %v3015_v27 = vcombine.high %v2993_v23, %v2993_v23 }
 0x4c4   : > { %3476 = vst.sshfl [vmem:[%s5295_s3 + $0x97] sm:$0x1 pattern:$0x73625140] %v2985_v45  ;;  %v2936_v33 = vcombine.high %v2928_v10, %v2928_v10  ;;  %v2937_v59 = vcombine.high %v2935_v57, %v2935_v57  ;;  %2906 = vst [vmem:[%s5295_s3 + $0x36] sm:$0x1] %v2836_v32  ;;  %v3014_v48 = vrot.slane %v2986_v39, %v5564_v46 }
 0x4c5   : > { %3477 = vst.sshfl [vmem:[%s5295_s3 + $0xc7] sm:$0x1 pattern:$0x73625140] %v2984_v20  ;;  %v3016_v50 = vcombine.high %v3000_v29, %v3000_v29  ;;  %v3017_v34 = vcombine.high %v3007_v31, %v3007_v31  ;;  %v2944_v28 = vrot.slane %v2928_v10, %v5564_v46  ;;  %2910 = vst [vmem:[%s5295_s3 + $0x76] sm:$0x1] %v2837_v22 }
 0x4c6   : > { %3473 = vst.sshfl [vmem:[%s5295_s3 + $0x47] sm:$0x1 pattern:$0x73625140] %v2935_v57  ;;  %3045 = vst [vmem:[%s5295_s3 + $0xa7] sm:$0x1] %v3015_v27  ;;  %v2951_v51 = vrot.slane %v2935_v57, %v5564_v46  ;;  %v2958_v4 = vrot.slane %v2936_v33, %v5564_v46  ;;  %v2965_v55 = vrot.slane %v2937_v59, %v5564_v46 }
 0x4c7   : > { %3478 = vst.sshfl [vmem:[%s5295_s3 + $0xd7] sm:$0x1 pattern:$0x73625140] %v2986_v39  ;;  %v3102_v43 = vcombine.high %v5792_v0, %v5792_v0  ;;  %v3018_v52 = vcombine.high %v3014_v48, %v3014_v48  ;;  %3046 = vst [vmem:[%s5295_s3 + $0xb7] sm:$0x1] %v3017_v34  ;;  %v2966_v9 = vcombine.high %v2944_v28, %v2944_v28 }
 0x4c8   : > { %3472 = vst.sshfl [vmem:[%s5295_s3 + $0x17] sm:$0x1 pattern:$0x73625140] %v2936_v33  ;;  %3049 = vst [vmem:[%s5295_s3 + $0xe7] sm:$0x1] %v3016_v50  ;;  %v3109_v30 = vrot.slane %v5792_v0, %v5564_v46  ;;  %v1993_v37 = vmul.f32 %v5755_v61, %v5557_v62  ;;  %v2967_v53 = vcombine.high %v2951_v51, %v2951_v51 }
 0x4c9   : > { %3474 = vst.sshfl [vmem:[%s5295_s3 + $0x57] sm:$0x1 pattern:$0x73625140] %v2937_v59  ;;  %v2968_v42 = vcombine.high %v2958_v4, %v2958_v4  ;;  %v2969_v58 = vcombine.high %v2965_v55, %v2965_v55  ;;  %v3116_v40 = vrot.slane %v3102_v43, %v5564_v46  ;;  %3050 = vst [vmem:[%s5295_s3 + $0xf7] sm:$0x1] %v3018_v52 }
 0x4ca   : > { %3037 = vst [vmem:[%s5295_s3 + $0x27] sm:$0x1] %v2966_v9  ;;  %v3117_v54 = vcombine.high %v3109_v30, %v3109_v30  ;;  %v3125_v63 = vrot.slane %v3109_v30, %v5564_v46  ;;  %3483 = vst.sshfl [vmem:[%s5295_s3 + $0x88] sm:$0x1 pattern:$0x73625140] %v3109_v30  ;;  %v3053_v1 = vcombine.high %v1993_v37, %v1993_v37 }
 0x4cb   : > { %v3060_v2 = vrot.slane %v1993_v37, %v5564_v46  ;;  %3038 = vst [vmem:[%s5295_s3 + $0x37] sm:$0x1] %v2968_v42  ;;  %3041 = vst [vmem:[%s5295_s3 + $0x67] sm:$0x1] %v2967_v53  ;;  %v3118_v62 = vcombine.high %v3116_v40, %v3116_v40  ;;  %v3132_v61 = vrot.slane %v3116_v40, %v5564_v46 }
 0x4cc   : > { %3042 = vst [vmem:[%s5295_s3 + $0x77] sm:$0x1] %v2969_v58  ;;  %3485 = vst.sshfl [vmem:[%s5295_s3 + $0xc8] sm:$0x1 pattern:$0x73625140] %v3116_v40  ;;  %v3139_v15 = vrot.slane %v3117_v54, %v5564_v46  ;;  %v3147_v16 = vcombine.high %v3125_v63, %v3125_v63  ;;  %v3067_v5 = vrot.slane %v3053_v1, %v5564_v46 }
 0x4cd   : > { %3484 = vst.sshfl [vmem:[%s5295_s3 + $0x98] sm:$0x1 pattern:$0x73625140] %v3117_v54  ;;  %v3068_v7 = vcombine.high %v3060_v2, %v3060_v2  ;;  %v3146_v8 = vrot.slane %v3118_v62, %v5564_v46  ;;  %v3148_v11 = vcombine.high %v3132_v61, %v3132_v61  ;;  %v3076_v12 = vrot.slane %v3060_v2, %v5564_v46 }
 0x4ce   : > { %3479 = vst.sshfl [vmem:[%s5295_s3 + $0x8] sm:$0x1 pattern:$0x73625140] %v3060_v2  ;;  %v3149_v13 = vcombine.high %v3139_v15, %v3139_v15  ;;  %3177 = vst [vmem:[%s5295_s3 + $0xa8] sm:$0x1] %v3147_v16  ;;  %v3069_v44 = vcombine.high %v3067_v5, %v3067_v5  ;;  %v3083_v3 = vrot.slane %v3067_v5, %v5564_v46 }
 0x4cf   : > { %3486 = vst.sshfl [vmem:[%s5295_s3 + $0xd8] sm:$0x1 pattern:$0x73625140] %v3118_v62  ;;  %v3090_v21 = vrot.slane %v3068_v7, %v5564_v46  ;;  %v3150_v14 = vcombine.high %v3146_v8, %v3146_v8  ;;  %3181 = vst [vmem:[%s5295_s3 + $0xe8] sm:$0x1] %v3148_v11  ;;  %v3098_v17 = vcombine.high %v3076_v12, %v3076_v12 }
 0x4d0   : > { %3480 = vst.sshfl [vmem:[%s5295_s3 + $0x18] sm:$0x1 pattern:$0x73625140] %v3068_v7  ;;  %3178 = vst [vmem:[%s5295_s3 + $0xb8] sm:$0x1] %v3149_v13  ;;  %v3097_v18 = vrot.slane %v3069_v44, %v5564_v46  ;;  %v3099_v19 = vcombine.high %v3083_v3, %v3083_v3 }
 0x4d1   : > { %3481 = vst.sshfl [vmem:[%s5295_s3 + $0x48] sm:$0x1 pattern:$0x73625140] %v3067_v5  ;;  %v3100_v47 = vcombine.high %v3090_v21, %v3090_v21  ;;  %3182 = vst [vmem:[%s5295_s3 + $0xf8] sm:$0x1] %v3150_v14 }
 0x4d2   : > { %3482 = vst.sshfl [vmem:[%s5295_s3 + $0x58] sm:$0x1 pattern:$0x73625140] %v3069_v44  ;;  %3169 = vst [vmem:[%s5295_s3 + $0x28] sm:$0x1] %v3098_v17  ;;  %v3101_v0 = vcombine.high %v3097_v18, %v3097_v18 }
 0x4d3   : > { %3170 = vst [vmem:[%s5295_s3 + $0x38] sm:$0x1] %v3100_v47  ;;  %3173 = vst [vmem:[%s5295_s3 + $0x68] sm:$0x1] %v3099_v19 }
 0x4d4   : > { %3174 = vst [vmem:[%s5295_s3 + $0x78] sm:$0x1] %v3101_v0 }
 0x4d5   : > { %4303 = shalt.err (!%p4300_p8)
}
 0x4d6   : > { %s4304_s3 = scalar_lea.hbm %s5872_s9, 4096  ;;  %s4308_s24 = scalar_lea.hbm %s6118_s16, 8192 }
 0x4d7   : > { %p4305_p9 = scmp.ne.s32.totalorder %s5872_s9, %s4304_s3  ;;  %p4309_p2 = scmp.lt.u32.totalorder %s5872_s9, %s6118_s16 }
 0x4d8   : > { %p4310_p0 = scmp.lt.u32.totalorder %s4308_s24, %s4304_s3  ;;  %p4312_p6 = scmp.lt.u32.totalorder %s4304_s3, %s5872_s9 }
 0x4d9   : > { %p4306_p10 = pnand %p4305_p9, %p6119_p11 }
 0x4da   : > { %p4311_p5 = por %p4310_p0, %p4309_p2 }
 0x4db   : > { %p4307_p1 = pneg %p4306_p10 }
 0x4dc   : > { %p4313_p12 = por %p4312_p6, %p4311_p5 }
 0x4de   : > { %p4314_p3 = pnand %p4313_p12, %p4307_p1 }
 0x4e0   : > { %4317 = shalt.err (!%p4314_p3)
}
 0x4e1   : > { %s4442_s20 = smov 128   ;;  %s4443_s8 = smov 8  }
 0x4e2   : > { %3882 = dma.vmem_to_hbm [thread:$0]  (%p6119_p11), %s5874_s19, 4096, %s5872_s9, %s3184_s22, %s4442_s20, %s4442_s20, %s4443_s8  }
 0x4e3 PF: > { %s6120_s15 = sld [smem:[#allocation29_spill]]  ;;  %s6121_s23 = sld [smem:[#allocation32_spill]] }
 0x4e9   : > { %s3213_s21 = sand.u32 1, %s6120_s15   ;;  %p6122_p13 = scmp.ne.s32.totalorder %s6121_s23, 0 }
 0x4ea   : > { %s3214_s11 = scalar_lea.sflag [#allocation6], %s3213_s21 }
 0x4eb   : > { %p3904_p7 = pnand %p3384_p4, %p6122_p13 }
 0x4ed   : > { %4379 = dma.done.wait (!%p3904_p7), %s3214_s11, 4096  }
 0x4ee   : > { %4381 = vsyncadd (!%p3904_p7), %s3214_s11, 4294963200  ;;  %s6123_s30 = sld [smem:[#allocation30_spill]]  ;;  %s6124_s26 = sld [smem:[#allocation31_spill]] }
 0x4ef   : > { %s6125_s27 = smov %s4388_s28  ;;  %s6126_s28 = smov %s4392_s29 }
 0x4f4   : > { %p27_p8 = scmp.ge.s32.totalorder %s6123_s30, 4   ;;  %s6127_s29 = smov %s6124_s26 }
 0x4f6   :  { %29 = sbr.rel (!%p27_p8) target bundleno = 13 (0xd), region = 161 }
 0x4fd   :  { %3219 = vsyncpa [#allocation5], 1 }
 0x4fe   :  { %3221 = vsyncpa [#allocation5 + $0x1], 1 }
 0x4ff   :  { %3222 = vsyncpa [#allocation8], 1 }
 0x500   :  { %3224 = vsyncpa [#allocation8 + $0x1], 1 }
 0x501   :  { %3225 = vsyncpa [#allocation11], 1 }
 0x502   :  { %3226 = vsyncpa [#allocation14], 1 }
 0x503   :  { %3227 = vsyncpa [#allocation17], 1 }
 0x504   :  { %3228 = vsyncpa [#allocation6], 1 }
 0x505   :  { %3230 = vsyncpa [#allocation6 + $0x1], 1 }

</bundles_post_ra>
